<compile_context>
chip_gen: v6e
topology: v6e:2x2x1
jax: 0.10.0
libtpu: 0.0.40
codegen_flags: <defaults>
</compile_context>

<pallas_src>
import functools

import jax
import jax.numpy as jnp
import numpy as np
from jax.experimental import pallas as pl
from jax.experimental.pallas import tpu as pltpu


def _round_up(n, m):
    return ((n + m - 1) // m) * m


# ----------------------------------------------------------------------------
# Host-side parameter preparation (gate permutation, fusion, slab packing)
# ----------------------------------------------------------------------------
def _perm_ifog(w):
    """(..., 4H) PyTorch gate order (i, f, g, o) -> (i, f, o, g)."""
    H = w.shape[-1] // 4
    return jnp.concatenate(
        [w[..., :2 * H], w[..., 3 * H:4 * H], w[..., 2 * H:3 * H]], axis=-1)


def _interleave_gates(wf, wb):
    """fwd/bwd (..., 4H) in (i,f,o,g) order -> (..., 8H) laid out
    [i_f,i_b,f_f,f_b,o_f,o_b,g_f,g_b] so a (., 2H) state [h_f|h_b] drives both
    directions through one block-diagonal recurrent matmul."""
    H = wf.shape[-1] // 4
    parts = []
    for k in range(4):
        parts.append(wf[..., k * H:(k + 1) * H])
        parts.append(wb[..., k * H:(k + 1) * H])
    return jnp.concatenate(parts, axis=-1)


class _Packer:
    """Packs the many tiny parameter arrays into one (rows, >=128) f32 slab so
    the kernel has a single parameter input; each weight is recovered with a
    free static ref slice (row offsets padded to the 8-sublane granularity)."""

    def __init__(self):
        self._arrs = []
        self.index = {}          # name -> (row_offset, rows, cols)  (static)
        self._rows = 0
        self._maxc = 0

    def add(self, name, arr):
        arr = jnp.asarray(arr, jnp.float32)
        r, c = arr.shape
        self.index[name] = (self._rows, r, c)
        self._arrs.append(arr)
        self._rows += _round_up(r, 8)
        self._maxc = max(self._maxc, c)

    def finalize(self):
        width = _round_up(max(self._maxc, 128), 128)
        blocks = []
        for arr in self._arrs:
            r, c = arr.shape
            blocks.append(jnp.pad(arr, ((0, _round_up(r, 8) - r),
                                        (0, width - c))))
        return jnp.concatenate(blocks, axis=0), self.index


def _prepare_params(params):
    """Permute gates to (i,f,o,g), build the fused bidirectional weights, fuse
    dense1/dense2 and pack everything into one slab."""
    enc, dec, dense = params['enc'], params['dec'], params['dense']
    n_hidden = len(enc) - 1
    pk = _Packer()

    def add_reduce_bilstm(prefix, p):
        pk.add(prefix + '_wih_f', _perm_ifog(p['w_ih_f']))
        pk.add(prefix + '_whh_f', _perm_ifog(p['w_hh_f']))
        pk.add(prefix + '_b_f', _perm_ifog(p['b_f']))
        pk.add(prefix + '_wih_b', _perm_ifog(p['w_ih_b']))
        pk.add(prefix + '_b_b', _perm_ifog(p['b_b']))

    # encoder bidirectional layers whose output is reduced to the last step
    for i in range(n_hidden - 1):
        add_reduce_bilstm(f'enc{i}', enc[i])

    # last encoder BiLSTM: fwd/bwd fused into one width-2H recurrence
    pL = enc[n_hidden - 1]
    HL = pL['w_hh_f'].shape[0]
    wf_ih, wb_ih = _perm_ifog(pL['w_ih_f']), _perm_ifog(pL['w_ih_b'])
    wf_hh, wb_hh = _perm_ifog(pL['w_hh_f']), _perm_ifog(pL['w_hh_b'])
    bf, bb = _perm_ifog(pL['b_f']), _perm_ifog(pL['b_b'])
    pk.add('encL_wih_fpad', _interleave_gates(wf_ih, jnp.zeros_like(wb_ih)))
    pk.add('encL_wih_bpad', _interleave_gates(jnp.zeros_like(wf_ih), wb_ih))
    pk.add('encL_b', _interleave_gates(bf, bb))
    pk.add('encL_whh', jnp.concatenate(
        [_interleave_gates(wf_hh, jnp.zeros_like(wb_hh)),
         _interleave_gates(jnp.zeros_like(wf_hh), wb_hh)], axis=0))

    # final encoder LSTM: input weight split per direction (zero-padded) so it
    # can consume the fused layer's step-ordered outputs without per-timestep
    # lane concats.
    pF = enc[n_hidden]
    wih = _perm_ifog(pF['w_ih_f'])                 # (2*HL, 4K)
    zero_half = jnp.zeros_like(wih[:HL])
    pk.add('encF_wtop', jnp.concatenate([wih[:HL], zero_half], axis=0))
    pk.add('encF_wbot', jnp.concatenate([zero_half, wih[HL:]], axis=0))
    pk.add('encF_whh', _perm_ifog(pF['w_hh_f']))
    pk.add('encF_b', _perm_ifog(pF['b_f']))

    # decoder bidirectional layers (all reduced to last step)
    for i in range(n_hidden):
        add_reduce_bilstm(f'dec{i}', dec[i])

    # final decoder LSTM
    pD = dec[n_hidden]
    pk.add('decF_wih', _perm_ifog(pD['w_ih_f']))
    pk.add('decF_whh', _perm_ifog(pD['w_hh_f']))
    pk.add('decF_b', _perm_ifog(pD['b_f']))

    # dense1 -> dense2 (no nonlinearity between them) fused into one affine map
    hp = jax.lax.Precision.HIGHEST
    pk.add('dense_w', jnp.dot(dense['w1'], dense['w2'], precision=hp))
    pk.add('dense_b', jnp.dot(dense['b1'], dense['w2'], precision=hp)
           + dense['b2'])

    slab, index = pk.finalize()
    return slab, index, n_hidden


# ----------------------------------------------------------------------------
# Fused forward kernel
# ----------------------------------------------------------------------------
def _autoencoder_kernel(x_ref, p_ref, o_ref, *, index, n_hidden, seq_len,
                        batch):
    T, Bp = seq_len, batch

    def get(name):
        off, r, c = index[name]               # static slice: lazy, zero cost
        return p_ref[off:off + r, 0:c]

    def dot(a, b):
        return jnp.dot(a, b, preferred_element_type=jnp.float32)

    # gates laid out (i | f | o | g): one sigmoid over the leading 3/4 slab +
    # one tanh (plus tanh(c)) per cell -> 3 EUP pushes instead of 5.
    def cell(g, c):
        hw = g.shape[-1] // 4
        sig = jax.nn.sigmoid(g[:, :3 * hw])
        gg = jnp.tanh(g[:, 3 * hw:])
        c_new = sig[:, hw:2 * hw] * c + sig[:, :hw] * gg
        return sig[:, 2 * hw:3 * hw] * jnp.tanh(c_new), c_new

    def first_step(xg):
        # single step from (h, c) = 0: recurrent and forget terms vanish
        hw = xg.shape[-1] // 4
        sig = jax.nn.sigmoid(xg[:, :3 * hw])
        gg = jnp.tanh(xg[:, 3 * hw:])
        return sig[:, 2 * hw:3 * hw] * jnp.tanh(sig[:, :hw] * gg)

    def run(xg_at, w_hh, collect):
        hw = w_hh.shape[0]
        h = jnp.zeros((Bp, hw), jnp.float32)
        c = jnp.zeros((Bp, hw), jnp.float32)
        ys = []
        for s in range(T):                    # T static & small: full unroll
            h, c = cell(xg_at(s) + dot(h, w_hh), c)
            ys.append(h)
        return ys if collect else h

    def reduce_bilstm(prefix, inp, is_seq):
        # downstream only consumes out[:, -1] = [h_fwd(T-1) | h_bwd(T-1)]:
        #   fwd half = full T-step recurrence, bwd half = ONE step on x[:, -1]
        w_ih_f, b_f = get(prefix + '_wih_f'), get(prefix + '_b_f')
        if is_seq:                            # inp: (T*Bp, in), t-major rows
            xg_f = dot(inp, w_ih_f) + b_f     # one batched input projection
            xg_at = lambda s: xg_f[s * Bp:(s + 1) * Bp]
            x_last = inp[(T - 1) * Bp:T * Bp]
        else:                                 # inp: (Bp, in), constant over t
            xg_c = dot(inp, w_ih_f) + b_f
            xg_at = lambda s, v=xg_c: v
            x_last = inp
        h_f = run(xg_at, get(prefix + '_whh_f'), collect=False)
        h_b = first_step(dot(x_last, get(prefix + '_wih_b'))
                         + get(prefix + '_b_b'))
        return jnp.concatenate([h_f, h_b], axis=-1)      # (Bp, 2H), constant

    x2d = x_ref[...]                                     # (T*Bp, F), t-major

    # ------------------------------ encoder ---------------------------------
    cur, is_seq = x2d, True
    for i in range(n_hidden - 1):
        cur, is_seq = reduce_bilstm(f'enc{i}', cur, is_seq), False

    # last encoder BiLSTM: fwd+bwd fused into one width-2H recurrence with a
    # block-diagonal recurrent weight; ys[s] = [h_fwd(s) | h_bwd(T-1-s)]
    wih_fp, wih_bp, b_bi = (get('encL_wih_fpad'), get('encL_wih_bpad'),
                            get('encL_b'))
    if is_seq:
        xg_f = dot(cur, wih_fp)                          # fwd cols, time s
        xg_b = dot(cur, wih_bp) + b_bi                   # bwd cols, time T-1-s
        xg_at = lambda s: (xg_f[s * Bp:(s + 1) * Bp]
                           + xg_b[(T - 1 - s) * Bp:(T - s) * Bp])
    else:
        xg_c = dot(cur, wih_fp) + dot(cur, wih_bp) + b_bi
        xg_at = lambda s, v=xg_c: v
    ys = run(xg_at, get('encL_whh'), collect=True)       # step-ordered
    y_steps = jnp.concatenate(ys, axis=0)                # (T*Bp, 2H)

    # final encoder LSTM: per-direction zero-padded input weights turn the
    # step-ordered fused outputs into xg(t) with 2 matmuls + shifted row adds
    a_f = dot(y_steps, get('encF_wtop'))                 # rows: fwd time t
    a_b = dot(y_steps, get('encF_wbot'))                 # rows: bwd time T-1-t
    b_k = get('encF_b')
    xg_at = lambda t: (a_f[t * Bp:(t + 1) * Bp]
                       + a_b[(T - 1 - t) * Bp:(T - t) * Bp] + b_k)
    enc_h = run(xg_at, get('encF_whh'), collect=True)    # time order
    enc2d = jax.nn.sigmoid(jnp.concatenate(enc_h, axis=0))   # activation1

    # ------------------------------ decoder ---------------------------------
    cur, is_seq = enc2d, True
    for i in range(n_hidden):
        cur, is_seq = reduce_bilstm(f'dec{i}', cur, is_seq), False

    # final decoder LSTM (constant input, full sequence output)
    xg_d = dot(cur, get('decF_wih')) + get('decF_b')
    dec_h = run(lambda s, v=xg_d: v, get('decF_whh'), collect=True)

    # fused dense1∘dense2 + sigmoid, single contiguous store
    y = jnp.concatenate(dec_h, axis=0)                   # (T*Bp, F), t-major
    o_ref[...] = jax.nn.sigmoid(dot(y, get('dense_w')) + get('dense_b'))


def model_forward(x, params):
    """LSTMAutoencoder.forward (apply_fft=False) as one fused Pallas kernel."""
    B, T, F = x.shape
    Bp = max(8, _round_up(B, 8))          # pad batch to the f32 sublane count
    slab, index, n_hidden = _prepare_params(params)

    # pad batch and feed the kernel t-major: every per-timestep row slice on
    # the serial recurrence path is then sublane-aligned.
    x_pad = jnp.zeros((Bp, T, F), jnp.float32).at[:B].set(x.astype(jnp.float32))
    x_t = jnp.swapaxes(x_pad, 0, 1).reshape(T * Bp, F)

    kernel = functools.partial(_autoencoder_kernel, index=index,
                               n_hidden=n_hidden, seq_len=T, batch=Bp)
    out2d = pl.pallas_call(
        kernel,
        out_shape=jax.ShapeDtypeStruct((T * Bp, F), jnp.float32),
        grid=(1,),
        in_specs=[pl.BlockSpec((T * Bp, F), lambda i: (0, 0)),
                  pl.BlockSpec(slab.shape, lambda i: (0, 0))],
        out_specs=pl.BlockSpec((T * Bp, F), lambda i: (0, 0)),
        compiler_params=pltpu.CompilerParams(
            dimension_semantics=("arbitrary",)),
    )(x_t, slab)
    # rows are t-major: (T*Bp, F) -> (B, T, F)
    return jnp.swapaxes(out2d.reshape(T, Bp, F), 0, 1)[:B]


# ----------------------------------------------------------------------------
# Parameter init (deterministic, synthetic; PyTorch layout transposed to x @ W,
# gate order (i, f, g, o), combined bias = b_ih + b_hh)
# ----------------------------------------------------------------------------
def _init_lstm_params(key, in_dim, hid, bidirectional, scale=0.1):
    keys = jax.random.split(key, 8)
    mk = lambda k, shape: scale * jax.random.normal(k, shape, jnp.float32)
    p = {
        'w_ih_f': mk(keys[0], (in_dim, 4 * hid)),
        'w_hh_f': mk(keys[1], (hid, 4 * hid)),
        'b_f': mk(keys[2], (1, 4 * hid)) + mk(keys[3], (1, 4 * hid)),
    }
    if bidirectional:
        p.update({
            'w_ih_b': mk(keys[4], (in_dim, 4 * hid)),
            'w_hh_b': mk(keys[5], (hid, 4 * hid)),
            'b_b': mk(keys[6], (1, 4 * hid)) + mk(keys[7], (1, 4 * hid)),
        })
    return p


def init_autoencoder_params(key, input_size, hidden_sizes, encoding_size):
    n_keys = 2 * (len(hidden_sizes) + 1) + 1
    keys = list(jax.random.split(key, n_keys))
    ki = iter(keys)

    enc = []
    for i, h in enumerate(hidden_sizes):
        in_dim = input_size if i == 0 else 2 * hidden_sizes[i - 1]
        enc.append(_init_lstm_params(next(ki), in_dim, h, True))
    enc.append(_init_lstm_params(next(ki), 2 * hidden_sizes[-1],
                                 encoding_size, False))

    rev = hidden_sizes[::-1]
    dec = []
    for i, h in enumerate(rev):
        in_dim = encoding_size if i == 0 else 2 * rev[i - 1]
        dec.append(_init_lstm_params(next(ki), in_dim, h, True))
    dec.append(_init_lstm_params(next(ki), 2 * hidden_sizes[0],
                                 input_size, False))

    kd1, kd2, kd3, kd4 = jax.random.split(next(ki), 4)
    scale = 0.1
    dense = {
        'w1': scale * jax.random.normal(kd1, (input_size, input_size), jnp.float32),
        'b1': scale * jax.random.normal(kd2, (1, input_size), jnp.float32),
        'w2': scale * jax.random.normal(kd3, (input_size, input_size), jnp.float32),
        'b2': scale * jax.random.normal(kd4, (1, input_size), jnp.float32),
    }
    return {'enc': enc, 'dec': dec, 'dense': dense}


# ----------------------------------------------------------------------------
# Pure-JAX reference (straight port of the PyTorch forward, no shortcuts)
# ----------------------------------------------------------------------------
def _ref_dot(a, b):
    return jnp.dot(a, b, precision=jax.lax.Precision.HIGHEST)


def _ref_lstm_dir(x, w_ih, w_hh, b, reverse):
    B, T, _ = x.shape
    H = w_hh.shape[0]
    h = jnp.zeros((B, H), jnp.float32)
    c = jnp.zeros((B, H), jnp.float32)
    ys = [None] * T
    order = range(T - 1, -1, -1) if reverse else range(T)
    for t in order:
        g = _ref_dot(x[:, t, :], w_ih) + _ref_dot(h, w_hh) + b
        i = jax.nn.sigmoid(g[:, :H])
        f = jax.nn.sigmoid(g[:, H:2 * H])
        gg = jnp.tanh(g[:, 2 * H:3 * H])
        o = jax.nn.sigmoid(g[:, 3 * H:])
        c = f * c + i * gg
        h = o * jnp.tanh(c)
        ys[t] = h
    return jnp.stack(ys, axis=1)


def _ref_layer(x, p, bidir):
    y_f = _ref_lstm_dir(x, p['w_ih_f'], p['w_hh_f'], p['b_f'], False)
    if not bidir:
        return y_f
    y_b = _ref_lstm_dir(x, p['w_ih_b'], p['w_hh_b'], p['b_b'], True)
    return jnp.concatenate([y_f, y_b], axis=-1)


def reference_forward(x, params):
    B, T, _ = x.shape
    enc, dec = params['enc'], params['dec']
    n_h = len(enc) - 1
    xs = x
    for i, p in enumerate(enc):
        xs = _ref_layer(xs, p, i < n_h)
        if i < n_h - 1:
            xs = jnp.repeat(xs[:, -1:, :], T, axis=1)
    xs = jax.nn.sigmoid(xs)
    for i, p in enumerate(dec):
        xs = _ref_layer(xs, p, i < n_h)
        if i < n_h:
            xs = jnp.repeat(xs[:, -1:, :], T, axis=1)
    d = params['dense']
    y = _ref_dot(xs, d['w1']) + d['b1']
    y = _ref_dot(y, d['w2']) + d['b2']
    return jax.nn.sigmoid(y)


# ----------------------------------------------------------------------------
if __name__ == "__main__":
    INPUT_SIZE = 8
    HIDDEN_SIZES = [16, 8]
    ENCODING_SIZE = 8
    B, T = 2, 8

    key = jax.random.PRNGKey(0)
    kx, kp = jax.random.split(key)
    x = jax.random.normal(kx, (B, T, INPUT_SIZE), jnp.float32)
    params = init_autoencoder_params(kp, INPUT_SIZE, HIDDEN_SIZES, ENCODING_SIZE)

    out = jax.jit(model_forward)(x, params)
    out = jax.block_until_ready(out)

    assert out.shape == (B, T, INPUT_SIZE), out.shape
    assert bool(jnp.all(jnp.isfinite(out)))

    ref = jax.block_until_ready(jax.jit(reference_forward)(x, params))
    np.testing.assert_allclose(np.asarray(out), np.asarray(ref),
                               rtol=1e-3, atol=1e-3)
    print("KERNEL_OK")
</pallas_src>

<mosaic_0001>
module attributes {stable_mosaic.version = 11 : i64} {
  func.func @_autoencoder_kernel(%arg0: i32, %arg1: memref<64x8xf32, #tpu.memory_space<vmem>>, %arg2: memref<352x128xf32, #tpu.memory_space<vmem>>, %arg3: memref<64x8xf32, #tpu.memory_space<vmem>>) attributes {dimension_semantics = [#tpu.dimension_semantics<arbitrary>], iteration_bounds = array<i64: 1>, scalar_prefetch = 0 : i64, scratch_operands = 0 : i64, tpu.core_type = #tpu.core_type<tc>, window_params = [{pipeline_mode = #tpu.pipeline_mode<synchronous>, transform_indices = @transform_0, window_bounds = array<i64: 64, 8>}, {pipeline_mode = #tpu.pipeline_mode<synchronous>, transform_indices = @transform_1, window_bounds = array<i64: 352, 128>}, {pipeline_mode = #tpu.pipeline_mode<synchronous>, transform_indices = @transform_2, window_bounds = array<i64: 64, 8>}]} {
    %c0 = arith.constant 0 : index
    %c0_0 = arith.constant 0 : index
    %0 = vector.load %arg1[%c0, %c0_0] : memref<64x8xf32, #tpu.memory_space<vmem>>, vector<64x8xf32>
    %c0_1 = arith.constant 0 : index
    %c0_2 = arith.constant 0 : index
    %1 = vector.load %arg2[%c0_1, %c0_2] : memref<352x128xf32, #tpu.memory_space<vmem>>, vector<8x64xf32>
    %c24 = arith.constant 24 : index
    %c0_3 = arith.constant 0 : index
    %2 = vector.load %arg2[%c24, %c0_3] : memref<352x128xf32, #tpu.memory_space<vmem>>, vector<1x64xf32>
    %cst = arith.constant dense<0.000000e+00> : vector<64x64xf32>
    %3 = tpu.matmul %0, %1, %cst {dimension_numbers = #tpu.dot_dimension_numbers<[1], [0], [0], [1], [0, 0, 1, 1], [], []>} : vector<64x8xf32>, vector<8x64xf32>, vector<64x64xf32> -> vector<64x64xf32>
    %4 = vector.broadcast %2 : vector<1x64xf32> to vector<64x64xf32>
    %5 = arith.addf %3, %4 : vector<64x64xf32>
    %6 = vector.extract_strided_slice %0 {offsets = [56, 0], sizes = [8, 8], strides = [1, 1]} : vector<64x8xf32> to vector<8x8xf32>
    %c8 = arith.constant 8 : index
    %c0_4 = arith.constant 0 : index
    %7 = vector.load %arg2[%c8, %c0_4] : memref<352x128xf32, #tpu.memory_space<vmem>>, vector<16x64xf32>
    %cst_5 = arith.constant 0.000000e+00 : f32
    %8 = vector.broadcast %cst_5 : f32 to vector<8x16xf32>
    %cst_6 = arith.constant 0.000000e+00 : f32
    %9 = vector.broadcast %cst_6 : f32 to vector<8x16xf32>
    %10 = vector.extract_strided_slice %5 {offsets = [0, 0], sizes = [8, 64], strides = [1, 1]} : vector<64x64xf32> to vector<8x64xf32>
    %cst_7 = arith.constant dense<0.000000e+00> : vector<8x64xf32>
    %11 = tpu.matmul %8, %7, %cst_7 {dimension_numbers = #tpu.dot_dimension_numbers<[1], [0], [0], [1], [0, 0, 1, 1], [], []>} : vector<8x16xf32>, vector<16x64xf32>, vector<8x64xf32> -> vector<8x64xf32>
    %12 = arith.addf %10, %11 : vector<8x64xf32>
    %13 = vector.extract_strided_slice %12 {offsets = [0, 0], sizes = [8, 48], strides = [1, 1]} : vector<8x64xf32> to vector<8x48xf32>
    %14 = arith.negf %13 : vector<8x48xf32>
    %15 = math.exp %14 : vector<8x48xf32>
    %cst_8 = arith.constant 1.000000e+00 : f32
    %16 = vector.broadcast %cst_8 : f32 to vector<8x48xf32>
    %17 = arith.addf %16, %15 : vector<8x48xf32>
    %18 = arith.divf %16, %17 : vector<8x48xf32>
    %19 = vector.extract_strided_slice %12 {offsets = [0, 48], sizes = [8, 16], strides = [1, 1]} : vector<8x64xf32> to vector<8x16xf32>
    %20 = math.tanh %19 : vector<8x16xf32>
    %21 = vector.extract_strided_slice %18 {offsets = [0, 16], sizes = [8, 16], strides = [1, 1]} : vector<8x48xf32> to vector<8x16xf32>
    %22 = arith.mulf %21, %9 : vector<8x16xf32>
    %23 = vector.extract_strided_slice %18 {offsets = [0, 0], sizes = [8, 16], strides = [1, 1]} : vector<8x48xf32> to vector<8x16xf32>
    %24 = arith.mulf %23, %20 : vector<8x16xf32>
    %25 = arith.addf %22, %24 : vector<8x16xf32>
    %26 = vector.extract_strided_slice %18 {offsets = [0, 32], sizes = [8, 16], strides = [1, 1]} : vector<8x48xf32> to vector<8x16xf32>
    %27 = math.tanh %25 : vector<8x16xf32>
    %28 = arith.mulf %26, %27 : vector<8x16xf32>
    %29 = vector.extract_strided_slice %5 {offsets = [8, 0], sizes = [8, 64], strides = [1, 1]} : vector<64x64xf32> to vector<8x64xf32>
    %cst_9 = arith.constant dense<0.000000e+00> : vector<8x64xf32>
    %30 = tpu.matmul %28, %7, %cst_9 {dimension_numbers = #tpu.dot_dimension_numbers<[1], [0], [0], [1], [0, 0, 1, 1], [], []>} : vector<8x16xf32>, vector<16x64xf32>, vector<8x64xf32> -> vector<8x64xf32>
    %31 = arith.addf %29, %30 : vector<8x64xf32>
    %32 = vector.extract_strided_slice %31 {offsets = [0, 0], sizes = [8, 48], strides = [1, 1]} : vector<8x64xf32> to vector<8x48xf32>
    %33 = arith.negf %32 : vector<8x48xf32>
    %34 = math.exp %33 : vector<8x48xf32>
    %cst_10 = arith.constant 1.000000e+00 : f32
    %35 = vector.broadcast %cst_10 : f32 to vector<8x48xf32>
    %36 = arith.addf %35, %34 : vector<8x48xf32>
    %37 = arith.divf %35, %36 : vector<8x48xf32>
    %38 = vector.extract_strided_slice %31 {offsets = [0, 48], sizes = [8, 16], strides = [1, 1]} : vector<8x64xf32> to vector<8x16xf32>
    %39 = math.tanh %38 : vector<8x16xf32>
    %40 = vector.extract_strided_slice %37 {offsets = [0, 16], sizes = [8, 16], strides = [1, 1]} : vector<8x48xf32> to vector<8x16xf32>
    %41 = arith.mulf %40, %25 : vector<8x16xf32>
    %42 = vector.extract_strided_slice %37 {offsets = [0, 0], sizes = [8, 16], strides = [1, 1]} : vector<8x48xf32> to vector<8x16xf32>
    %43 = arith.mulf %42, %39 : vector<8x16xf32>
    %44 = arith.addf %41, %43 : vector<8x16xf32>
    %45 = vector.extract_strided_slice %37 {offsets = [0, 32], sizes = [8, 16], strides = [1, 1]} : vector<8x48xf32> to vector<8x16xf32>
    %46 = math.tanh %44 : vector<8x16xf32>
    %47 = arith.mulf %45, %46 : vector<8x16xf32>
    %48 = vector.extract_strided_slice %5 {offsets = [16, 0], sizes = [8, 64], strides = [1, 1]} : vector<64x64xf32> to vector<8x64xf32>
    %cst_11 = arith.constant dense<0.000000e+00> : vector<8x64xf32>
    %49 = tpu.matmul %47, %7, %cst_11 {dimension_numbers = #tpu.dot_dimension_numbers<[1], [0], [0], [1], [0, 0, 1, 1], [], []>} : vector<8x16xf32>, vector<16x64xf32>, vector<8x64xf32> -> vector<8x64xf32>
    %50 = arith.addf %48, %49 : vector<8x64xf32>
    %51 = vector.extract_strided_slice %50 {offsets = [0, 0], sizes = [8, 48], strides = [1, 1]} : vector<8x64xf32> to vector<8x48xf32>
    %52 = arith.negf %51 : vector<8x48xf32>
    %53 = math.exp %52 : vector<8x48xf32>
    %cst_12 = arith.constant 1.000000e+00 : f32
    %54 = vector.broadcast %cst_12 : f32 to vector<8x48xf32>
    %55 = arith.addf %54, %53 : vector<8x48xf32>
    %56 = arith.divf %54, %55 : vector<8x48xf32>
    %57 = vector.extract_strided_slice %50 {offsets = [0, 48], sizes = [8, 16], strides = [1, 1]} : vector<8x64xf32> to vector<8x16xf32>
    %58 = math.tanh %57 : vector<8x16xf32>
    %59 = vector.extract_strided_slice %56 {offsets = [0, 16], sizes = [8, 16], strides = [1, 1]} : vector<8x48xf32> to vector<8x16xf32>
    %60 = arith.mulf %59, %44 : vector<8x16xf32>
    %61 = vector.extract_strided_slice %56 {offsets = [0, 0], sizes = [8, 16], strides = [1, 1]} : vector<8x48xf32> to vector<8x16xf32>
    %62 = arith.mulf %61, %58 : vector<8x16xf32>
    %63 = arith.addf %60, %62 : vector<8x16xf32>
    %64 = vector.extract_strided_slice %56 {offsets = [0, 32], sizes = [8, 16], strides = [1, 1]} : vector<8x48xf32> to vector<8x16xf32>
    %65 = math.tanh %63 : vector<8x16xf32>
    %66 = arith.mulf %64, %65 : vector<8x16xf32>
    %67 = vector.extract_strided_slice %5 {offsets = [24, 0], sizes = [8, 64], strides = [1, 1]} : vector<64x64xf32> to vector<8x64xf32>
    %cst_13 = arith.constant dense<0.000000e+00> : vector<8x64xf32>
    %68 = tpu.matmul %66, %7, %cst_13 {dimension_numbers = #tpu.dot_dimension_numbers<[1], [0], [0], [1], [0, 0, 1, 1], [], []>} : vector<8x16xf32>, vector<16x64xf32>, vector<8x64xf32> -> vector<8x64xf32>
    %69 = arith.addf %67, %68 : vector<8x64xf32>
    %70 = vector.extract_strided_slice %69 {offsets = [0, 0], sizes = [8, 48], strides = [1, 1]} : vector<8x64xf32> to vector<8x48xf32>
    %71 = arith.negf %70 : vector<8x48xf32>
    %72 = math.exp %71 : vector<8x48xf32>
    %cst_14 = arith.constant 1.000000e+00 : f32
    %73 = vector.broadcast %cst_14 : f32 to vector<8x48xf32>
    %74 = arith.addf %73, %72 : vector<8x48xf32>
    %75 = arith.divf %73, %74 : vector<8x48xf32>
    %76 = vector.extract_strided_slice %69 {offsets = [0, 48], sizes = [8, 16], strides = [1, 1]} : vector<8x64xf32> to vector<8x16xf32>
    %77 = math.tanh %76 : vector<8x16xf32>
    %78 = vector.extract_strided_slice %75 {offsets = [0, 16], sizes = [8, 16], strides = [1, 1]} : vector<8x48xf32> to vector<8x16xf32>
    %79 = arith.mulf %78, %63 : vector<8x16xf32>
    %80 = vector.extract_strided_slice %75 {offsets = [0, 0], sizes = [8, 16], strides = [1, 1]} : vector<8x48xf32> to vector<8x16xf32>
    %81 = arith.mulf %80, %77 : vector<8x16xf32>
    %82 = arith.addf %79, %81 : vector<8x16xf32>
    %83 = vector.extract_strided_slice %75 {offsets = [0, 32], sizes = [8, 16], strides = [1, 1]} : vector<8x48xf32> to vector<8x16xf32>
    %84 = math.tanh %82 : vector<8x16xf32>
    %85 = arith.mulf %83, %84 : vector<8x16xf32>
    %86 = vector.extract_strided_slice %5 {offsets = [32, 0], sizes = [8, 64], strides = [1, 1]} : vector<64x64xf32> to vector<8x64xf32>
    %cst_15 = arith.constant dense<0.000000e+00> : vector<8x64xf32>
    %87 = tpu.matmul %85, %7, %cst_15 {dimension_numbers = #tpu.dot_dimension_numbers<[1], [0], [0], [1], [0, 0, 1, 1], [], []>} : vector<8x16xf32>, vector<16x64xf32>, vector<8x64xf32> -> vector<8x64xf32>
    %88 = arith.addf %86, %87 : vector<8x64xf32>
    %89 = vector.extract_strided_slice %88 {offsets = [0, 0], sizes = [8, 48], strides = [1, 1]} : vector<8x64xf32> to vector<8x48xf32>
    %90 = arith.negf %89 : vector<8x48xf32>
    %91 = math.exp %90 : vector<8x48xf32>
    %cst_16 = arith.constant 1.000000e+00 : f32
    %92 = vector.broadcast %cst_16 : f32 to vector<8x48xf32>
    %93 = arith.addf %92, %91 : vector<8x48xf32>
    %94 = arith.divf %92, %93 : vector<8x48xf32>
    %95 = vector.extract_strided_slice %88 {offsets = [0, 48], sizes = [8, 16], strides = [1, 1]} : vector<8x64xf32> to vector<8x16xf32>
    %96 = math.tanh %95 : vector<8x16xf32>
    %97 = vector.extract_strided_slice %94 {offsets = [0, 16], sizes = [8, 16], strides = [1, 1]} : vector<8x48xf32> to vector<8x16xf32>
    %98 = arith.mulf %97, %82 : vector<8x16xf32>
    %99 = vector.extract_strided_slice %94 {offsets = [0, 0], sizes = [8, 16], strides = [1, 1]} : vector<8x48xf32> to vector<8x16xf32>
    %100 = arith.mulf %99, %96 : vector<8x16xf32>
    %101 = arith.addf %98, %100 : vector<8x16xf32>
    %102 = vector.extract_strided_slice %94 {offsets = [0, 32], sizes = [8, 16], strides = [1, 1]} : vector<8x48xf32> to vector<8x16xf32>
    %103 = math.tanh %101 : vector<8x16xf32>
    %104 = arith.mulf %102, %103 : vector<8x16xf32>
    %105 = vector.extract_strided_slice %5 {offsets = [40, 0], sizes = [8, 64], strides = [1, 1]} : vector<64x64xf32> to vector<8x64xf32>
    %cst_17 = arith.constant dense<0.000000e+00> : vector<8x64xf32>
    %106 = tpu.matmul %104, %7, %cst_17 {dimension_numbers = #tpu.dot_dimension_numbers<[1], [0], [0], [1], [0, 0, 1, 1], [], []>} : vector<8x16xf32>, vector<16x64xf32>, vector<8x64xf32> -> vector<8x64xf32>
    %107 = arith.addf %105, %106 : vector<8x64xf32>
    %108 = vector.extract_strided_slice %107 {offsets = [0, 0], sizes = [8, 48], strides = [1, 1]} : vector<8x64xf32> to vector<8x48xf32>
    %109 = arith.negf %108 : vector<8x48xf32>
    %110 = math.exp %109 : vector<8x48xf32>
    %cst_18 = arith.constant 1.000000e+00 : f32
    %111 = vector.broadcast %cst_18 : f32 to vector<8x48xf32>
    %112 = arith.addf %111, %110 : vector<8x48xf32>
    %113 = arith.divf %111, %112 : vector<8x48xf32>
    %114 = vector.extract_strided_slice %107 {offsets = [0, 48], sizes = [8, 16], strides = [1, 1]} : vector<8x64xf32> to vector<8x16xf32>
    %115 = math.tanh %114 : vector<8x16xf32>
    %116 = vector.extract_strided_slice %113 {offsets = [0, 16], sizes = [8, 16], strides = [1, 1]} : vector<8x48xf32> to vector<8x16xf32>
    %117 = arith.mulf %116, %101 : vector<8x16xf32>
    %118 = vector.extract_strided_slice %113 {offsets = [0, 0], sizes = [8, 16], strides = [1, 1]} : vector<8x48xf32> to vector<8x16xf32>
    %119 = arith.mulf %118, %115 : vector<8x16xf32>
    %120 = arith.addf %117, %119 : vector<8x16xf32>
    %121 = vector.extract_strided_slice %113 {offsets = [0, 32], sizes = [8, 16], strides = [1, 1]} : vector<8x48xf32> to vector<8x16xf32>
    %122 = math.tanh %120 : vector<8x16xf32>
    %123 = arith.mulf %121, %122 : vector<8x16xf32>
    %124 = vector.extract_strided_slice %5 {offsets = [48, 0], sizes = [8, 64], strides = [1, 1]} : vector<64x64xf32> to vector<8x64xf32>
    %cst_19 = arith.constant dense<0.000000e+00> : vector<8x64xf32>
    %125 = tpu.matmul %123, %7, %cst_19 {dimension_numbers = #tpu.dot_dimension_numbers<[1], [0], [0], [1], [0, 0, 1, 1], [], []>} : vector<8x16xf32>, vector<16x64xf32>, vector<8x64xf32> -> vector<8x64xf32>
    %126 = arith.addf %124, %125 : vector<8x64xf32>
    %127 = vector.extract_strided_slice %126 {offsets = [0, 0], sizes = [8, 48], strides = [1, 1]} : vector<8x64xf32> to vector<8x48xf32>
    %128 = arith.negf %127 : vector<8x48xf32>
    %129 = math.exp %128 : vector<8x48xf32>
    %cst_20 = arith.constant 1.000000e+00 : f32
    %130 = vector.broadcast %cst_20 : f32 to vector<8x48xf32>
    %131 = arith.addf %130, %129 : vector<8x48xf32>
    %132 = arith.divf %130, %131 : vector<8x48xf32>
    %133 = vector.extract_strided_slice %126 {offsets = [0, 48], sizes = [8, 16], strides = [1, 1]} : vector<8x64xf32> to vector<8x16xf32>
    %134 = math.tanh %133 : vector<8x16xf32>
    %135 = vector.extract_strided_slice %132 {offsets = [0, 16], sizes = [8, 16], strides = [1, 1]} : vector<8x48xf32> to vector<8x16xf32>
    %136 = arith.mulf %135, %120 : vector<8x16xf32>
    %137 = vector.extract_strided_slice %132 {offsets = [0, 0], sizes = [8, 16], strides = [1, 1]} : vector<8x48xf32> to vector<8x16xf32>
    %138 = arith.mulf %137, %134 : vector<8x16xf32>
    %139 = arith.addf %136, %138 : vector<8x16xf32>
    %140 = vector.extract_strided_slice %132 {offsets = [0, 32], sizes = [8, 16], strides = [1, 1]} : vector<8x48xf32> to vector<8x16xf32>
    %141 = math.tanh %139 : vector<8x16xf32>
    %142 = arith.mulf %140, %141 : vector<8x16xf32>
    %143 = vector.extract_strided_slice %5 {offsets = [56, 0], sizes = [8, 64], strides = [1, 1]} : vector<64x64xf32> to vector<8x64xf32>
    %cst_21 = arith.constant dense<0.000000e+00> : vector<8x64xf32>
    %144 = tpu.matmul %142, %7, %cst_21 {dimension_numbers = #tpu.dot_dimension_numbers<[1], [0], [0], [1], [0, 0, 1, 1], [], []>} : vector<8x16xf32>, vector<16x64xf32>, vector<8x64xf32> -> vector<8x64xf32>
    %145 = arith.addf %143, %144 : vector<8x64xf32>
    %146 = vector.extract_strided_slice %145 {offsets = [0, 0], sizes = [8, 48], strides = [1, 1]} : vector<8x64xf32> to vector<8x48xf32>
    %147 = arith.negf %146 : vector<8x48xf32>
    %148 = math.exp %147 : vector<8x48xf32>
    %cst_22 = arith.constant 1.000000e+00 : f32
    %149 = vector.broadcast %cst_22 : f32 to vector<8x48xf32>
    %150 = arith.addf %149, %148 : vector<8x48xf32>
    %151 = arith.divf %149, %150 : vector<8x48xf32>
    %152 = vector.extract_strided_slice %145 {offsets = [0, 48], sizes = [8, 16], strides = [1, 1]} : vector<8x64xf32> to vector<8x16xf32>
    %153 = math.tanh %152 : vector<8x16xf32>
    %154 = vector.extract_strided_slice %151 {offsets = [0, 16], sizes = [8, 16], strides = [1, 1]} : vector<8x48xf32> to vector<8x16xf32>
    %155 = arith.mulf %154, %139 : vector<8x16xf32>
    %156 = vector.extract_strided_slice %151 {offsets = [0, 0], sizes = [8, 16], strides = [1, 1]} : vector<8x48xf32> to vector<8x16xf32>
    %157 = arith.mulf %156, %153 : vector<8x16xf32>
    %158 = arith.addf %155, %157 : vector<8x16xf32>
    %159 = vector.extract_strided_slice %151 {offsets = [0, 32], sizes = [8, 16], strides = [1, 1]} : vector<8x48xf32> to vector<8x16xf32>
    %160 = math.tanh %158 : vector<8x16xf32>
    %161 = arith.mulf %159, %160 : vector<8x16xf32>
    %c32 = arith.constant 32 : index
    %c0_23 = arith.constant 0 : index
    %162 = vector.load %arg2[%c32, %c0_23] : memref<352x128xf32, #tpu.memory_space<vmem>>, vector<8x64xf32>
    %cst_24 = arith.constant dense<0.000000e+00> : vector<8x64xf32>
    %163 = tpu.matmul %6, %162, %cst_24 {dimension_numbers = #tpu.dot_dimension_numbers<[1], [0], [0], [1], [0, 0, 1, 1], [], []>} : vector<8x8xf32>, vector<8x64xf32>, vector<8x64xf32> -> vector<8x64xf32>
    %c40 = arith.constant 40 : index
    %c0_25 = arith.constant 0 : index
    %164 = vector.load %arg2[%c40, %c0_25] : memref<352x128xf32, #tpu.memory_space<vmem>>, vector<1x64xf32>
    %165 = vector.broadcast %164 : vector<1x64xf32> to vector<8x64xf32>
    %166 = arith.addf %163, %165 : vector<8x64xf32>
    %167 = vector.extract_strided_slice %166 {offsets = [0, 0], sizes = [8, 48], strides = [1, 1]} : vector<8x64xf32> to vector<8x48xf32>
    %168 = arith.negf %167 : vector<8x48xf32>
    %169 = math.exp %168 : vector<8x48xf32>
    %cst_26 = arith.constant 1.000000e+00 : f32
    %170 = vector.broadcast %cst_26 : f32 to vector<8x48xf32>
    %171 = arith.addf %170, %169 : vector<8x48xf32>
    %172 = arith.divf %170, %171 : vector<8x48xf32>
    %173 = vector.extract_strided_slice %166 {offsets = [0, 48], sizes = [8, 16], strides = [1, 1]} : vector<8x64xf32> to vector<8x16xf32>
    %174 = math.tanh %173 : vector<8x16xf32>
    %175 = vector.extract_strided_slice %172 {offsets = [0, 32], sizes = [8, 16], strides = [1, 1]} : vector<8x48xf32> to vector<8x16xf32>
    %176 = vector.extract_strided_slice %172 {offsets = [0, 0], sizes = [8, 16], strides = [1, 1]} : vector<8x48xf32> to vector<8x16xf32>
    %177 = arith.mulf %176, %174 : vector<8x16xf32>
    %178 = math.tanh %177 : vector<8x16xf32>
    %179 = arith.mulf %175, %178 : vector<8x16xf32>
    %180 = tpu.concatenate %161, %179 in 1 : vector<8x16xf32>, vector<8x16xf32> -> vector<8x32xf32>
    %c48 = arith.constant 48 : index
    %c0_27 = arith.constant 0 : index
    %181 = vector.load %arg2[%c48, %c0_27] : memref<352x128xf32, #tpu.memory_space<vmem>>, vector<32x64xf32>
    %c80 = arith.constant 80 : index
    %c0_28 = arith.constant 0 : index
    %182 = vector.load %arg2[%c80, %c0_28] : memref<352x128xf32, #tpu.memory_space<vmem>>, vector<32x64xf32>
    %c112 = arith.constant 112 : index
    %c0_29 = arith.constant 0 : index
    %183 = vector.load %arg2[%c112, %c0_29] : memref<352x128xf32, #tpu.memory_space<vmem>>, vector<1x64xf32>
    %cst_30 = arith.constant dense<0.000000e+00> : vector<8x64xf32>
    %184 = tpu.matmul %180, %181, %cst_30 {dimension_numbers = #tpu.dot_dimension_numbers<[1], [0], [0], [1], [0, 0, 1, 1], [], []>} : vector<8x32xf32>, vector<32x64xf32>, vector<8x64xf32> -> vector<8x64xf32>
    %cst_31 = arith.constant dense<0.000000e+00> : vector<8x64xf32>
    %185 = tpu.matmul %180, %182, %cst_31 {dimension_numbers = #tpu.dot_dimension_numbers<[1], [0], [0], [1], [0, 0, 1, 1], [], []>} : vector<8x32xf32>, vector<32x64xf32>, vector<8x64xf32> -> vector<8x64xf32>
    %186 = arith.addf %184, %185 : vector<8x64xf32>
    %187 = vector.broadcast %183 : vector<1x64xf32> to vector<8x64xf32>
    %188 = arith.addf %186, %187 : vector<8x64xf32>
    %c120 = arith.constant 120 : index
    %c0_32 = arith.constant 0 : index
    %189 = vector.load %arg2[%c120, %c0_32] : memref<352x128xf32, #tpu.memory_space<vmem>>, vector<16x64xf32>
    %cst_33 = arith.constant 0.000000e+00 : f32
    %190 = vector.broadcast %cst_33 : f32 to vector<8x16xf32>
    %cst_34 = arith.constant 0.000000e+00 : f32
    %191 = vector.broadcast %cst_34 : f32 to vector<8x16xf32>
    %cst_35 = arith.constant dense<0.000000e+00> : vector<8x64xf32>
    %192 = tpu.matmul %190, %189, %cst_35 {dimension_numbers = #tpu.dot_dimension_numbers<[1], [0], [0], [1], [0, 0, 1, 1], [], []>} : vector<8x16xf32>, vector<16x64xf32>, vector<8x64xf32> -> vector<8x64xf32>
    %193 = arith.addf %188, %192 : vector<8x64xf32>
    %194 = vector.extract_strided_slice %193 {offsets = [0, 0], sizes = [8, 48], strides = [1, 1]} : vector<8x64xf32> to vector<8x48xf32>
    %195 = arith.negf %194 : vector<8x48xf32>
    %196 = math.exp %195 : vector<8x48xf32>
    %cst_36 = arith.constant 1.000000e+00 : f32
    %197 = vector.broadcast %cst_36 : f32 to vector<8x48xf32>
    %198 = arith.addf %197, %196 : vector<8x48xf32>
    %199 = arith.divf %197, %198 : vector<8x48xf32>
    %200 = vector.extract_strided_slice %193 {offsets = [0, 48], sizes = [8, 16], strides = [1, 1]} : vector<8x64xf32> to vector<8x16xf32>
    %201 = math.tanh %200 : vector<8x16xf32>
    %202 = vector.extract_strided_slice %199 {offsets = [0, 16], sizes = [8, 16], strides = [1, 1]} : vector<8x48xf32> to vector<8x16xf32>
    %203 = arith.mulf %202, %191 : vector<8x16xf32>
    %204 = vector.extract_strided_slice %199 {offsets = [0, 0], sizes = [8, 16], strides = [1, 1]} : vector<8x48xf32> to vector<8x16xf32>
    %205 = arith.mulf %204, %201 : vector<8x16xf32>
    %206 = arith.addf %203, %205 : vector<8x16xf32>
    %207 = vector.extract_strided_slice %199 {offsets = [0, 32], sizes = [8, 16], strides = [1, 1]} : vector<8x48xf32> to vector<8x16xf32>
    %208 = math.tanh %206 : vector<8x16xf32>
    %209 = arith.mulf %207, %208 : vector<8x16xf32>
    %cst_37 = arith.constant dense<0.000000e+00> : vector<8x64xf32>
    %210 = tpu.matmul %209, %189, %cst_37 {dimension_numbers = #tpu.dot_dimension_numbers<[1], [0], [0], [1], [0, 0, 1, 1], [], []>} : vector<8x16xf32>, vector<16x64xf32>, vector<8x64xf32> -> vector<8x64xf32>
    %211 = arith.addf %188, %210 : vector<8x64xf32>
    %212 = vector.extract_strided_slice %211 {offsets = [0, 0], sizes = [8, 48], strides = [1, 1]} : vector<8x64xf32> to vector<8x48xf32>
    %213 = arith.negf %212 : vector<8x48xf32>
    %214 = math.exp %213 : vector<8x48xf32>
    %cst_38 = arith.constant 1.000000e+00 : f32
    %215 = vector.broadcast %cst_38 : f32 to vector<8x48xf32>
    %216 = arith.addf %215, %214 : vector<8x48xf32>
    %217 = arith.divf %215, %216 : vector<8x48xf32>
    %218 = vector.extract_strided_slice %211 {offsets = [0, 48], sizes = [8, 16], strides = [1, 1]} : vector<8x64xf32> to vector<8x16xf32>
    %219 = math.tanh %218 : vector<8x16xf32>
    %220 = vector.extract_strided_slice %217 {offsets = [0, 16], sizes = [8, 16], strides = [1, 1]} : vector<8x48xf32> to vector<8x16xf32>
    %221 = arith.mulf %220, %206 : vector<8x16xf32>
    %222 = vector.extract_strided_slice %217 {offsets = [0, 0], sizes = [8, 16], strides = [1, 1]} : vector<8x48xf32> to vector<8x16xf32>
    %223 = arith.mulf %222, %219 : vector<8x16xf32>
    %224 = arith.addf %221, %223 : vector<8x16xf32>
    %225 = vector.extract_strided_slice %217 {offsets = [0, 32], sizes = [8, 16], strides = [1, 1]} : vector<8x48xf32> to vector<8x16xf32>
    %226 = math.tanh %224 : vector<8x16xf32>
    %227 = arith.mulf %225, %226 : vector<8x16xf32>
    %cst_39 = arith.constant dense<0.000000e+00> : vector<8x64xf32>
    %228 = tpu.matmul %227, %189, %cst_39 {dimension_numbers = #tpu.dot_dimension_numbers<[1], [0], [0], [1], [0, 0, 1, 1], [], []>} : vector<8x16xf32>, vector<16x64xf32>, vector<8x64xf32> -> vector<8x64xf32>
    %229 = arith.addf %188, %228 : vector<8x64xf32>
    %230 = vector.extract_strided_slice %229 {offsets = [0, 0], sizes = [8, 48], strides = [1, 1]} : vector<8x64xf32> to vector<8x48xf32>
    %231 = arith.negf %230 : vector<8x48xf32>
    %232 = math.exp %231 : vector<8x48xf32>
    %cst_40 = arith.constant 1.000000e+00 : f32
    %233 = vector.broadcast %cst_40 : f32 to vector<8x48xf32>
    %234 = arith.addf %233, %232 : vector<8x48xf32>
    %235 = arith.divf %233, %234 : vector<8x48xf32>
    %236 = vector.extract_strided_slice %229 {offsets = [0, 48], sizes = [8, 16], strides = [1, 1]} : vector<8x64xf32> to vector<8x16xf32>
    %237 = math.tanh %236 : vector<8x16xf32>
    %238 = vector.extract_strided_slice %235 {offsets = [0, 16], sizes = [8, 16], strides = [1, 1]} : vector<8x48xf32> to vector<8x16xf32>
    %239 = arith.mulf %238, %224 : vector<8x16xf32>
    %240 = vector.extract_strided_slice %235 {offsets = [0, 0], sizes = [8, 16], strides = [1, 1]} : vector<8x48xf32> to vector<8x16xf32>
    %241 = arith.mulf %240, %237 : vector<8x16xf32>
    %242 = arith.addf %239, %241 : vector<8x16xf32>
    %243 = vector.extract_strided_slice %235 {offsets = [0, 32], sizes = [8, 16], strides = [1, 1]} : vector<8x48xf32> to vector<8x16xf32>
    %244 = math.tanh %242 : vector<8x16xf32>
    %245 = arith.mulf %243, %244 : vector<8x16xf32>
    %cst_41 = arith.constant dense<0.000000e+00> : vector<8x64xf32>
    %246 = tpu.matmul %245, %189, %cst_41 {dimension_numbers = #tpu.dot_dimension_numbers<[1], [0], [0], [1], [0, 0, 1, 1], [], []>} : vector<8x16xf32>, vector<16x64xf32>, vector<8x64xf32> -> vector<8x64xf32>
    %247 = arith.addf %188, %246 : vector<8x64xf32>
    %248 = vector.extract_strided_slice %247 {offsets = [0, 0], sizes = [8, 48], strides = [1, 1]} : vector<8x64xf32> to vector<8x48xf32>
    %249 = arith.negf %248 : vector<8x48xf32>
    %250 = math.exp %249 : vector<8x48xf32>
    %cst_42 = arith.constant 1.000000e+00 : f32
    %251 = vector.broadcast %cst_42 : f32 to vector<8x48xf32>
    %252 = arith.addf %251, %250 : vector<8x48xf32>
    %253 = arith.divf %251, %252 : vector<8x48xf32>
    %254 = vector.extract_strided_slice %247 {offsets = [0, 48], sizes = [8, 16], strides = [1, 1]} : vector<8x64xf32> to vector<8x16xf32>
    %255 = math.tanh %254 : vector<8x16xf32>
    %256 = vector.extract_strided_slice %253 {offsets = [0, 16], sizes = [8, 16], strides = [1, 1]} : vector<8x48xf32> to vector<8x16xf32>
    %257 = arith.mulf %256, %242 : vector<8x16xf32>
    %258 = vector.extract_strided_slice %253 {offsets = [0, 0], sizes = [8, 16], strides = [1, 1]} : vector<8x48xf32> to vector<8x16xf32>
    %259 = arith.mulf %258, %255 : vector<8x16xf32>
    %260 = arith.addf %257, %259 : vector<8x16xf32>
    %261 = vector.extract_strided_slice %253 {offsets = [0, 32], sizes = [8, 16], strides = [1, 1]} : vector<8x48xf32> to vector<8x16xf32>
    %262 = math.tanh %260 : vector<8x16xf32>
    %263 = arith.mulf %261, %262 : vector<8x16xf32>
    %cst_43 = arith.constant dense<0.000000e+00> : vector<8x64xf32>
    %264 = tpu.matmul %263, %189, %cst_43 {dimension_numbers = #tpu.dot_dimension_numbers<[1], [0], [0], [1], [0, 0, 1, 1], [], []>} : vector<8x16xf32>, vector<16x64xf32>, vector<8x64xf32> -> vector<8x64xf32>
    %265 = arith.addf %188, %264 : vector<8x64xf32>
    %266 = vector.extract_strided_slice %265 {offsets = [0, 0], sizes = [8, 48], strides = [1, 1]} : vector<8x64xf32> to vector<8x48xf32>
    %267 = arith.negf %266 : vector<8x48xf32>
    %268 = math.exp %267 : vector<8x48xf32>
    %cst_44 = arith.constant 1.000000e+00 : f32
    %269 = vector.broadcast %cst_44 : f32 to vector<8x48xf32>
    %270 = arith.addf %269, %268 : vector<8x48xf32>
    %271 = arith.divf %269, %270 : vector<8x48xf32>
    %272 = vector.extract_strided_slice %265 {offsets = [0, 48], sizes = [8, 16], strides = [1, 1]} : vector<8x64xf32> to vector<8x16xf32>
    %273 = math.tanh %272 : vector<8x16xf32>
    %274 = vector.extract_strided_slice %271 {offsets = [0, 16], sizes = [8, 16], strides = [1, 1]} : vector<8x48xf32> to vector<8x16xf32>
    %275 = arith.mulf %274, %260 : vector<8x16xf32>
    %276 = vector.extract_strided_slice %271 {offsets = [0, 0], sizes = [8, 16], strides = [1, 1]} : vector<8x48xf32> to vector<8x16xf32>
    %277 = arith.mulf %276, %273 : vector<8x16xf32>
    %278 = arith.addf %275, %277 : vector<8x16xf32>
    %279 = vector.extract_strided_slice %271 {offsets = [0, 32], sizes = [8, 16], strides = [1, 1]} : vector<8x48xf32> to vector<8x16xf32>
    %280 = math.tanh %278 : vector<8x16xf32>
    %281 = arith.mulf %279, %280 : vector<8x16xf32>
    %cst_45 = arith.constant dense<0.000000e+00> : vector<8x64xf32>
    %282 = tpu.matmul %281, %189, %cst_45 {dimension_numbers = #tpu.dot_dimension_numbers<[1], [0], [0], [1], [0, 0, 1, 1], [], []>} : vector<8x16xf32>, vector<16x64xf32>, vector<8x64xf32> -> vector<8x64xf32>
    %283 = arith.addf %188, %282 : vector<8x64xf32>
    %284 = vector.extract_strided_slice %283 {offsets = [0, 0], sizes = [8, 48], strides = [1, 1]} : vector<8x64xf32> to vector<8x48xf32>
    %285 = arith.negf %284 : vector<8x48xf32>
    %286 = math.exp %285 : vector<8x48xf32>
    %cst_46 = arith.constant 1.000000e+00 : f32
    %287 = vector.broadcast %cst_46 : f32 to vector<8x48xf32>
    %288 = arith.addf %287, %286 : vector<8x48xf32>
    %289 = arith.divf %287, %288 : vector<8x48xf32>
    %290 = vector.extract_strided_slice %283 {offsets = [0, 48], sizes = [8, 16], strides = [1, 1]} : vector<8x64xf32> to vector<8x16xf32>
    %291 = math.tanh %290 : vector<8x16xf32>
    %292 = vector.extract_strided_slice %289 {offsets = [0, 16], sizes = [8, 16], strides = [1, 1]} : vector<8x48xf32> to vector<8x16xf32>
    %293 = arith.mulf %292, %278 : vector<8x16xf32>
    %294 = vector.extract_strided_slice %289 {offsets = [0, 0], sizes = [8, 16], strides = [1, 1]} : vector<8x48xf32> to vector<8x16xf32>
    %295 = arith.mulf %294, %291 : vector<8x16xf32>
    %296 = arith.addf %293, %295 : vector<8x16xf32>
    %297 = vector.extract_strided_slice %289 {offsets = [0, 32], sizes = [8, 16], strides = [1, 1]} : vector<8x48xf32> to vector<8x16xf32>
    %298 = math.tanh %296 : vector<8x16xf32>
    %299 = arith.mulf %297, %298 : vector<8x16xf32>
    %cst_47 = arith.constant dense<0.000000e+00> : vector<8x64xf32>
    %300 = tpu.matmul %299, %189, %cst_47 {dimension_numbers = #tpu.dot_dimension_numbers<[1], [0], [0], [1], [0, 0, 1, 1], [], []>} : vector<8x16xf32>, vector<16x64xf32>, vector<8x64xf32> -> vector<8x64xf32>
    %301 = arith.addf %188, %300 : vector<8x64xf32>
    %302 = vector.extract_strided_slice %301 {offsets = [0, 0], sizes = [8, 48], strides = [1, 1]} : vector<8x64xf32> to vector<8x48xf32>
    %303 = arith.negf %302 : vector<8x48xf32>
    %304 = math.exp %303 : vector<8x48xf32>
    %cst_48 = arith.constant 1.000000e+00 : f32
    %305 = vector.broadcast %cst_48 : f32 to vector<8x48xf32>
    %306 = arith.addf %305, %304 : vector<8x48xf32>
    %307 = arith.divf %305, %306 : vector<8x48xf32>
    %308 = vector.extract_strided_slice %301 {offsets = [0, 48], sizes = [8, 16], strides = [1, 1]} : vector<8x64xf32> to vector<8x16xf32>
    %309 = math.tanh %308 : vector<8x16xf32>
    %310 = vector.extract_strided_slice %307 {offsets = [0, 16], sizes = [8, 16], strides = [1, 1]} : vector<8x48xf32> to vector<8x16xf32>
    %311 = arith.mulf %310, %296 : vector<8x16xf32>
    %312 = vector.extract_strided_slice %307 {offsets = [0, 0], sizes = [8, 16], strides = [1, 1]} : vector<8x48xf32> to vector<8x16xf32>
    %313 = arith.mulf %312, %309 : vector<8x16xf32>
    %314 = arith.addf %311, %313 : vector<8x16xf32>
    %315 = vector.extract_strided_slice %307 {offsets = [0, 32], sizes = [8, 16], strides = [1, 1]} : vector<8x48xf32> to vector<8x16xf32>
    %316 = math.tanh %314 : vector<8x16xf32>
    %317 = arith.mulf %315, %316 : vector<8x16xf32>
    %cst_49 = arith.constant dense<0.000000e+00> : vector<8x64xf32>
    %318 = tpu.matmul %317, %189, %cst_49 {dimension_numbers = #tpu.dot_dimension_numbers<[1], [0], [0], [1], [0, 0, 1, 1], [], []>} : vector<8x16xf32>, vector<16x64xf32>, vector<8x64xf32> -> vector<8x64xf32>
    %319 = arith.addf %188, %318 : vector<8x64xf32>
    %320 = vector.extract_strided_slice %319 {offsets = [0, 0], sizes = [8, 48], strides = [1, 1]} : vector<8x64xf32> to vector<8x48xf32>
    %321 = arith.negf %320 : vector<8x48xf32>
    %322 = math.exp %321 : vector<8x48xf32>
    %cst_50 = arith.constant 1.000000e+00 : f32
    %323 = vector.broadcast %cst_50 : f32 to vector<8x48xf32>
    %324 = arith.addf %323, %322 : vector<8x48xf32>
    %325 = arith.divf %323, %324 : vector<8x48xf32>
    %326 = vector.extract_strided_slice %319 {offsets = [0, 48], sizes = [8, 16], strides = [1, 1]} : vector<8x64xf32> to vector<8x16xf32>
    %327 = math.tanh %326 : vector<8x16xf32>
    %328 = vector.extract_strided_slice %325 {offsets = [0, 16], sizes = [8, 16], strides = [1, 1]} : vector<8x48xf32> to vector<8x16xf32>
    %329 = arith.mulf %328, %314 : vector<8x16xf32>
    %330 = vector.extract_strided_slice %325 {offsets = [0, 0], sizes = [8, 16], strides = [1, 1]} : vector<8x48xf32> to vector<8x16xf32>
    %331 = arith.mulf %330, %327 : vector<8x16xf32>
    %332 = arith.addf %329, %331 : vector<8x16xf32>
    %333 = vector.extract_strided_slice %325 {offsets = [0, 32], sizes = [8, 16], strides = [1, 1]} : vector<8x48xf32> to vector<8x16xf32>
    %334 = math.tanh %332 : vector<8x16xf32>
    %335 = arith.mulf %333, %334 : vector<8x16xf32>
    %336 = tpu.concatenate %209, %227, %245, %263, %281, %299, %317, %335 in 0 : vector<8x16xf32>, vector<8x16xf32>, vector<8x16xf32>, vector<8x16xf32>, vector<8x16xf32>, vector<8x16xf32>, vector<8x16xf32>, vector<8x16xf32> -> vector<64x16xf32>
    %c136 = arith.constant 136 : index
    %c0_51 = arith.constant 0 : index
    %337 = vector.load %arg2[%c136, %c0_51] : memref<352x128xf32, #tpu.memory_space<vmem>>, vector<16x32xf32>
    %cst_52 = arith.constant dense<0.000000e+00> : vector<64x32xf32>
    %338 = tpu.matmul %336, %337, %cst_52 {dimension_numbers = #tpu.dot_dimension_numbers<[1], [0], [0], [1], [0, 0, 1, 1], [], []>} : vector<64x16xf32>, vector<16x32xf32>, vector<64x32xf32> -> vector<64x32xf32>
    %c152 = arith.constant 152 : index
    %c0_53 = arith.constant 0 : index
    %339 = vector.load %arg2[%c152, %c0_53] : memref<352x128xf32, #tpu.memory_space<vmem>>, vector<16x32xf32>
    %cst_54 = arith.constant dense<0.000000e+00> : vector<64x32xf32>
    %340 = tpu.matmul %336, %339, %cst_54 {dimension_numbers = #tpu.dot_dimension_numbers<[1], [0], [0], [1], [0, 0, 1, 1], [], []>} : vector<64x16xf32>, vector<16x32xf32>, vector<64x32xf32> -> vector<64x32xf32>
    %c176 = arith.constant 176 : index
    %c0_55 = arith.constant 0 : index
    %341 = vector.load %arg2[%c176, %c0_55] : memref<352x128xf32, #tpu.memory_space<vmem>>, vector<1x32xf32>
    %c168 = arith.constant 168 : index
    %c0_56 = arith.constant 0 : index
    %342 = vector.load %arg2[%c168, %c0_56] : memref<352x128xf32, #tpu.memory_space<vmem>>, vector<8x32xf32>
    %cst_57 = arith.constant 0.000000e+00 : f32
    %343 = vector.broadcast %cst_57 : f32 to vector<8x8xf32>
    %cst_58 = arith.constant 0.000000e+00 : f32
    %344 = vector.broadcast %cst_58 : f32 to vector<8x8xf32>
    %345 = vector.extract_strided_slice %338 {offsets = [0, 0], sizes = [8, 32], strides = [1, 1]} : vector<64x32xf32> to vector<8x32xf32>
    %346 = vector.extract_strided_slice %340 {offsets = [56, 0], sizes = [8, 32], strides = [1, 1]} : vector<64x32xf32> to vector<8x32xf32>
    %347 = arith.addf %345, %346 : vector<8x32xf32>
    %348 = vector.broadcast %341 : vector<1x32xf32> to vector<8x32xf32>
    %349 = arith.addf %347, %348 : vector<8x32xf32>
    %cst_59 = arith.constant dense<0.000000e+00> : vector<8x32xf32>
    %350 = tpu.matmul %343, %342, %cst_59 {dimension_numbers = #tpu.dot_dimension_numbers<[1], [0], [0], [1], [0, 0, 1, 1], [], []>} : vector<8x8xf32>, vector<8x32xf32>, vector<8x32xf32> -> vector<8x32xf32>
    %351 = arith.addf %349, %350 : vector<8x32xf32>
    %352 = vector.extract_strided_slice %351 {offsets = [0, 0], sizes = [8, 24], strides = [1, 1]} : vector<8x32xf32> to vector<8x24xf32>
    %353 = arith.negf %352 : vector<8x24xf32>
    %354 = math.exp %353 : vector<8x24xf32>
    %cst_60 = arith.constant 1.000000e+00 : f32
    %355 = vector.broadcast %cst_60 : f32 to vector<8x24xf32>
    %356 = arith.addf %355, %354 : vector<8x24xf32>
    %357 = arith.divf %355, %356 : vector<8x24xf32>
    %358 = vector.extract_strided_slice %351 {offsets = [0, 24], sizes = [8, 8], strides = [1, 1]} : vector<8x32xf32> to vector<8x8xf32>
    %359 = math.tanh %358 : vector<8x8xf32>
    %360 = vector.extract_strided_slice %357 {offsets = [0, 8], sizes = [8, 8], strides = [1, 1]} : vector<8x24xf32> to vector<8x8xf32>
    %361 = arith.mulf %360, %344 : vector<8x8xf32>
    %362 = vector.extract_strided_slice %357 {offsets = [0, 0], sizes = [8, 8], strides = [1, 1]} : vector<8x24xf32> to vector<8x8xf32>
    %363 = arith.mulf %362, %359 : vector<8x8xf32>
    %364 = arith.addf %361, %363 : vector<8x8xf32>
    %365 = vector.extract_strided_slice %357 {offsets = [0, 16], sizes = [8, 8], strides = [1, 1]} : vector<8x24xf32> to vector<8x8xf32>
    %366 = math.tanh %364 : vector<8x8xf32>
    %367 = arith.mulf %365, %366 : vector<8x8xf32>
    %368 = vector.extract_strided_slice %338 {offsets = [8, 0], sizes = [8, 32], strides = [1, 1]} : vector<64x32xf32> to vector<8x32xf32>
    %369 = vector.extract_strided_slice %340 {offsets = [48, 0], sizes = [8, 32], strides = [1, 1]} : vector<64x32xf32> to vector<8x32xf32>
    %370 = arith.addf %368, %369 : vector<8x32xf32>
    %371 = vector.broadcast %341 : vector<1x32xf32> to vector<8x32xf32>
    %372 = arith.addf %370, %371 : vector<8x32xf32>
    %cst_61 = arith.constant dense<0.000000e+00> : vector<8x32xf32>
    %373 = tpu.matmul %367, %342, %cst_61 {dimension_numbers = #tpu.dot_dimension_numbers<[1], [0], [0], [1], [0, 0, 1, 1], [], []>} : vector<8x8xf32>, vector<8x32xf32>, vector<8x32xf32> -> vector<8x32xf32>
    %374 = arith.addf %372, %373 : vector<8x32xf32>
    %375 = vector.extract_strided_slice %374 {offsets = [0, 0], sizes = [8, 24], strides = [1, 1]} : vector<8x32xf32> to vector<8x24xf32>
    %376 = arith.negf %375 : vector<8x24xf32>
    %377 = math.exp %376 : vector<8x24xf32>
    %cst_62 = arith.constant 1.000000e+00 : f32
    %378 = vector.broadcast %cst_62 : f32 to vector<8x24xf32>
    %379 = arith.addf %378, %377 : vector<8x24xf32>
    %380 = arith.divf %378, %379 : vector<8x24xf32>
    %381 = vector.extract_strided_slice %374 {offsets = [0, 24], sizes = [8, 8], strides = [1, 1]} : vector<8x32xf32> to vector<8x8xf32>
    %382 = math.tanh %381 : vector<8x8xf32>
    %383 = vector.extract_strided_slice %380 {offsets = [0, 8], sizes = [8, 8], strides = [1, 1]} : vector<8x24xf32> to vector<8x8xf32>
    %384 = arith.mulf %383, %364 : vector<8x8xf32>
    %385 = vector.extract_strided_slice %380 {offsets = [0, 0], sizes = [8, 8], strides = [1, 1]} : vector<8x24xf32> to vector<8x8xf32>
    %386 = arith.mulf %385, %382 : vector<8x8xf32>
    %387 = arith.addf %384, %386 : vector<8x8xf32>
    %388 = vector.extract_strided_slice %380 {offsets = [0, 16], sizes = [8, 8], strides = [1, 1]} : vector<8x24xf32> to vector<8x8xf32>
    %389 = math.tanh %387 : vector<8x8xf32>
    %390 = arith.mulf %388, %389 : vector<8x8xf32>
    %391 = vector.extract_strided_slice %338 {offsets = [16, 0], sizes = [8, 32], strides = [1, 1]} : vector<64x32xf32> to vector<8x32xf32>
    %392 = vector.extract_strided_slice %340 {offsets = [40, 0], sizes = [8, 32], strides = [1, 1]} : vector<64x32xf32> to vector<8x32xf32>
    %393 = arith.addf %391, %392 : vector<8x32xf32>
    %394 = vector.broadcast %341 : vector<1x32xf32> to vector<8x32xf32>
    %395 = arith.addf %393, %394 : vector<8x32xf32>
    %cst_63 = arith.constant dense<0.000000e+00> : vector<8x32xf32>
    %396 = tpu.matmul %390, %342, %cst_63 {dimension_numbers = #tpu.dot_dimension_numbers<[1], [0], [0], [1], [0, 0, 1, 1], [], []>} : vector<8x8xf32>, vector<8x32xf32>, vector<8x32xf32> -> vector<8x32xf32>
    %397 = arith.addf %395, %396 : vector<8x32xf32>
    %398 = vector.extract_strided_slice %397 {offsets = [0, 0], sizes = [8, 24], strides = [1, 1]} : vector<8x32xf32> to vector<8x24xf32>
    %399 = arith.negf %398 : vector<8x24xf32>
    %400 = math.exp %399 : vector<8x24xf32>
    %cst_64 = arith.constant 1.000000e+00 : f32
    %401 = vector.broadcast %cst_64 : f32 to vector<8x24xf32>
    %402 = arith.addf %401, %400 : vector<8x24xf32>
    %403 = arith.divf %401, %402 : vector<8x24xf32>
    %404 = vector.extract_strided_slice %397 {offsets = [0, 24], sizes = [8, 8], strides = [1, 1]} : vector<8x32xf32> to vector<8x8xf32>
    %405 = math.tanh %404 : vector<8x8xf32>
    %406 = vector.extract_strided_slice %403 {offsets = [0, 8], sizes = [8, 8], strides = [1, 1]} : vector<8x24xf32> to vector<8x8xf32>
    %407 = arith.mulf %406, %387 : vector<8x8xf32>
    %408 = vector.extract_strided_slice %403 {offsets = [0, 0], sizes = [8, 8], strides = [1, 1]} : vector<8x24xf32> to vector<8x8xf32>
    %409 = arith.mulf %408, %405 : vector<8x8xf32>
    %410 = arith.addf %407, %409 : vector<8x8xf32>
    %411 = vector.extract_strided_slice %403 {offsets = [0, 16], sizes = [8, 8], strides = [1, 1]} : vector<8x24xf32> to vector<8x8xf32>
    %412 = math.tanh %410 : vector<8x8xf32>
    %413 = arith.mulf %411, %412 : vector<8x8xf32>
    %414 = vector.extract_strided_slice %338 {offsets = [24, 0], sizes = [8, 32], strides = [1, 1]} : vector<64x32xf32> to vector<8x32xf32>
    %415 = vector.extract_strided_slice %340 {offsets = [32, 0], sizes = [8, 32], strides = [1, 1]} : vector<64x32xf32> to vector<8x32xf32>
    %416 = arith.addf %414, %415 : vector<8x32xf32>
    %417 = vector.broadcast %341 : vector<1x32xf32> to vector<8x32xf32>
    %418 = arith.addf %416, %417 : vector<8x32xf32>
    %cst_65 = arith.constant dense<0.000000e+00> : vector<8x32xf32>
    %419 = tpu.matmul %413, %342, %cst_65 {dimension_numbers = #tpu.dot_dimension_numbers<[1], [0], [0], [1], [0, 0, 1, 1], [], []>} : vector<8x8xf32>, vector<8x32xf32>, vector<8x32xf32> -> vector<8x32xf32>
    %420 = arith.addf %418, %419 : vector<8x32xf32>
    %421 = vector.extract_strided_slice %420 {offsets = [0, 0], sizes = [8, 24], strides = [1, 1]} : vector<8x32xf32> to vector<8x24xf32>
    %422 = arith.negf %421 : vector<8x24xf32>
    %423 = math.exp %422 : vector<8x24xf32>
    %cst_66 = arith.constant 1.000000e+00 : f32
    %424 = vector.broadcast %cst_66 : f32 to vector<8x24xf32>
    %425 = arith.addf %424, %423 : vector<8x24xf32>
    %426 = arith.divf %424, %425 : vector<8x24xf32>
    %427 = vector.extract_strided_slice %420 {offsets = [0, 24], sizes = [8, 8], strides = [1, 1]} : vector<8x32xf32> to vector<8x8xf32>
    %428 = math.tanh %427 : vector<8x8xf32>
    %429 = vector.extract_strided_slice %426 {offsets = [0, 8], sizes = [8, 8], strides = [1, 1]} : vector<8x24xf32> to vector<8x8xf32>
    %430 = arith.mulf %429, %410 : vector<8x8xf32>
    %431 = vector.extract_strided_slice %426 {offsets = [0, 0], sizes = [8, 8], strides = [1, 1]} : vector<8x24xf32> to vector<8x8xf32>
    %432 = arith.mulf %431, %428 : vector<8x8xf32>
    %433 = arith.addf %430, %432 : vector<8x8xf32>
    %434 = vector.extract_strided_slice %426 {offsets = [0, 16], sizes = [8, 8], strides = [1, 1]} : vector<8x24xf32> to vector<8x8xf32>
    %435 = math.tanh %433 : vector<8x8xf32>
    %436 = arith.mulf %434, %435 : vector<8x8xf32>
    %437 = vector.extract_strided_slice %338 {offsets = [32, 0], sizes = [8, 32], strides = [1, 1]} : vector<64x32xf32> to vector<8x32xf32>
    %438 = vector.extract_strided_slice %340 {offsets = [24, 0], sizes = [8, 32], strides = [1, 1]} : vector<64x32xf32> to vector<8x32xf32>
    %439 = arith.addf %437, %438 : vector<8x32xf32>
    %440 = vector.broadcast %341 : vector<1x32xf32> to vector<8x32xf32>
    %441 = arith.addf %439, %440 : vector<8x32xf32>
    %cst_67 = arith.constant dense<0.000000e+00> : vector<8x32xf32>
    %442 = tpu.matmul %436, %342, %cst_67 {dimension_numbers = #tpu.dot_dimension_numbers<[1], [0], [0], [1], [0, 0, 1, 1], [], []>} : vector<8x8xf32>, vector<8x32xf32>, vector<8x32xf32> -> vector<8x32xf32>
    %443 = arith.addf %441, %442 : vector<8x32xf32>
    %444 = vector.extract_strided_slice %443 {offsets = [0, 0], sizes = [8, 24], strides = [1, 1]} : vector<8x32xf32> to vector<8x24xf32>
    %445 = arith.negf %444 : vector<8x24xf32>
    %446 = math.exp %445 : vector<8x24xf32>
    %cst_68 = arith.constant 1.000000e+00 : f32
    %447 = vector.broadcast %cst_68 : f32 to vector<8x24xf32>
    %448 = arith.addf %447, %446 : vector<8x24xf32>
    %449 = arith.divf %447, %448 : vector<8x24xf32>
    %450 = vector.extract_strided_slice %443 {offsets = [0, 24], sizes = [8, 8], strides = [1, 1]} : vector<8x32xf32> to vector<8x8xf32>
    %451 = math.tanh %450 : vector<8x8xf32>
    %452 = vector.extract_strided_slice %449 {offsets = [0, 8], sizes = [8, 8], strides = [1, 1]} : vector<8x24xf32> to vector<8x8xf32>
    %453 = arith.mulf %452, %433 : vector<8x8xf32>
    %454 = vector.extract_strided_slice %449 {offsets = [0, 0], sizes = [8, 8], strides = [1, 1]} : vector<8x24xf32> to vector<8x8xf32>
    %455 = arith.mulf %454, %451 : vector<8x8xf32>
    %456 = arith.addf %453, %455 : vector<8x8xf32>
    %457 = vector.extract_strided_slice %449 {offsets = [0, 16], sizes = [8, 8], strides = [1, 1]} : vector<8x24xf32> to vector<8x8xf32>
    %458 = math.tanh %456 : vector<8x8xf32>
    %459 = arith.mulf %457, %458 : vector<8x8xf32>
    %460 = vector.extract_strided_slice %338 {offsets = [40, 0], sizes = [8, 32], strides = [1, 1]} : vector<64x32xf32> to vector<8x32xf32>
    %461 = vector.extract_strided_slice %340 {offsets = [16, 0], sizes = [8, 32], strides = [1, 1]} : vector<64x32xf32> to vector<8x32xf32>
    %462 = arith.addf %460, %461 : vector<8x32xf32>
    %463 = vector.broadcast %341 : vector<1x32xf32> to vector<8x32xf32>
    %464 = arith.addf %462, %463 : vector<8x32xf32>
    %cst_69 = arith.constant dense<0.000000e+00> : vector<8x32xf32>
    %465 = tpu.matmul %459, %342, %cst_69 {dimension_numbers = #tpu.dot_dimension_numbers<[1], [0], [0], [1], [0, 0, 1, 1], [], []>} : vector<8x8xf32>, vector<8x32xf32>, vector<8x32xf32> -> vector<8x32xf32>
    %466 = arith.addf %464, %465 : vector<8x32xf32>
    %467 = vector.extract_strided_slice %466 {offsets = [0, 0], sizes = [8, 24], strides = [1, 1]} : vector<8x32xf32> to vector<8x24xf32>
    %468 = arith.negf %467 : vector<8x24xf32>
    %469 = math.exp %468 : vector<8x24xf32>
    %cst_70 = arith.constant 1.000000e+00 : f32
    %470 = vector.broadcast %cst_70 : f32 to vector<8x24xf32>
    %471 = arith.addf %470, %469 : vector<8x24xf32>
    %472 = arith.divf %470, %471 : vector<8x24xf32>
    %473 = vector.extract_strided_slice %466 {offsets = [0, 24], sizes = [8, 8], strides = [1, 1]} : vector<8x32xf32> to vector<8x8xf32>
    %474 = math.tanh %473 : vector<8x8xf32>
    %475 = vector.extract_strided_slice %472 {offsets = [0, 8], sizes = [8, 8], strides = [1, 1]} : vector<8x24xf32> to vector<8x8xf32>
    %476 = arith.mulf %475, %456 : vector<8x8xf32>
    %477 = vector.extract_strided_slice %472 {offsets = [0, 0], sizes = [8, 8], strides = [1, 1]} : vector<8x24xf32> to vector<8x8xf32>
    %478 = arith.mulf %477, %474 : vector<8x8xf32>
    %479 = arith.addf %476, %478 : vector<8x8xf32>
    %480 = vector.extract_strided_slice %472 {offsets = [0, 16], sizes = [8, 8], strides = [1, 1]} : vector<8x24xf32> to vector<8x8xf32>
    %481 = math.tanh %479 : vector<8x8xf32>
    %482 = arith.mulf %480, %481 : vector<8x8xf32>
    %483 = vector.extract_strided_slice %338 {offsets = [48, 0], sizes = [8, 32], strides = [1, 1]} : vector<64x32xf32> to vector<8x32xf32>
    %484 = vector.extract_strided_slice %340 {offsets = [8, 0], sizes = [8, 32], strides = [1, 1]} : vector<64x32xf32> to vector<8x32xf32>
    %485 = arith.addf %483, %484 : vector<8x32xf32>
    %486 = vector.broadcast %341 : vector<1x32xf32> to vector<8x32xf32>
    %487 = arith.addf %485, %486 : vector<8x32xf32>
    %cst_71 = arith.constant dense<0.000000e+00> : vector<8x32xf32>
    %488 = tpu.matmul %482, %342, %cst_71 {dimension_numbers = #tpu.dot_dimension_numbers<[1], [0], [0], [1], [0, 0, 1, 1], [], []>} : vector<8x8xf32>, vector<8x32xf32>, vector<8x32xf32> -> vector<8x32xf32>
    %489 = arith.addf %487, %488 : vector<8x32xf32>
    %490 = vector.extract_strided_slice %489 {offsets = [0, 0], sizes = [8, 24], strides = [1, 1]} : vector<8x32xf32> to vector<8x24xf32>
    %491 = arith.negf %490 : vector<8x24xf32>
    %492 = math.exp %491 : vector<8x24xf32>
    %cst_72 = arith.constant 1.000000e+00 : f32
    %493 = vector.broadcast %cst_72 : f32 to vector<8x24xf32>
    %494 = arith.addf %493, %492 : vector<8x24xf32>
    %495 = arith.divf %493, %494 : vector<8x24xf32>
    %496 = vector.extract_strided_slice %489 {offsets = [0, 24], sizes = [8, 8], strides = [1, 1]} : vector<8x32xf32> to vector<8x8xf32>
    %497 = math.tanh %496 : vector<8x8xf32>
    %498 = vector.extract_strided_slice %495 {offsets = [0, 8], sizes = [8, 8], strides = [1, 1]} : vector<8x24xf32> to vector<8x8xf32>
    %499 = arith.mulf %498, %479 : vector<8x8xf32>
    %500 = vector.extract_strided_slice %495 {offsets = [0, 0], sizes = [8, 8], strides = [1, 1]} : vector<8x24xf32> to vector<8x8xf32>
    %501 = arith.mulf %500, %497 : vector<8x8xf32>
    %502 = arith.addf %499, %501 : vector<8x8xf32>
    %503 = vector.extract_strided_slice %495 {offsets = [0, 16], sizes = [8, 8], strides = [1, 1]} : vector<8x24xf32> to vector<8x8xf32>
    %504 = math.tanh %502 : vector<8x8xf32>
    %505 = arith.mulf %503, %504 : vector<8x8xf32>
    %506 = vector.extract_strided_slice %338 {offsets = [56, 0], sizes = [8, 32], strides = [1, 1]} : vector<64x32xf32> to vector<8x32xf32>
    %507 = vector.extract_strided_slice %340 {offsets = [0, 0], sizes = [8, 32], strides = [1, 1]} : vector<64x32xf32> to vector<8x32xf32>
    %508 = arith.addf %506, %507 : vector<8x32xf32>
    %509 = vector.broadcast %341 : vector<1x32xf32> to vector<8x32xf32>
    %510 = arith.addf %508, %509 : vector<8x32xf32>
    %cst_73 = arith.constant dense<0.000000e+00> : vector<8x32xf32>
    %511 = tpu.matmul %505, %342, %cst_73 {dimension_numbers = #tpu.dot_dimension_numbers<[1], [0], [0], [1], [0, 0, 1, 1], [], []>} : vector<8x8xf32>, vector<8x32xf32>, vector<8x32xf32> -> vector<8x32xf32>
    %512 = arith.addf %510, %511 : vector<8x32xf32>
    %513 = vector.extract_strided_slice %512 {offsets = [0, 0], sizes = [8, 24], strides = [1, 1]} : vector<8x32xf32> to vector<8x24xf32>
    %514 = arith.negf %513 : vector<8x24xf32>
    %515 = math.exp %514 : vector<8x24xf32>
    %cst_74 = arith.constant 1.000000e+00 : f32
    %516 = vector.broadcast %cst_74 : f32 to vector<8x24xf32>
    %517 = arith.addf %516, %515 : vector<8x24xf32>
    %518 = arith.divf %516, %517 : vector<8x24xf32>
    %519 = vector.extract_strided_slice %512 {offsets = [0, 24], sizes = [8, 8], strides = [1, 1]} : vector<8x32xf32> to vector<8x8xf32>
    %520 = math.tanh %519 : vector<8x8xf32>
    %521 = vector.extract_strided_slice %518 {offsets = [0, 8], sizes = [8, 8], strides = [1, 1]} : vector<8x24xf32> to vector<8x8xf32>
    %522 = arith.mulf %521, %502 : vector<8x8xf32>
    %523 = vector.extract_strided_slice %518 {offsets = [0, 0], sizes = [8, 8], strides = [1, 1]} : vector<8x24xf32> to vector<8x8xf32>
    %524 = arith.mulf %523, %520 : vector<8x8xf32>
    %525 = arith.addf %522, %524 : vector<8x8xf32>
    %526 = vector.extract_strided_slice %518 {offsets = [0, 16], sizes = [8, 8], strides = [1, 1]} : vector<8x24xf32> to vector<8x8xf32>
    %527 = math.tanh %525 : vector<8x8xf32>
    %528 = arith.mulf %526, %527 : vector<8x8xf32>
    %529 = tpu.concatenate %367, %390, %413, %436, %459, %482, %505, %528 in 0 : vector<8x8xf32>, vector<8x8xf32>, vector<8x8xf32>, vector<8x8xf32>, vector<8x8xf32>, vector<8x8xf32>, vector<8x8xf32>, vector<8x8xf32> -> vector<64x8xf32>
    %530 = arith.negf %529 : vector<64x8xf32>
    %531 = math.exp %530 : vector<64x8xf32>
    %cst_75 = arith.constant 1.000000e+00 : f32
    %532 = vector.broadcast %cst_75 : f32 to vector<64x8xf32>
    %533 = arith.addf %532, %531 : vector<64x8xf32>
    %534 = arith.divf %532, %533 : vector<64x8xf32>
    %c184 = arith.constant 184 : index
    %c0_76 = arith.constant 0 : index
    %535 = vector.load %arg2[%c184, %c0_76] : memref<352x128xf32, #tpu.memory_space<vmem>>, vector<8x32xf32>
    %c200 = arith.constant 200 : index
    %c0_77 = arith.constant 0 : index
    %536 = vector.load %arg2[%c200, %c0_77] : memref<352x128xf32, #tpu.memory_space<vmem>>, vector<1x32xf32>
    %cst_78 = arith.constant dense<0.000000e+00> : vector<64x32xf32>
    %537 = tpu.matmul %534, %535, %cst_78 {dimension_numbers = #tpu.dot_dimension_numbers<[1], [0], [0], [1], [0, 0, 1, 1], [], []>} : vector<64x8xf32>, vector<8x32xf32>, vector<64x32xf32> -> vector<64x32xf32>
    %538 = vector.broadcast %536 : vector<1x32xf32> to vector<64x32xf32>
    %539 = arith.addf %537, %538 : vector<64x32xf32>
    %540 = vector.extract_strided_slice %534 {offsets = [56, 0], sizes = [8, 8], strides = [1, 1]} : vector<64x8xf32> to vector<8x8xf32>
    %c192 = arith.constant 192 : index
    %c0_79 = arith.constant 0 : index
    %541 = vector.load %arg2[%c192, %c0_79] : memref<352x128xf32, #tpu.memory_space<vmem>>, vector<8x32xf32>
    %cst_80 = arith.constant 0.000000e+00 : f32
    %542 = vector.broadcast %cst_80 : f32 to vector<8x8xf32>
    %cst_81 = arith.constant 0.000000e+00 : f32
    %543 = vector.broadcast %cst_81 : f32 to vector<8x8xf32>
    %544 = vector.extract_strided_slice %539 {offsets = [0, 0], sizes = [8, 32], strides = [1, 1]} : vector<64x32xf32> to vector<8x32xf32>
    %cst_82 = arith.constant dense<0.000000e+00> : vector<8x32xf32>
    %545 = tpu.matmul %542, %541, %cst_82 {dimension_numbers = #tpu.dot_dimension_numbers<[1], [0], [0], [1], [0, 0, 1, 1], [], []>} : vector<8x8xf32>, vector<8x32xf32>, vector<8x32xf32> -> vector<8x32xf32>
    %546 = arith.addf %544, %545 : vector<8x32xf32>
    %547 = vector.extract_strided_slice %546 {offsets = [0, 0], sizes = [8, 24], strides = [1, 1]} : vector<8x32xf32> to vector<8x24xf32>
    %548 = arith.negf %547 : vector<8x24xf32>
    %549 = math.exp %548 : vector<8x24xf32>
    %cst_83 = arith.constant 1.000000e+00 : f32
    %550 = vector.broadcast %cst_83 : f32 to vector<8x24xf32>
    %551 = arith.addf %550, %549 : vector<8x24xf32>
    %552 = arith.divf %550, %551 : vector<8x24xf32>
    %553 = vector.extract_strided_slice %546 {offsets = [0, 24], sizes = [8, 8], strides = [1, 1]} : vector<8x32xf32> to vector<8x8xf32>
    %554 = math.tanh %553 : vector<8x8xf32>
    %555 = vector.extract_strided_slice %552 {offsets = [0, 8], sizes = [8, 8], strides = [1, 1]} : vector<8x24xf32> to vector<8x8xf32>
    %556 = arith.mulf %555, %543 : vector<8x8xf32>
    %557 = vector.extract_strided_slice %552 {offsets = [0, 0], sizes = [8, 8], strides = [1, 1]} : vector<8x24xf32> to vector<8x8xf32>
    %558 = arith.mulf %557, %554 : vector<8x8xf32>
    %559 = arith.addf %556, %558 : vector<8x8xf32>
    %560 = vector.extract_strided_slice %552 {offsets = [0, 16], sizes = [8, 8], strides = [1, 1]} : vector<8x24xf32> to vector<8x8xf32>
    %561 = math.tanh %559 : vector<8x8xf32>
    %562 = arith.mulf %560, %561 : vector<8x8xf32>
    %563 = vector.extract_strided_slice %539 {offsets = [8, 0], sizes = [8, 32], strides = [1, 1]} : vector<64x32xf32> to vector<8x32xf32>
    %cst_84 = arith.constant dense<0.000000e+00> : vector<8x32xf32>
    %564 = tpu.matmul %562, %541, %cst_84 {dimension_numbers = #tpu.dot_dimension_numbers<[1], [0], [0], [1], [0, 0, 1, 1], [], []>} : vector<8x8xf32>, vector<8x32xf32>, vector<8x32xf32> -> vector<8x32xf32>
    %565 = arith.addf %563, %564 : vector<8x32xf32>
    %566 = vector.extract_strided_slice %565 {offsets = [0, 0], sizes = [8, 24], strides = [1, 1]} : vector<8x32xf32> to vector<8x24xf32>
    %567 = arith.negf %566 : vector<8x24xf32>
    %568 = math.exp %567 : vector<8x24xf32>
    %cst_85 = arith.constant 1.000000e+00 : f32
    %569 = vector.broadcast %cst_85 : f32 to vector<8x24xf32>
    %570 = arith.addf %569, %568 : vector<8x24xf32>
    %571 = arith.divf %569, %570 : vector<8x24xf32>
    %572 = vector.extract_strided_slice %565 {offsets = [0, 24], sizes = [8, 8], strides = [1, 1]} : vector<8x32xf32> to vector<8x8xf32>
    %573 = math.tanh %572 : vector<8x8xf32>
    %574 = vector.extract_strided_slice %571 {offsets = [0, 8], sizes = [8, 8], strides = [1, 1]} : vector<8x24xf32> to vector<8x8xf32>
    %575 = arith.mulf %574, %559 : vector<8x8xf32>
    %576 = vector.extract_strided_slice %571 {offsets = [0, 0], sizes = [8, 8], strides = [1, 1]} : vector<8x24xf32> to vector<8x8xf32>
    %577 = arith.mulf %576, %573 : vector<8x8xf32>
    %578 = arith.addf %575, %577 : vector<8x8xf32>
    %579 = vector.extract_strided_slice %571 {offsets = [0, 16], sizes = [8, 8], strides = [1, 1]} : vector<8x24xf32> to vector<8x8xf32>
    %580 = math.tanh %578 : vector<8x8xf32>
    %581 = arith.mulf %579, %580 : vector<8x8xf32>
    %582 = vector.extract_strided_slice %539 {offsets = [16, 0], sizes = [8, 32], strides = [1, 1]} : vector<64x32xf32> to vector<8x32xf32>
    %cst_86 = arith.constant dense<0.000000e+00> : vector<8x32xf32>
    %583 = tpu.matmul %581, %541, %cst_86 {dimension_numbers = #tpu.dot_dimension_numbers<[1], [0], [0], [1], [0, 0, 1, 1], [], []>} : vector<8x8xf32>, vector<8x32xf32>, vector<8x32xf32> -> vector<8x32xf32>
    %584 = arith.addf %582, %583 : vector<8x32xf32>
    %585 = vector.extract_strided_slice %584 {offsets = [0, 0], sizes = [8, 24], strides = [1, 1]} : vector<8x32xf32> to vector<8x24xf32>
    %586 = arith.negf %585 : vector<8x24xf32>
    %587 = math.exp %586 : vector<8x24xf32>
    %cst_87 = arith.constant 1.000000e+00 : f32
    %588 = vector.broadcast %cst_87 : f32 to vector<8x24xf32>
    %589 = arith.addf %588, %587 : vector<8x24xf32>
    %590 = arith.divf %588, %589 : vector<8x24xf32>
    %591 = vector.extract_strided_slice %584 {offsets = [0, 24], sizes = [8, 8], strides = [1, 1]} : vector<8x32xf32> to vector<8x8xf32>
    %592 = math.tanh %591 : vector<8x8xf32>
    %593 = vector.extract_strided_slice %590 {offsets = [0, 8], sizes = [8, 8], strides = [1, 1]} : vector<8x24xf32> to vector<8x8xf32>
    %594 = arith.mulf %593, %578 : vector<8x8xf32>
    %595 = vector.extract_strided_slice %590 {offsets = [0, 0], sizes = [8, 8], strides = [1, 1]} : vector<8x24xf32> to vector<8x8xf32>
    %596 = arith.mulf %595, %592 : vector<8x8xf32>
    %597 = arith.addf %594, %596 : vector<8x8xf32>
    %598 = vector.extract_strided_slice %590 {offsets = [0, 16], sizes = [8, 8], strides = [1, 1]} : vector<8x24xf32> to vector<8x8xf32>
    %599 = math.tanh %597 : vector<8x8xf32>
    %600 = arith.mulf %598, %599 : vector<8x8xf32>
    %601 = vector.extract_strided_slice %539 {offsets = [24, 0], sizes = [8, 32], strides = [1, 1]} : vector<64x32xf32> to vector<8x32xf32>
    %cst_88 = arith.constant dense<0.000000e+00> : vector<8x32xf32>
    %602 = tpu.matmul %600, %541, %cst_88 {dimension_numbers = #tpu.dot_dimension_numbers<[1], [0], [0], [1], [0, 0, 1, 1], [], []>} : vector<8x8xf32>, vector<8x32xf32>, vector<8x32xf32> -> vector<8x32xf32>
    %603 = arith.addf %601, %602 : vector<8x32xf32>
    %604 = vector.extract_strided_slice %603 {offsets = [0, 0], sizes = [8, 24], strides = [1, 1]} : vector<8x32xf32> to vector<8x24xf32>
    %605 = arith.negf %604 : vector<8x24xf32>
    %606 = math.exp %605 : vector<8x24xf32>
    %cst_89 = arith.constant 1.000000e+00 : f32
    %607 = vector.broadcast %cst_89 : f32 to vector<8x24xf32>
    %608 = arith.addf %607, %606 : vector<8x24xf32>
    %609 = arith.divf %607, %608 : vector<8x24xf32>
    %610 = vector.extract_strided_slice %603 {offsets = [0, 24], sizes = [8, 8], strides = [1, 1]} : vector<8x32xf32> to vector<8x8xf32>
    %611 = math.tanh %610 : vector<8x8xf32>
    %612 = vector.extract_strided_slice %609 {offsets = [0, 8], sizes = [8, 8], strides = [1, 1]} : vector<8x24xf32> to vector<8x8xf32>
    %613 = arith.mulf %612, %597 : vector<8x8xf32>
    %614 = vector.extract_strided_slice %609 {offsets = [0, 0], sizes = [8, 8], strides = [1, 1]} : vector<8x24xf32> to vector<8x8xf32>
    %615 = arith.mulf %614, %611 : vector<8x8xf32>
    %616 = arith.addf %613, %615 : vector<8x8xf32>
    %617 = vector.extract_strided_slice %609 {offsets = [0, 16], sizes = [8, 8], strides = [1, 1]} : vector<8x24xf32> to vector<8x8xf32>
    %618 = math.tanh %616 : vector<8x8xf32>
    %619 = arith.mulf %617, %618 : vector<8x8xf32>
    %620 = vector.extract_strided_slice %539 {offsets = [32, 0], sizes = [8, 32], strides = [1, 1]} : vector<64x32xf32> to vector<8x32xf32>
    %cst_90 = arith.constant dense<0.000000e+00> : vector<8x32xf32>
    %621 = tpu.matmul %619, %541, %cst_90 {dimension_numbers = #tpu.dot_dimension_numbers<[1], [0], [0], [1], [0, 0, 1, 1], [], []>} : vector<8x8xf32>, vector<8x32xf32>, vector<8x32xf32> -> vector<8x32xf32>
    %622 = arith.addf %620, %621 : vector<8x32xf32>
    %623 = vector.extract_strided_slice %622 {offsets = [0, 0], sizes = [8, 24], strides = [1, 1]} : vector<8x32xf32> to vector<8x24xf32>
    %624 = arith.negf %623 : vector<8x24xf32>
    %625 = math.exp %624 : vector<8x24xf32>
    %cst_91 = arith.constant 1.000000e+00 : f32
    %626 = vector.broadcast %cst_91 : f32 to vector<8x24xf32>
    %627 = arith.addf %626, %625 : vector<8x24xf32>
    %628 = arith.divf %626, %627 : vector<8x24xf32>
    %629 = vector.extract_strided_slice %622 {offsets = [0, 24], sizes = [8, 8], strides = [1, 1]} : vector<8x32xf32> to vector<8x8xf32>
    %630 = math.tanh %629 : vector<8x8xf32>
    %631 = vector.extract_strided_slice %628 {offsets = [0, 8], sizes = [8, 8], strides = [1, 1]} : vector<8x24xf32> to vector<8x8xf32>
    %632 = arith.mulf %631, %616 : vector<8x8xf32>
    %633 = vector.extract_strided_slice %628 {offsets = [0, 0], sizes = [8, 8], strides = [1, 1]} : vector<8x24xf32> to vector<8x8xf32>
    %634 = arith.mulf %633, %630 : vector<8x8xf32>
    %635 = arith.addf %632, %634 : vector<8x8xf32>
    %636 = vector.extract_strided_slice %628 {offsets = [0, 16], sizes = [8, 8], strides = [1, 1]} : vector<8x24xf32> to vector<8x8xf32>
    %637 = math.tanh %635 : vector<8x8xf32>
    %638 = arith.mulf %636, %637 : vector<8x8xf32>
    %639 = vector.extract_strided_slice %539 {offsets = [40, 0], sizes = [8, 32], strides = [1, 1]} : vector<64x32xf32> to vector<8x32xf32>
    %cst_92 = arith.constant dense<0.000000e+00> : vector<8x32xf32>
    %640 = tpu.matmul %638, %541, %cst_92 {dimension_numbers = #tpu.dot_dimension_numbers<[1], [0], [0], [1], [0, 0, 1, 1], [], []>} : vector<8x8xf32>, vector<8x32xf32>, vector<8x32xf32> -> vector<8x32xf32>
    %641 = arith.addf %639, %640 : vector<8x32xf32>
    %642 = vector.extract_strided_slice %641 {offsets = [0, 0], sizes = [8, 24], strides = [1, 1]} : vector<8x32xf32> to vector<8x24xf32>
    %643 = arith.negf %642 : vector<8x24xf32>
    %644 = math.exp %643 : vector<8x24xf32>
    %cst_93 = arith.constant 1.000000e+00 : f32
    %645 = vector.broadcast %cst_93 : f32 to vector<8x24xf32>
    %646 = arith.addf %645, %644 : vector<8x24xf32>
    %647 = arith.divf %645, %646 : vector<8x24xf32>
    %648 = vector.extract_strided_slice %641 {offsets = [0, 24], sizes = [8, 8], strides = [1, 1]} : vector<8x32xf32> to vector<8x8xf32>
    %649 = math.tanh %648 : vector<8x8xf32>
    %650 = vector.extract_strided_slice %647 {offsets = [0, 8], sizes = [8, 8], strides = [1, 1]} : vector<8x24xf32> to vector<8x8xf32>
    %651 = arith.mulf %650, %635 : vector<8x8xf32>
    %652 = vector.extract_strided_slice %647 {offsets = [0, 0], sizes = [8, 8], strides = [1, 1]} : vector<8x24xf32> to vector<8x8xf32>
    %653 = arith.mulf %652, %649 : vector<8x8xf32>
    %654 = arith.addf %651, %653 : vector<8x8xf32>
    %655 = vector.extract_strided_slice %647 {offsets = [0, 16], sizes = [8, 8], strides = [1, 1]} : vector<8x24xf32> to vector<8x8xf32>
    %656 = math.tanh %654 : vector<8x8xf32>
    %657 = arith.mulf %655, %656 : vector<8x8xf32>
    %658 = vector.extract_strided_slice %539 {offsets = [48, 0], sizes = [8, 32], strides = [1, 1]} : vector<64x32xf32> to vector<8x32xf32>
    %cst_94 = arith.constant dense<0.000000e+00> : vector<8x32xf32>
    %659 = tpu.matmul %657, %541, %cst_94 {dimension_numbers = #tpu.dot_dimension_numbers<[1], [0], [0], [1], [0, 0, 1, 1], [], []>} : vector<8x8xf32>, vector<8x32xf32>, vector<8x32xf32> -> vector<8x32xf32>
    %660 = arith.addf %658, %659 : vector<8x32xf32>
    %661 = vector.extract_strided_slice %660 {offsets = [0, 0], sizes = [8, 24], strides = [1, 1]} : vector<8x32xf32> to vector<8x24xf32>
    %662 = arith.negf %661 : vector<8x24xf32>
    %663 = math.exp %662 : vector<8x24xf32>
    %cst_95 = arith.constant 1.000000e+00 : f32
    %664 = vector.broadcast %cst_95 : f32 to vector<8x24xf32>
    %665 = arith.addf %664, %663 : vector<8x24xf32>
    %666 = arith.divf %664, %665 : vector<8x24xf32>
    %667 = vector.extract_strided_slice %660 {offsets = [0, 24], sizes = [8, 8], strides = [1, 1]} : vector<8x32xf32> to vector<8x8xf32>
    %668 = math.tanh %667 : vector<8x8xf32>
    %669 = vector.extract_strided_slice %666 {offsets = [0, 8], sizes = [8, 8], strides = [1, 1]} : vector<8x24xf32> to vector<8x8xf32>
    %670 = arith.mulf %669, %654 : vector<8x8xf32>
    %671 = vector.extract_strided_slice %666 {offsets = [0, 0], sizes = [8, 8], strides = [1, 1]} : vector<8x24xf32> to vector<8x8xf32>
    %672 = arith.mulf %671, %668 : vector<8x8xf32>
    %673 = arith.addf %670, %672 : vector<8x8xf32>
    %674 = vector.extract_strided_slice %666 {offsets = [0, 16], sizes = [8, 8], strides = [1, 1]} : vector<8x24xf32> to vector<8x8xf32>
    %675 = math.tanh %673 : vector<8x8xf32>
    %676 = arith.mulf %674, %675 : vector<8x8xf32>
    %677 = vector.extract_strided_slice %539 {offsets = [56, 0], sizes = [8, 32], strides = [1, 1]} : vector<64x32xf32> to vector<8x32xf32>
    %cst_96 = arith.constant dense<0.000000e+00> : vector<8x32xf32>
    %678 = tpu.matmul %676, %541, %cst_96 {dimension_numbers = #tpu.dot_dimension_numbers<[1], [0], [0], [1], [0, 0, 1, 1], [], []>} : vector<8x8xf32>, vector<8x32xf32>, vector<8x32xf32> -> vector<8x32xf32>
    %679 = arith.addf %677, %678 : vector<8x32xf32>
    %680 = vector.extract_strided_slice %679 {offsets = [0, 0], sizes = [8, 24], strides = [1, 1]} : vector<8x32xf32> to vector<8x24xf32>
    %681 = arith.negf %680 : vector<8x24xf32>
    %682 = math.exp %681 : vector<8x24xf32>
    %cst_97 = arith.constant 1.000000e+00 : f32
    %683 = vector.broadcast %cst_97 : f32 to vector<8x24xf32>
    %684 = arith.addf %683, %682 : vector<8x24xf32>
    %685 = arith.divf %683, %684 : vector<8x24xf32>
    %686 = vector.extract_strided_slice %679 {offsets = [0, 24], sizes = [8, 8], strides = [1, 1]} : vector<8x32xf32> to vector<8x8xf32>
    %687 = math.tanh %686 : vector<8x8xf32>
    %688 = vector.extract_strided_slice %685 {offsets = [0, 8], sizes = [8, 8], strides = [1, 1]} : vector<8x24xf32> to vector<8x8xf32>
    %689 = arith.mulf %688, %673 : vector<8x8xf32>
    %690 = vector.extract_strided_slice %685 {offsets = [0, 0], sizes = [8, 8], strides = [1, 1]} : vector<8x24xf32> to vector<8x8xf32>
    %691 = arith.mulf %690, %687 : vector<8x8xf32>
    %692 = arith.addf %689, %691 : vector<8x8xf32>
    %693 = vector.extract_strided_slice %685 {offsets = [0, 16], sizes = [8, 8], strides = [1, 1]} : vector<8x24xf32> to vector<8x8xf32>
    %694 = math.tanh %692 : vector<8x8xf32>
    %695 = arith.mulf %693, %694 : vector<8x8xf32>
    %c208 = arith.constant 208 : index
    %c0_98 = arith.constant 0 : index
    %696 = vector.load %arg2[%c208, %c0_98] : memref<352x128xf32, #tpu.memory_space<vmem>>, vector<8x32xf32>
    %cst_99 = arith.constant dense<0.000000e+00> : vector<8x32xf32>
    %697 = tpu.matmul %540, %696, %cst_99 {dimension_numbers = #tpu.dot_dimension_numbers<[1], [0], [0], [1], [0, 0, 1, 1], [], []>} : vector<8x8xf32>, vector<8x32xf32>, vector<8x32xf32> -> vector<8x32xf32>
    %c216 = arith.constant 216 : index
    %c0_100 = arith.constant 0 : index
    %698 = vector.load %arg2[%c216, %c0_100] : memref<352x128xf32, #tpu.memory_space<vmem>>, vector<1x32xf32>
    %699 = vector.broadcast %698 : vector<1x32xf32> to vector<8x32xf32>
    %700 = arith.addf %697, %699 : vector<8x32xf32>
    %701 = vector.extract_strided_slice %700 {offsets = [0, 0], sizes = [8, 24], strides = [1, 1]} : vector<8x32xf32> to vector<8x24xf32>
    %702 = arith.negf %701 : vector<8x24xf32>
    %703 = math.exp %702 : vector<8x24xf32>
    %cst_101 = arith.constant 1.000000e+00 : f32
    %704 = vector.broadcast %cst_101 : f32 to vector<8x24xf32>
    %705 = arith.addf %704, %703 : vector<8x24xf32>
    %706 = arith.divf %704, %705 : vector<8x24xf32>
    %707 = vector.extract_strided_slice %700 {offsets = [0, 24], sizes = [8, 8], strides = [1, 1]} : vector<8x32xf32> to vector<8x8xf32>
    %708 = math.tanh %707 : vector<8x8xf32>
    %709 = vector.extract_strided_slice %706 {offsets = [0, 16], sizes = [8, 8], strides = [1, 1]} : vector<8x24xf32> to vector<8x8xf32>
    %710 = vector.extract_strided_slice %706 {offsets = [0, 0], sizes = [8, 8], strides = [1, 1]} : vector<8x24xf32> to vector<8x8xf32>
    %711 = arith.mulf %710, %708 : vector<8x8xf32>
    %712 = math.tanh %711 : vector<8x8xf32>
    %713 = arith.mulf %709, %712 : vector<8x8xf32>
    %714 = tpu.concatenate %695, %713 in 1 : vector<8x8xf32>, vector<8x8xf32> -> vector<8x16xf32>
    %c224 = arith.constant 224 : index
    %c0_102 = arith.constant 0 : index
    %715 = vector.load %arg2[%c224, %c0_102] : memref<352x128xf32, #tpu.memory_space<vmem>>, vector<16x64xf32>
    %c256 = arith.constant 256 : index
    %c0_103 = arith.constant 0 : index
    %716 = vector.load %arg2[%c256, %c0_103] : memref<352x128xf32, #tpu.memory_space<vmem>>, vector<1x64xf32>
    %cst_104 = arith.constant dense<0.000000e+00> : vector<8x64xf32>
    %717 = tpu.matmul %714, %715, %cst_104 {dimension_numbers = #tpu.dot_dimension_numbers<[1], [0], [0], [1], [0, 0, 1, 1], [], []>} : vector<8x16xf32>, vector<16x64xf32>, vector<8x64xf32> -> vector<8x64xf32>
    %718 = vector.broadcast %716 : vector<1x64xf32> to vector<8x64xf32>
    %719 = arith.addf %717, %718 : vector<8x64xf32>
    %c240 = arith.constant 240 : index
    %c0_105 = arith.constant 0 : index
    %720 = vector.load %arg2[%c240, %c0_105] : memref<352x128xf32, #tpu.memory_space<vmem>>, vector<16x64xf32>
    %cst_106 = arith.constant 0.000000e+00 : f32
    %721 = vector.broadcast %cst_106 : f32 to vector<8x16xf32>
    %cst_107 = arith.constant 0.000000e+00 : f32
    %722 = vector.broadcast %cst_107 : f32 to vector<8x16xf32>
    %cst_108 = arith.constant dense<0.000000e+00> : vector<8x64xf32>
    %723 = tpu.matmul %721, %720, %cst_108 {dimension_numbers = #tpu.dot_dimension_numbers<[1], [0], [0], [1], [0, 0, 1, 1], [], []>} : vector<8x16xf32>, vector<16x64xf32>, vector<8x64xf32> -> vector<8x64xf32>
    %724 = arith.addf %719, %723 : vector<8x64xf32>
    %725 = vector.extract_strided_slice %724 {offsets = [0, 0], sizes = [8, 48], strides = [1, 1]} : vector<8x64xf32> to vector<8x48xf32>
    %726 = arith.negf %725 : vector<8x48xf32>
    %727 = math.exp %726 : vector<8x48xf32>
    %cst_109 = arith.constant 1.000000e+00 : f32
    %728 = vector.broadcast %cst_109 : f32 to vector<8x48xf32>
    %729 = arith.addf %728, %727 : vector<8x48xf32>
    %730 = arith.divf %728, %729 : vector<8x48xf32>
    %731 = vector.extract_strided_slice %724 {offsets = [0, 48], sizes = [8, 16], strides = [1, 1]} : vector<8x64xf32> to vector<8x16xf32>
    %732 = math.tanh %731 : vector<8x16xf32>
    %733 = vector.extract_strided_slice %730 {offsets = [0, 16], sizes = [8, 16], strides = [1, 1]} : vector<8x48xf32> to vector<8x16xf32>
    %734 = arith.mulf %733, %722 : vector<8x16xf32>
    %735 = vector.extract_strided_slice %730 {offsets = [0, 0], sizes = [8, 16], strides = [1, 1]} : vector<8x48xf32> to vector<8x16xf32>
    %736 = arith.mulf %735, %732 : vector<8x16xf32>
    %737 = arith.addf %734, %736 : vector<8x16xf32>
    %738 = vector.extract_strided_slice %730 {offsets = [0, 32], sizes = [8, 16], strides = [1, 1]} : vector<8x48xf32> to vector<8x16xf32>
    %739 = math.tanh %737 : vector<8x16xf32>
    %740 = arith.mulf %738, %739 : vector<8x16xf32>
    %cst_110 = arith.constant dense<0.000000e+00> : vector<8x64xf32>
    %741 = tpu.matmul %740, %720, %cst_110 {dimension_numbers = #tpu.dot_dimension_numbers<[1], [0], [0], [1], [0, 0, 1, 1], [], []>} : vector<8x16xf32>, vector<16x64xf32>, vector<8x64xf32> -> vector<8x64xf32>
    %742 = arith.addf %719, %741 : vector<8x64xf32>
    %743 = vector.extract_strided_slice %742 {offsets = [0, 0], sizes = [8, 48], strides = [1, 1]} : vector<8x64xf32> to vector<8x48xf32>
    %744 = arith.negf %743 : vector<8x48xf32>
    %745 = math.exp %744 : vector<8x48xf32>
    %cst_111 = arith.constant 1.000000e+00 : f32
    %746 = vector.broadcast %cst_111 : f32 to vector<8x48xf32>
    %747 = arith.addf %746, %745 : vector<8x48xf32>
    %748 = arith.divf %746, %747 : vector<8x48xf32>
    %749 = vector.extract_strided_slice %742 {offsets = [0, 48], sizes = [8, 16], strides = [1, 1]} : vector<8x64xf32> to vector<8x16xf32>
    %750 = math.tanh %749 : vector<8x16xf32>
    %751 = vector.extract_strided_slice %748 {offsets = [0, 16], sizes = [8, 16], strides = [1, 1]} : vector<8x48xf32> to vector<8x16xf32>
    %752 = arith.mulf %751, %737 : vector<8x16xf32>
    %753 = vector.extract_strided_slice %748 {offsets = [0, 0], sizes = [8, 16], strides = [1, 1]} : vector<8x48xf32> to vector<8x16xf32>
    %754 = arith.mulf %753, %750 : vector<8x16xf32>
    %755 = arith.addf %752, %754 : vector<8x16xf32>
    %756 = vector.extract_strided_slice %748 {offsets = [0, 32], sizes = [8, 16], strides = [1, 1]} : vector<8x48xf32> to vector<8x16xf32>
    %757 = math.tanh %755 : vector<8x16xf32>
    %758 = arith.mulf %756, %757 : vector<8x16xf32>
    %cst_112 = arith.constant dense<0.000000e+00> : vector<8x64xf32>
    %759 = tpu.matmul %758, %720, %cst_112 {dimension_numbers = #tpu.dot_dimension_numbers<[1], [0], [0], [1], [0, 0, 1, 1], [], []>} : vector<8x16xf32>, vector<16x64xf32>, vector<8x64xf32> -> vector<8x64xf32>
    %760 = arith.addf %719, %759 : vector<8x64xf32>
    %761 = vector.extract_strided_slice %760 {offsets = [0, 0], sizes = [8, 48], strides = [1, 1]} : vector<8x64xf32> to vector<8x48xf32>
    %762 = arith.negf %761 : vector<8x48xf32>
    %763 = math.exp %762 : vector<8x48xf32>
    %cst_113 = arith.constant 1.000000e+00 : f32
    %764 = vector.broadcast %cst_113 : f32 to vector<8x48xf32>
    %765 = arith.addf %764, %763 : vector<8x48xf32>
    %766 = arith.divf %764, %765 : vector<8x48xf32>
    %767 = vector.extract_strided_slice %760 {offsets = [0, 48], sizes = [8, 16], strides = [1, 1]} : vector<8x64xf32> to vector<8x16xf32>
    %768 = math.tanh %767 : vector<8x16xf32>
    %769 = vector.extract_strided_slice %766 {offsets = [0, 16], sizes = [8, 16], strides = [1, 1]} : vector<8x48xf32> to vector<8x16xf32>
    %770 = arith.mulf %769, %755 : vector<8x16xf32>
    %771 = vector.extract_strided_slice %766 {offsets = [0, 0], sizes = [8, 16], strides = [1, 1]} : vector<8x48xf32> to vector<8x16xf32>
    %772 = arith.mulf %771, %768 : vector<8x16xf32>
    %773 = arith.addf %770, %772 : vector<8x16xf32>
    %774 = vector.extract_strided_slice %766 {offsets = [0, 32], sizes = [8, 16], strides = [1, 1]} : vector<8x48xf32> to vector<8x16xf32>
    %775 = math.tanh %773 : vector<8x16xf32>
    %776 = arith.mulf %774, %775 : vector<8x16xf32>
    %cst_114 = arith.constant dense<0.000000e+00> : vector<8x64xf32>
    %777 = tpu.matmul %776, %720, %cst_114 {dimension_numbers = #tpu.dot_dimension_numbers<[1], [0], [0], [1], [0, 0, 1, 1], [], []>} : vector<8x16xf32>, vector<16x64xf32>, vector<8x64xf32> -> vector<8x64xf32>
    %778 = arith.addf %719, %777 : vector<8x64xf32>
    %779 = vector.extract_strided_slice %778 {offsets = [0, 0], sizes = [8, 48], strides = [1, 1]} : vector<8x64xf32> to vector<8x48xf32>
    %780 = arith.negf %779 : vector<8x48xf32>
    %781 = math.exp %780 : vector<8x48xf32>
    %cst_115 = arith.constant 1.000000e+00 : f32
    %782 = vector.broadcast %cst_115 : f32 to vector<8x48xf32>
    %783 = arith.addf %782, %781 : vector<8x48xf32>
    %784 = arith.divf %782, %783 : vector<8x48xf32>
    %785 = vector.extract_strided_slice %778 {offsets = [0, 48], sizes = [8, 16], strides = [1, 1]} : vector<8x64xf32> to vector<8x16xf32>
    %786 = math.tanh %785 : vector<8x16xf32>
    %787 = vector.extract_strided_slice %784 {offsets = [0, 16], sizes = [8, 16], strides = [1, 1]} : vector<8x48xf32> to vector<8x16xf32>
    %788 = arith.mulf %787, %773 : vector<8x16xf32>
    %789 = vector.extract_strided_slice %784 {offsets = [0, 0], sizes = [8, 16], strides = [1, 1]} : vector<8x48xf32> to vector<8x16xf32>
    %790 = arith.mulf %789, %786 : vector<8x16xf32>
    %791 = arith.addf %788, %790 : vector<8x16xf32>
    %792 = vector.extract_strided_slice %784 {offsets = [0, 32], sizes = [8, 16], strides = [1, 1]} : vector<8x48xf32> to vector<8x16xf32>
    %793 = math.tanh %791 : vector<8x16xf32>
    %794 = arith.mulf %792, %793 : vector<8x16xf32>
    %cst_116 = arith.constant dense<0.000000e+00> : vector<8x64xf32>
    %795 = tpu.matmul %794, %720, %cst_116 {dimension_numbers = #tpu.dot_dimension_numbers<[1], [0], [0], [1], [0, 0, 1, 1], [], []>} : vector<8x16xf32>, vector<16x64xf32>, vector<8x64xf32> -> vector<8x64xf32>
    %796 = arith.addf %719, %795 : vector<8x64xf32>
    %797 = vector.extract_strided_slice %796 {offsets = [0, 0], sizes = [8, 48], strides = [1, 1]} : vector<8x64xf32> to vector<8x48xf32>
    %798 = arith.negf %797 : vector<8x48xf32>
    %799 = math.exp %798 : vector<8x48xf32>
    %cst_117 = arith.constant 1.000000e+00 : f32
    %800 = vector.broadcast %cst_117 : f32 to vector<8x48xf32>
    %801 = arith.addf %800, %799 : vector<8x48xf32>
    %802 = arith.divf %800, %801 : vector<8x48xf32>
    %803 = vector.extract_strided_slice %796 {offsets = [0, 48], sizes = [8, 16], strides = [1, 1]} : vector<8x64xf32> to vector<8x16xf32>
    %804 = math.tanh %803 : vector<8x16xf32>
    %805 = vector.extract_strided_slice %802 {offsets = [0, 16], sizes = [8, 16], strides = [1, 1]} : vector<8x48xf32> to vector<8x16xf32>
    %806 = arith.mulf %805, %791 : vector<8x16xf32>
    %807 = vector.extract_strided_slice %802 {offsets = [0, 0], sizes = [8, 16], strides = [1, 1]} : vector<8x48xf32> to vector<8x16xf32>
    %808 = arith.mulf %807, %804 : vector<8x16xf32>
    %809 = arith.addf %806, %808 : vector<8x16xf32>
    %810 = vector.extract_strided_slice %802 {offsets = [0, 32], sizes = [8, 16], strides = [1, 1]} : vector<8x48xf32> to vector<8x16xf32>
    %811 = math.tanh %809 : vector<8x16xf32>
    %812 = arith.mulf %810, %811 : vector<8x16xf32>
    %cst_118 = arith.constant dense<0.000000e+00> : vector<8x64xf32>
    %813 = tpu.matmul %812, %720, %cst_118 {dimension_numbers = #tpu.dot_dimension_numbers<[1], [0], [0], [1], [0, 0, 1, 1], [], []>} : vector<8x16xf32>, vector<16x64xf32>, vector<8x64xf32> -> vector<8x64xf32>
    %814 = arith.addf %719, %813 : vector<8x64xf32>
    %815 = vector.extract_strided_slice %814 {offsets = [0, 0], sizes = [8, 48], strides = [1, 1]} : vector<8x64xf32> to vector<8x48xf32>
    %816 = arith.negf %815 : vector<8x48xf32>
    %817 = math.exp %816 : vector<8x48xf32>
    %cst_119 = arith.constant 1.000000e+00 : f32
    %818 = vector.broadcast %cst_119 : f32 to vector<8x48xf32>
    %819 = arith.addf %818, %817 : vector<8x48xf32>
    %820 = arith.divf %818, %819 : vector<8x48xf32>
    %821 = vector.extract_strided_slice %814 {offsets = [0, 48], sizes = [8, 16], strides = [1, 1]} : vector<8x64xf32> to vector<8x16xf32>
    %822 = math.tanh %821 : vector<8x16xf32>
    %823 = vector.extract_strided_slice %820 {offsets = [0, 16], sizes = [8, 16], strides = [1, 1]} : vector<8x48xf32> to vector<8x16xf32>
    %824 = arith.mulf %823, %809 : vector<8x16xf32>
    %825 = vector.extract_strided_slice %820 {offsets = [0, 0], sizes = [8, 16], strides = [1, 1]} : vector<8x48xf32> to vector<8x16xf32>
    %826 = arith.mulf %825, %822 : vector<8x16xf32>
    %827 = arith.addf %824, %826 : vector<8x16xf32>
    %828 = vector.extract_strided_slice %820 {offsets = [0, 32], sizes = [8, 16], strides = [1, 1]} : vector<8x48xf32> to vector<8x16xf32>
    %829 = math.tanh %827 : vector<8x16xf32>
    %830 = arith.mulf %828, %829 : vector<8x16xf32>
    %cst_120 = arith.constant dense<0.000000e+00> : vector<8x64xf32>
    %831 = tpu.matmul %830, %720, %cst_120 {dimension_numbers = #tpu.dot_dimension_numbers<[1], [0], [0], [1], [0, 0, 1, 1], [], []>} : vector<8x16xf32>, vector<16x64xf32>, vector<8x64xf32> -> vector<8x64xf32>
    %832 = arith.addf %719, %831 : vector<8x64xf32>
    %833 = vector.extract_strided_slice %832 {offsets = [0, 0], sizes = [8, 48], strides = [1, 1]} : vector<8x64xf32> to vector<8x48xf32>
    %834 = arith.negf %833 : vector<8x48xf32>
    %835 = math.exp %834 : vector<8x48xf32>
    %cst_121 = arith.constant 1.000000e+00 : f32
    %836 = vector.broadcast %cst_121 : f32 to vector<8x48xf32>
    %837 = arith.addf %836, %835 : vector<8x48xf32>
    %838 = arith.divf %836, %837 : vector<8x48xf32>
    %839 = vector.extract_strided_slice %832 {offsets = [0, 48], sizes = [8, 16], strides = [1, 1]} : vector<8x64xf32> to vector<8x16xf32>
    %840 = math.tanh %839 : vector<8x16xf32>
    %841 = vector.extract_strided_slice %838 {offsets = [0, 16], sizes = [8, 16], strides = [1, 1]} : vector<8x48xf32> to vector<8x16xf32>
    %842 = arith.mulf %841, %827 : vector<8x16xf32>
    %843 = vector.extract_strided_slice %838 {offsets = [0, 0], sizes = [8, 16], strides = [1, 1]} : vector<8x48xf32> to vector<8x16xf32>
    %844 = arith.mulf %843, %840 : vector<8x16xf32>
    %845 = arith.addf %842, %844 : vector<8x16xf32>
    %846 = vector.extract_strided_slice %838 {offsets = [0, 32], sizes = [8, 16], strides = [1, 1]} : vector<8x48xf32> to vector<8x16xf32>
    %847 = math.tanh %845 : vector<8x16xf32>
    %848 = arith.mulf %846, %847 : vector<8x16xf32>
    %cst_122 = arith.constant dense<0.000000e+00> : vector<8x64xf32>
    %849 = tpu.matmul %848, %720, %cst_122 {dimension_numbers = #tpu.dot_dimension_numbers<[1], [0], [0], [1], [0, 0, 1, 1], [], []>} : vector<8x16xf32>, vector<16x64xf32>, vector<8x64xf32> -> vector<8x64xf32>
    %850 = arith.addf %719, %849 : vector<8x64xf32>
    %851 = vector.extract_strided_slice %850 {offsets = [0, 0], sizes = [8, 48], strides = [1, 1]} : vector<8x64xf32> to vector<8x48xf32>
    %852 = arith.negf %851 : vector<8x48xf32>
    %853 = math.exp %852 : vector<8x48xf32>
    %cst_123 = arith.constant 1.000000e+00 : f32
    %854 = vector.broadcast %cst_123 : f32 to vector<8x48xf32>
    %855 = arith.addf %854, %853 : vector<8x48xf32>
    %856 = arith.divf %854, %855 : vector<8x48xf32>
    %857 = vector.extract_strided_slice %850 {offsets = [0, 48], sizes = [8, 16], strides = [1, 1]} : vector<8x64xf32> to vector<8x16xf32>
    %858 = math.tanh %857 : vector<8x16xf32>
    %859 = vector.extract_strided_slice %856 {offsets = [0, 16], sizes = [8, 16], strides = [1, 1]} : vector<8x48xf32> to vector<8x16xf32>
    %860 = arith.mulf %859, %845 : vector<8x16xf32>
    %861 = vector.extract_strided_slice %856 {offsets = [0, 0], sizes = [8, 16], strides = [1, 1]} : vector<8x48xf32> to vector<8x16xf32>
    %862 = arith.mulf %861, %858 : vector<8x16xf32>
    %863 = arith.addf %860, %862 : vector<8x16xf32>
    %864 = vector.extract_strided_slice %856 {offsets = [0, 32], sizes = [8, 16], strides = [1, 1]} : vector<8x48xf32> to vector<8x16xf32>
    %865 = math.tanh %863 : vector<8x16xf32>
    %866 = arith.mulf %864, %865 : vector<8x16xf32>
    %c264 = arith.constant 264 : index
    %c0_124 = arith.constant 0 : index
    %867 = vector.load %arg2[%c264, %c0_124] : memref<352x128xf32, #tpu.memory_space<vmem>>, vector<16x64xf32>
    %cst_125 = arith.constant dense<0.000000e+00> : vector<8x64xf32>
    %868 = tpu.matmul %714, %867, %cst_125 {dimension_numbers = #tpu.dot_dimension_numbers<[1], [0], [0], [1], [0, 0, 1, 1], [], []>} : vector<8x16xf32>, vector<16x64xf32>, vector<8x64xf32> -> vector<8x64xf32>
    %c280 = arith.constant 280 : index
    %c0_126 = arith.constant 0 : index
    %869 = vector.load %arg2[%c280, %c0_126] : memref<352x128xf32, #tpu.memory_space<vmem>>, vector<1x64xf32>
    %870 = vector.broadcast %869 : vector<1x64xf32> to vector<8x64xf32>
    %871 = arith.addf %868, %870 : vector<8x64xf32>
    %872 = vector.extract_strided_slice %871 {offsets = [0, 0], sizes = [8, 48], strides = [1, 1]} : vector<8x64xf32> to vector<8x48xf32>
    %873 = arith.negf %872 : vector<8x48xf32>
    %874 = math.exp %873 : vector<8x48xf32>
    %cst_127 = arith.constant 1.000000e+00 : f32
    %875 = vector.broadcast %cst_127 : f32 to vector<8x48xf32>
    %876 = arith.addf %875, %874 : vector<8x48xf32>
    %877 = arith.divf %875, %876 : vector<8x48xf32>
    %878 = vector.extract_strided_slice %871 {offsets = [0, 48], sizes = [8, 16], strides = [1, 1]} : vector<8x64xf32> to vector<8x16xf32>
    %879 = math.tanh %878 : vector<8x16xf32>
    %880 = vector.extract_strided_slice %877 {offsets = [0, 32], sizes = [8, 16], strides = [1, 1]} : vector<8x48xf32> to vector<8x16xf32>
    %881 = vector.extract_strided_slice %877 {offsets = [0, 0], sizes = [8, 16], strides = [1, 1]} : vector<8x48xf32> to vector<8x16xf32>
    %882 = arith.mulf %881, %879 : vector<8x16xf32>
    %883 = math.tanh %882 : vector<8x16xf32>
    %884 = arith.mulf %880, %883 : vector<8x16xf32>
    %885 = tpu.concatenate %866, %884 in 1 : vector<8x16xf32>, vector<8x16xf32> -> vector<8x32xf32>
    %c288 = arith.constant 288 : index
    %c0_128 = arith.constant 0 : index
    %886 = vector.load %arg2[%c288, %c0_128] : memref<352x128xf32, #tpu.memory_space<vmem>>, vector<32x32xf32>
    %cst_129 = arith.constant dense<0.000000e+00> : vector<8x32xf32>
    %887 = tpu.matmul %885, %886, %cst_129 {dimension_numbers = #tpu.dot_dimension_numbers<[1], [0], [0], [1], [0, 0, 1, 1], [], []>} : vector<8x32xf32>, vector<32x32xf32>, vector<8x32xf32> -> vector<8x32xf32>
    %c328 = arith.constant 328 : index
    %c0_130 = arith.constant 0 : index
    %888 = vector.load %arg2[%c328, %c0_130] : memref<352x128xf32, #tpu.memory_space<vmem>>, vector<1x32xf32>
    %889 = vector.broadcast %888 : vector<1x32xf32> to vector<8x32xf32>
    %890 = arith.addf %887, %889 : vector<8x32xf32>
    %c320 = arith.constant 320 : index
    %c0_131 = arith.constant 0 : index
    %891 = vector.load %arg2[%c320, %c0_131] : memref<352x128xf32, #tpu.memory_space<vmem>>, vector<8x32xf32>
    %cst_132 = arith.constant 0.000000e+00 : f32
    %892 = vector.broadcast %cst_132 : f32 to vector<8x8xf32>
    %cst_133 = arith.constant 0.000000e+00 : f32
    %893 = vector.broadcast %cst_133 : f32 to vector<8x8xf32>
    %cst_134 = arith.constant dense<0.000000e+00> : vector<8x32xf32>
    %894 = tpu.matmul %892, %891, %cst_134 {dimension_numbers = #tpu.dot_dimension_numbers<[1], [0], [0], [1], [0, 0, 1, 1], [], []>} : vector<8x8xf32>, vector<8x32xf32>, vector<8x32xf32> -> vector<8x32xf32>
    %895 = arith.addf %890, %894 : vector<8x32xf32>
    %896 = vector.extract_strided_slice %895 {offsets = [0, 0], sizes = [8, 24], strides = [1, 1]} : vector<8x32xf32> to vector<8x24xf32>
    %897 = arith.negf %896 : vector<8x24xf32>
    %898 = math.exp %897 : vector<8x24xf32>
    %cst_135 = arith.constant 1.000000e+00 : f32
    %899 = vector.broadcast %cst_135 : f32 to vector<8x24xf32>
    %900 = arith.addf %899, %898 : vector<8x24xf32>
    %901 = arith.divf %899, %900 : vector<8x24xf32>
    %902 = vector.extract_strided_slice %895 {offsets = [0, 24], sizes = [8, 8], strides = [1, 1]} : vector<8x32xf32> to vector<8x8xf32>
    %903 = math.tanh %902 : vector<8x8xf32>
    %904 = vector.extract_strided_slice %901 {offsets = [0, 8], sizes = [8, 8], strides = [1, 1]} : vector<8x24xf32> to vector<8x8xf32>
    %905 = arith.mulf %904, %893 : vector<8x8xf32>
    %906 = vector.extract_strided_slice %901 {offsets = [0, 0], sizes = [8, 8], strides = [1, 1]} : vector<8x24xf32> to vector<8x8xf32>
    %907 = arith.mulf %906, %903 : vector<8x8xf32>
    %908 = arith.addf %905, %907 : vector<8x8xf32>
    %909 = vector.extract_strided_slice %901 {offsets = [0, 16], sizes = [8, 8], strides = [1, 1]} : vector<8x24xf32> to vector<8x8xf32>
    %910 = math.tanh %908 : vector<8x8xf32>
    %911 = arith.mulf %909, %910 : vector<8x8xf32>
    %cst_136 = arith.constant dense<0.000000e+00> : vector<8x32xf32>
    %912 = tpu.matmul %911, %891, %cst_136 {dimension_numbers = #tpu.dot_dimension_numbers<[1], [0], [0], [1], [0, 0, 1, 1], [], []>} : vector<8x8xf32>, vector<8x32xf32>, vector<8x32xf32> -> vector<8x32xf32>
    %913 = arith.addf %890, %912 : vector<8x32xf32>
    %914 = vector.extract_strided_slice %913 {offsets = [0, 0], sizes = [8, 24], strides = [1, 1]} : vector<8x32xf32> to vector<8x24xf32>
    %915 = arith.negf %914 : vector<8x24xf32>
    %916 = math.exp %915 : vector<8x24xf32>
    %cst_137 = arith.constant 1.000000e+00 : f32
    %917 = vector.broadcast %cst_137 : f32 to vector<8x24xf32>
    %918 = arith.addf %917, %916 : vector<8x24xf32>
    %919 = arith.divf %917, %918 : vector<8x24xf32>
    %920 = vector.extract_strided_slice %913 {offsets = [0, 24], sizes = [8, 8], strides = [1, 1]} : vector<8x32xf32> to vector<8x8xf32>
    %921 = math.tanh %920 : vector<8x8xf32>
    %922 = vector.extract_strided_slice %919 {offsets = [0, 8], sizes = [8, 8], strides = [1, 1]} : vector<8x24xf32> to vector<8x8xf32>
    %923 = arith.mulf %922, %908 : vector<8x8xf32>
    %924 = vector.extract_strided_slice %919 {offsets = [0, 0], sizes = [8, 8], strides = [1, 1]} : vector<8x24xf32> to vector<8x8xf32>
    %925 = arith.mulf %924, %921 : vector<8x8xf32>
    %926 = arith.addf %923, %925 : vector<8x8xf32>
    %927 = vector.extract_strided_slice %919 {offsets = [0, 16], sizes = [8, 8], strides = [1, 1]} : vector<8x24xf32> to vector<8x8xf32>
    %928 = math.tanh %926 : vector<8x8xf32>
    %929 = arith.mulf %927, %928 : vector<8x8xf32>
    %cst_138 = arith.constant dense<0.000000e+00> : vector<8x32xf32>
    %930 = tpu.matmul %929, %891, %cst_138 {dimension_numbers = #tpu.dot_dimension_numbers<[1], [0], [0], [1], [0, 0, 1, 1], [], []>} : vector<8x8xf32>, vector<8x32xf32>, vector<8x32xf32> -> vector<8x32xf32>
    %931 = arith.addf %890, %930 : vector<8x32xf32>
    %932 = vector.extract_strided_slice %931 {offsets = [0, 0], sizes = [8, 24], strides = [1, 1]} : vector<8x32xf32> to vector<8x24xf32>
    %933 = arith.negf %932 : vector<8x24xf32>
    %934 = math.exp %933 : vector<8x24xf32>
    %cst_139 = arith.constant 1.000000e+00 : f32
    %935 = vector.broadcast %cst_139 : f32 to vector<8x24xf32>
    %936 = arith.addf %935, %934 : vector<8x24xf32>
    %937 = arith.divf %935, %936 : vector<8x24xf32>
    %938 = vector.extract_strided_slice %931 {offsets = [0, 24], sizes = [8, 8], strides = [1, 1]} : vector<8x32xf32> to vector<8x8xf32>
    %939 = math.tanh %938 : vector<8x8xf32>
    %940 = vector.extract_strided_slice %937 {offsets = [0, 8], sizes = [8, 8], strides = [1, 1]} : vector<8x24xf32> to vector<8x8xf32>
    %941 = arith.mulf %940, %926 : vector<8x8xf32>
    %942 = vector.extract_strided_slice %937 {offsets = [0, 0], sizes = [8, 8], strides = [1, 1]} : vector<8x24xf32> to vector<8x8xf32>
    %943 = arith.mulf %942, %939 : vector<8x8xf32>
    %944 = arith.addf %941, %943 : vector<8x8xf32>
    %945 = vector.extract_strided_slice %937 {offsets = [0, 16], sizes = [8, 8], strides = [1, 1]} : vector<8x24xf32> to vector<8x8xf32>
    %946 = math.tanh %944 : vector<8x8xf32>
    %947 = arith.mulf %945, %946 : vector<8x8xf32>
    %cst_140 = arith.constant dense<0.000000e+00> : vector<8x32xf32>
    %948 = tpu.matmul %947, %891, %cst_140 {dimension_numbers = #tpu.dot_dimension_numbers<[1], [0], [0], [1], [0, 0, 1, 1], [], []>} : vector<8x8xf32>, vector<8x32xf32>, vector<8x32xf32> -> vector<8x32xf32>
    %949 = arith.addf %890, %948 : vector<8x32xf32>
    %950 = vector.extract_strided_slice %949 {offsets = [0, 0], sizes = [8, 24], strides = [1, 1]} : vector<8x32xf32> to vector<8x24xf32>
    %951 = arith.negf %950 : vector<8x24xf32>
    %952 = math.exp %951 : vector<8x24xf32>
    %cst_141 = arith.constant 1.000000e+00 : f32
    %953 = vector.broadcast %cst_141 : f32 to vector<8x24xf32>
    %954 = arith.addf %953, %952 : vector<8x24xf32>
    %955 = arith.divf %953, %954 : vector<8x24xf32>
    %956 = vector.extract_strided_slice %949 {offsets = [0, 24], sizes = [8, 8], strides = [1, 1]} : vector<8x32xf32> to vector<8x8xf32>
    %957 = math.tanh %956 : vector<8x8xf32>
    %958 = vector.extract_strided_slice %955 {offsets = [0, 8], sizes = [8, 8], strides = [1, 1]} : vector<8x24xf32> to vector<8x8xf32>
    %959 = arith.mulf %958, %944 : vector<8x8xf32>
    %960 = vector.extract_strided_slice %955 {offsets = [0, 0], sizes = [8, 8], strides = [1, 1]} : vector<8x24xf32> to vector<8x8xf32>
    %961 = arith.mulf %960, %957 : vector<8x8xf32>
    %962 = arith.addf %959, %961 : vector<8x8xf32>
    %963 = vector.extract_strided_slice %955 {offsets = [0, 16], sizes = [8, 8], strides = [1, 1]} : vector<8x24xf32> to vector<8x8xf32>
    %964 = math.tanh %962 : vector<8x8xf32>
    %965 = arith.mulf %963, %964 : vector<8x8xf32>
    %cst_142 = arith.constant dense<0.000000e+00> : vector<8x32xf32>
    %966 = tpu.matmul %965, %891, %cst_142 {dimension_numbers = #tpu.dot_dimension_numbers<[1], [0], [0], [1], [0, 0, 1, 1], [], []>} : vector<8x8xf32>, vector<8x32xf32>, vector<8x32xf32> -> vector<8x32xf32>
    %967 = arith.addf %890, %966 : vector<8x32xf32>
    %968 = vector.extract_strided_slice %967 {offsets = [0, 0], sizes = [8, 24], strides = [1, 1]} : vector<8x32xf32> to vector<8x24xf32>
    %969 = arith.negf %968 : vector<8x24xf32>
    %970 = math.exp %969 : vector<8x24xf32>
    %cst_143 = arith.constant 1.000000e+00 : f32
    %971 = vector.broadcast %cst_143 : f32 to vector<8x24xf32>
    %972 = arith.addf %971, %970 : vector<8x24xf32>
    %973 = arith.divf %971, %972 : vector<8x24xf32>
    %974 = vector.extract_strided_slice %967 {offsets = [0, 24], sizes = [8, 8], strides = [1, 1]} : vector<8x32xf32> to vector<8x8xf32>
    %975 = math.tanh %974 : vector<8x8xf32>
    %976 = vector.extract_strided_slice %973 {offsets = [0, 8], sizes = [8, 8], strides = [1, 1]} : vector<8x24xf32> to vector<8x8xf32>
    %977 = arith.mulf %976, %962 : vector<8x8xf32>
    %978 = vector.extract_strided_slice %973 {offsets = [0, 0], sizes = [8, 8], strides = [1, 1]} : vector<8x24xf32> to vector<8x8xf32>
    %979 = arith.mulf %978, %975 : vector<8x8xf32>
    %980 = arith.addf %977, %979 : vector<8x8xf32>
    %981 = vector.extract_strided_slice %973 {offsets = [0, 16], sizes = [8, 8], strides = [1, 1]} : vector<8x24xf32> to vector<8x8xf32>
    %982 = math.tanh %980 : vector<8x8xf32>
    %983 = arith.mulf %981, %982 : vector<8x8xf32>
    %cst_144 = arith.constant dense<0.000000e+00> : vector<8x32xf32>
    %984 = tpu.matmul %983, %891, %cst_144 {dimension_numbers = #tpu.dot_dimension_numbers<[1], [0], [0], [1], [0, 0, 1, 1], [], []>} : vector<8x8xf32>, vector<8x32xf32>, vector<8x32xf32> -> vector<8x32xf32>
    %985 = arith.addf %890, %984 : vector<8x32xf32>
    %986 = vector.extract_strided_slice %985 {offsets = [0, 0], sizes = [8, 24], strides = [1, 1]} : vector<8x32xf32> to vector<8x24xf32>
    %987 = arith.negf %986 : vector<8x24xf32>
    %988 = math.exp %987 : vector<8x24xf32>
    %cst_145 = arith.constant 1.000000e+00 : f32
    %989 = vector.broadcast %cst_145 : f32 to vector<8x24xf32>
    %990 = arith.addf %989, %988 : vector<8x24xf32>
    %991 = arith.divf %989, %990 : vector<8x24xf32>
    %992 = vector.extract_strided_slice %985 {offsets = [0, 24], sizes = [8, 8], strides = [1, 1]} : vector<8x32xf32> to vector<8x8xf32>
    %993 = math.tanh %992 : vector<8x8xf32>
    %994 = vector.extract_strided_slice %991 {offsets = [0, 8], sizes = [8, 8], strides = [1, 1]} : vector<8x24xf32> to vector<8x8xf32>
    %995 = arith.mulf %994, %980 : vector<8x8xf32>
    %996 = vector.extract_strided_slice %991 {offsets = [0, 0], sizes = [8, 8], strides = [1, 1]} : vector<8x24xf32> to vector<8x8xf32>
    %997 = arith.mulf %996, %993 : vector<8x8xf32>
    %998 = arith.addf %995, %997 : vector<8x8xf32>
    %999 = vector.extract_strided_slice %991 {offsets = [0, 16], sizes = [8, 8], strides = [1, 1]} : vector<8x24xf32> to vector<8x8xf32>
    %1000 = math.tanh %998 : vector<8x8xf32>
    %1001 = arith.mulf %999, %1000 : vector<8x8xf32>
    %cst_146 = arith.constant dense<0.000000e+00> : vector<8x32xf32>
    %1002 = tpu.matmul %1001, %891, %cst_146 {dimension_numbers = #tpu.dot_dimension_numbers<[1], [0], [0], [1], [0, 0, 1, 1], [], []>} : vector<8x8xf32>, vector<8x32xf32>, vector<8x32xf32> -> vector<8x32xf32>
    %1003 = arith.addf %890, %1002 : vector<8x32xf32>
    %1004 = vector.extract_strided_slice %1003 {offsets = [0, 0], sizes = [8, 24], strides = [1, 1]} : vector<8x32xf32> to vector<8x24xf32>
    %1005 = arith.negf %1004 : vector<8x24xf32>
    %1006 = math.exp %1005 : vector<8x24xf32>
    %cst_147 = arith.constant 1.000000e+00 : f32
    %1007 = vector.broadcast %cst_147 : f32 to vector<8x24xf32>
    %1008 = arith.addf %1007, %1006 : vector<8x24xf32>
    %1009 = arith.divf %1007, %1008 : vector<8x24xf32>
    %1010 = vector.extract_strided_slice %1003 {offsets = [0, 24], sizes = [8, 8], strides = [1, 1]} : vector<8x32xf32> to vector<8x8xf32>
    %1011 = math.tanh %1010 : vector<8x8xf32>
    %1012 = vector.extract_strided_slice %1009 {offsets = [0, 8], sizes = [8, 8], strides = [1, 1]} : vector<8x24xf32> to vector<8x8xf32>
    %1013 = arith.mulf %1012, %998 : vector<8x8xf32>
    %1014 = vector.extract_strided_slice %1009 {offsets = [0, 0], sizes = [8, 8], strides = [1, 1]} : vector<8x24xf32> to vector<8x8xf32>
    %1015 = arith.mulf %1014, %1011 : vector<8x8xf32>
    %1016 = arith.addf %1013, %1015 : vector<8x8xf32>
    %1017 = vector.extract_strided_slice %1009 {offsets = [0, 16], sizes = [8, 8], strides = [1, 1]} : vector<8x24xf32> to vector<8x8xf32>
    %1018 = math.tanh %1016 : vector<8x8xf32>
    %1019 = arith.mulf %1017, %1018 : vector<8x8xf32>
    %cst_148 = arith.constant dense<0.000000e+00> : vector<8x32xf32>
    %1020 = tpu.matmul %1019, %891, %cst_148 {dimension_numbers = #tpu.dot_dimension_numbers<[1], [0], [0], [1], [0, 0, 1, 1], [], []>} : vector<8x8xf32>, vector<8x32xf32>, vector<8x32xf32> -> vector<8x32xf32>
    %1021 = arith.addf %890, %1020 : vector<8x32xf32>
    %1022 = vector.extract_strided_slice %1021 {offsets = [0, 0], sizes = [8, 24], strides = [1, 1]} : vector<8x32xf32> to vector<8x24xf32>
    %1023 = arith.negf %1022 : vector<8x24xf32>
    %1024 = math.exp %1023 : vector<8x24xf32>
    %cst_149 = arith.constant 1.000000e+00 : f32
    %1025 = vector.broadcast %cst_149 : f32 to vector<8x24xf32>
    %1026 = arith.addf %1025, %1024 : vector<8x24xf32>
    %1027 = arith.divf %1025, %1026 : vector<8x24xf32>
    %1028 = vector.extract_strided_slice %1021 {offsets = [0, 24], sizes = [8, 8], strides = [1, 1]} : vector<8x32xf32> to vector<8x8xf32>
    %1029 = math.tanh %1028 : vector<8x8xf32>
    %1030 = vector.extract_strided_slice %1027 {offsets = [0, 8], sizes = [8, 8], strides = [1, 1]} : vector<8x24xf32> to vector<8x8xf32>
    %1031 = arith.mulf %1030, %1016 : vector<8x8xf32>
    %1032 = vector.extract_strided_slice %1027 {offsets = [0, 0], sizes = [8, 8], strides = [1, 1]} : vector<8x24xf32> to vector<8x8xf32>
    %1033 = arith.mulf %1032, %1029 : vector<8x8xf32>
    %1034 = arith.addf %1031, %1033 : vector<8x8xf32>
    %1035 = vector.extract_strided_slice %1027 {offsets = [0, 16], sizes = [8, 8], strides = [1, 1]} : vector<8x24xf32> to vector<8x8xf32>
    %1036 = math.tanh %1034 : vector<8x8xf32>
    %1037 = arith.mulf %1035, %1036 : vector<8x8xf32>
    %1038 = tpu.concatenate %911, %929, %947, %965, %983, %1001, %1019, %1037 in 0 : vector<8x8xf32>, vector<8x8xf32>, vector<8x8xf32>, vector<8x8xf32>, vector<8x8xf32>, vector<8x8xf32>, vector<8x8xf32>, vector<8x8xf32> -> vector<64x8xf32>
    %c336 = arith.constant 336 : index
    %c0_150 = arith.constant 0 : index
    %1039 = vector.load %arg2[%c336, %c0_150] : memref<352x128xf32, #tpu.memory_space<vmem>>, vector<8x8xf32>
    %cst_151 = arith.constant dense<0.000000e+00> : vector<64x8xf32>
    %1040 = tpu.matmul %1038, %1039, %cst_151 {dimension_numbers = #tpu.dot_dimension_numbers<[1], [0], [0], [1], [0, 0, 1, 1], [], []>} : vector<64x8xf32>, vector<8x8xf32>, vector<64x8xf32> -> vector<64x8xf32>
    %c344 = arith.constant 344 : index
    %c0_152 = arith.constant 0 : index
    %1041 = vector.load %arg2[%c344, %c0_152] : memref<352x128xf32, #tpu.memory_space<vmem>>, vector<1x8xf32>
    %1042 = vector.broadcast %1041 : vector<1x8xf32> to vector<64x8xf32>
    %1043 = arith.addf %1040, %1042 : vector<64x8xf32>
    %1044 = arith.negf %1043 : vector<64x8xf32>
    %1045 = math.exp %1044 : vector<64x8xf32>
    %cst_153 = arith.constant 1.000000e+00 : f32
    %1046 = vector.broadcast %cst_153 : f32 to vector<64x8xf32>
    %1047 = arith.addf %1046, %1045 : vector<64x8xf32>
    %1048 = arith.divf %1046, %1047 : vector<64x8xf32>
    %c0_154 = arith.constant 0 : index
    %c0_155 = arith.constant 0 : index
    %1049 = vector.load %arg3[%c0_154, %c0_155] : memref<64x8xf32, #tpu.memory_space<vmem>>, vector<64x8xf32>
    tpu.vector_store %arg3[%c0_154, %c0_155], %1048 {strides = array<i32>} : memref<64x8xf32, #tpu.memory_space<vmem>>, vector<64x8xf32>,
    return
  }
  func.func @transform_0(%arg0: i32) -> (i32, i32) {
    %c0_i32 = arith.constant 0 : i32
    %c0_i32_0 = arith.constant 0 : i32
    %c0_i32_1 = arith.constant 0 : i32
    return %c0_i32, %c0_i32_0 : i32, i32
  }
  func.func @transform_1(%arg0: i32) -> (i32, i32) {
    %c0_i32 = arith.constant 0 : i32
    %c0_i32_0 = arith.constant 0 : i32
    %c0_i32_1 = arith.constant 0 : i32
    return %c0_i32, %c0_i32_0 : i32, i32
  }
  func.func @transform_2(%arg0: i32) -> (i32, i32) {
    %c0_i32 = arith.constant 0 : i32
    %c0_i32_0 = arith.constant 0 : i32
    %c0_i32_1 = arith.constant 0 : i32
    return %c0_i32, %c0_i32_0 : i32, i32
  }
}

</mosaic_0001>

<bundles_post_ra>
// kernel: model_forward.1
= control target key start
LH: loop header
LB: loop body
LE: loop exit
PB: predicated region body
PF: predicated region fallthrough
CT: control target
= control target key end

     0   :  { %vm25_vm0 = vcmask 64512   ;;  %v7446_v6 = vmov 0.0   ;;  %vm7447_vm1 = vmmov 0   ;;  %s7448_s29 = smov 80   ;;  %s7449_s30 = smov 16   ;;  %vm157_vm2 = vcmask 130048   ;;  %s8478_s1 = inlined_call_operand.vmem [shape: f32[352,128], index: 1, kind: input, shape index: {}]   ;;  %s8479_s0 = inlined_call_operand.vmem [shape: f32[64,8], index: 0, kind: input, shape index: {}]   ;;  %s8480_s2 = inlined_call_operand.vmem [shape: f32[64,8], index: 2, kind: output, shape index: {}]  }
   0x1   :  { %v19_v0 = vld [vmem:[%s8478_s1] sm:$0xff]  ;;  %v16_v2 = vld [vmem:[%s8479_s0 + $0x28] sm:$0xff]  ;;  %v7484_v3 = vld [vmem:[%s8478_s1 + $0x10] sm:$0xff]  ;;  %s7450_s3 = smov 96   ;;  %s7451_s11 = smov 32   ;;  %vm1068_vm3 = vcmask 261120  }
   0x2   :  { %v15_v1 = vld [vmem:[%s8479_s0 + $0x20] sm:$0xff]  ;;  %6962 = vmatprep.subr.mxu1 %v19_v0  ;;  %6543 = vmatprep.subr.mxu0 %v19_v0  ;;  %v17_v5 = vld [vmem:[%s8479_s0 + $0x30] sm:$0xff]  ;;  %v12_v7 = vld [vmem:[%s8479_s0 + $0x8] sm:$0xff]  ;;  %s7452_s24 = smov 112   ;;  %s7453_s22 = smov 104  }
   0x3   :  { %6551 = vmatprep.mubr.msk.f32.mxu1 %vm25_vm0, %v15_v1  ;;  %6963 = vmatpush3.msra.mxu1 %v19_v0  ;;  %v11_v4 = vld [vmem:[%s8479_s0] sm:$0xff]  ;;  %v7501_v8 = vld [vmem:[%s8479_s0 + $0x38] sm:$0xff]  ;;  %v7508_v9 = vld [vmem:[%s8478_s1 + $0x8] sm:$0xff]  ;;  %s7454_s23 = smov 8   ;;  %s7455_s14 = smov 120  }
   0x4   :  { %6552 = vmatmul.mubr.msk.f32.vlgmr.msra.gmra.mxu1 %vm25_vm0, %v16_v2  ;;  %6557 = vmatprep.subr.mxu1 %v7446_v6  ;;  %v7539_v15 = vld [vmem:[%s8478_s1 + $0x18] ss:$0 sm:$0xff]  ;;  %v13_v49 = vld [vmem:[%s8479_s0 + $0x10] sm:$0xff] }
   0x5   :  { %6558 = vmatpush3.msra.mxu1 %v7484_v3  ;;  %6544 = vmatpush3.msra.mxu0 %v19_v0  ;;  %v14_v50 = vld [vmem:[%s8479_s0 + $0x18] sm:$0xff] }
   0x6   :  { %6545 = vmatprep.mubr.msk.f32.mxu0 %vm25_vm0, %v11_v4  ;;  %6554 = vmatprep.mubr.msk.f32.mxu1 %vm25_vm0, %v17_v5 }
   0x7   :  { %6546 = vmatmul.mubr.msk.f32.vlgmr.msra.gmra.mxu0 %vm25_vm0, %v12_v7  ;;  %6559 = vmatprep.subr.mxu1 %v7446_v6 }
   0x8   :  { %6555 = vmatmul.mubr.msk.f32.gmra.mxu1 %vm25_vm0, %v7501_v8  ;;  %6585 = vmatprep.subr.mxu0 %v7446_v6 }
   0x9   :  { %6560 = vmatpush3.msra.mxu1 %v7508_v9  ;;  %6561 = vmatprep.mubr.msk.f32.mxu1 %vm7447_vm1, %v7446_v6 }
   0xa   :  { %6564 = vmatprep.subr.mxu1 %v7446_v6  ;;  %6586 = vmatpush3.msra.mxu0 %v7484_v3 }
   0xb   :  { %6587 = vmatprep.subr.mxu0 %v7446_v6  ;;  %6548 = vmatprep.mubr.msk.f32.mxu0 %vm25_vm0, %v13_v49 }
   0xc   :  { %6562 = vmatmul.mubr.f32.vlgmr.msra.gmra.mxu1 %v7446_v6  ;;  %6588 = vmatpush3.msra.mxu0 %v7508_v9 }
   0xd   :  { %6565 = vmatpush3.msra.mxu1 %v7484_v3  ;;  %6568 = vmatprep.mubr.msk.f32.mxu1 %vm7447_vm1, %v7446_v6 }
   0xe   :  { %6566 = vmatprep.subr.mxu1 %v7446_v6  ;;  %6599 = vmatprep.subr.mxu0 %v7446_v6 }
   0xf   :  { %6567 = vmatpush3.msra.mxu1 %v7508_v9  ;;  %6549 = vmatmul.mubr.msk.f32.gmra.mxu0 %vm25_vm0, %v14_v50 }
  0x10   :  { %6571 = vmatprep.subr.mxu1 %v7446_v6  ;;  %6589 = vmatprep.mubr.msk.f32.mxu0 %vm7447_vm1, %v7446_v6 }
  0xc4   :  { %v7530_v10 = vpop.f32.mrf.mxu1 }
  0xc6   :  { %v7532_v11 = vpop.f32.mrf.mxu1 }
  0xc7   :  { %v6547_v12 = vpop.f32.mrf.mxu0 }
  0xc8   :  { %v7534_v13 = vpop.f32.mrf.mxu1  ;;  %v122_v35 = vadd.f32 %v6547_v12, %v7539_v15 }
  0xc9   :  { %v116_v14 = vpop.f32.mrf.mxu0 }
  0xca   :  { %v7541_v16 = vpop.f32.mrf.mxu1  ;;  %v117_v17 = vadd.f32 %v7539_v15, %v116_v14 }
  0xcc   :  { %v227_v18 = vpop.f32.mrf.mxu1 }
  0xcd   :  { %v231_v19 = vadd.f32 %v227_v18, %v117_v17 }
  0xce   :  { %v6563_v20 = vpop.f32.mrf.mxu1 }
  0xcf   :  { %6974 = vtanh.f32 %v231_v19  ;;  %v6194_v22 = vmul.f32 -1.442695, %v231_v19  ;;  %v6550_v55 = vpop.f32.mrf.mxu0 }
  0xd0   :  { %v132_v20 = vadd.f32 %v6550_v55, %v7539_v15  ;;  %v142_v55 = vadd.f32 %v7530_v10, %v7539_v15 }
  0xd1   :  { %6976 = vpow2.f32 %v6194_v22  ;;  %v126_v56 = vpop.f32.mrf.mxu0 }
  0xd2   :  { %v127_v57 = vadd.f32 %v7539_v15, %v126_v56 }
  0xdc   :  { %v6975_v21 = vpop.eup %6974 }
  0xdd   :  { %241 = vrot.lane.b32.xlu0 %v6975_v21, %s7448_s29 }
  0xde   :  { %v6977_v23 = vpop.eup %6976 }
  0xdf   :  { %v235_v24 = vadd.f32 1.0, %v6977_v23 }
  0xe1   :  { %6978 = vrcp.f32 %v235_v24 }
  0xee   :  { %v6979_v25 = vpop.eup %6978 }
  0xef   :  { %v239_v28 = vmul.f32 0.0, %v6979_v25 }
 0x14f   :  { %v242_v26 = vpop.permute.xlu0 %241 }
 0x150   :  { %v244_v27 = vmul.f32 %v6979_v25, %v242_v26 }
 0x152   :  { %246 = vrot.lane.b32.xlu0 %v244_v27, %s7449_s30 }
 0x1c4   :  { %v247_v29 = vpop.permute.xlu0 %246 }
 0x1c5   :  { %v249_v30 = vadd.f32 %v247_v29, %v239_v28 }
 0x1c7   :  { %6980 = vtanh.f32 %v249_v30 }
 0x1d4   :  { %v6981_v31 = vpop.eup %6980 }
 0x1d5   :  { %252 = vrot.lane.b32.xlu1 %v6981_v31, %s7449_s30 }
 0x247   :  { %v253_v32 = vpop.permute.xlu1 %252 }
 0x248   :  { %v255_v33 = vmul.f32 %v6979_v25, %v253_v32 }
 0x24a   :  { %257 = vrot.lane.b32.xlu1 %v255_v33, %s7450_s3 }
 0x2bc   :  { %v258_v34 = vpop.permute.xlu1 %257 }
 0x2bd   :  { %6569 = vmatmul.mubr.msk.f32.vlgmr.msra.gmra.mxu1 %vm157_vm2, %v258_v34 }
 0x2be   :  { %6572 = vmatpush3.msra.mxu1 %v7484_v3  ;;  %6575 = vmatprep.mubr.msk.f32.mxu1 %vm7447_vm1, %v7446_v6 }
 0x2bf   :  { %6573 = vmatprep.subr.mxu1 %v7446_v6 }
 0x2c0   :  { %6574 = vmatpush3.msra.mxu1 %v7508_v9 }
 0x2c1   :  { %6578 = vmatprep.subr.mxu1 %v7446_v6 }
 0x37d   :  { %v327_v36 = vpop.f32.mrf.mxu1 }
 0x37e   :  { %v331_v37 = vadd.f32 %v327_v36, %v122_v35 }
 0x37f   :  { %v6570_v38 = vpop.f32.mrf.mxu1 }
 0x380   :  { %6982 = vtanh.f32 %v331_v37  ;;  %v6196_v40 = vmul.f32 -1.442695, %v331_v37  ;;  %v137_v38 = vadd.f32 %v7539_v15, %v7532_v11 }
 0x382   :  { %6984 = vpow2.f32 %v6196_v40 }
 0x38d   :  { %v6983_v39 = vpop.eup %6982 }
 0x38e   :  { %341 = vrot.lane.b32.xlu0 %v6983_v39, %s7448_s29 }
 0x38f   :  { %v6985_v41 = vpop.eup %6984 }
 0x390   :  { %v335_v42 = vadd.f32 1.0, %v6985_v41 }
 0x392   :  { %6986 = vrcp.f32 %v335_v42 }
 0x39f   :  { %v6987_v43 = vpop.eup %6986 }
 0x3a0   :  { %v339_v46 = vmul.f32 %v6987_v43, %v249_v30 }
 0x400   :  { %v342_v44 = vpop.permute.xlu0 %341 }
 0x401   :  { %v344_v45 = vmul.f32 %v6987_v43, %v342_v44 }
 0x403   :  { %346 = vrot.lane.b32.xlu1 %v344_v45, %s7449_s30 }
 0x475   :  { %v347_v47 = vpop.permute.xlu1 %346 }
 0x476   :  { %v349_v48 = vadd.f32 %v347_v47, %v339_v46 }
 0x478   :  { %6988 = vtanh.f32 %v349_v48 }
 0x485   :  { %v6989_v51 = vpop.eup %6988 }
 0x486   :  { %352 = vrot.lane.b32.xlu0 %v6989_v51, %s7449_s30 }
 0x4f8   :  { %v353_v52 = vpop.permute.xlu0 %352 }
 0x4f9   :  { %v355_v53 = vmul.f32 %v6987_v43, %v353_v52 }
 0x4fb   :  { %357 = vrot.lane.b32.xlu1 %v355_v53, %s7450_s3 }
 0x56d   :  { %v358_v54 = vpop.permute.xlu1 %357 }
 0x56e   :  { %6576 = vmatmul.mubr.msk.f32.vlgmr.msra.gmra.mxu1 %vm157_vm2, %v358_v54 }
 0x56f   :  { %6579 = vmatpush3.msra.mxu1 %v7484_v3  ;;  %6582 = vmatprep.mubr.msk.f32.mxu1 %vm7447_vm1, %v7446_v6 }
 0x570   :  { %6580 = vmatprep.subr.mxu1 %v7446_v6 }
 0x571   :  { %6581 = vmatpush3.msra.mxu1 %v7508_v9 }
 0x572   :  { %6592 = vmatprep.subr.mxu1 %v7446_v6 }
 0x62e   :  { %v427_v58 = vpop.f32.mrf.mxu1 }
 0x62f   :  { %v431_v59 = vadd.f32 %v427_v58, %v127_v57 }
 0x630   :  { %v6577_v60 = vpop.f32.mrf.mxu1 }
 0x631   :  { %6990 = vtanh.f32 %v431_v59  ;;  %v6198_v62 = vmul.f32 -1.442695, %v431_v59 }
 0x633   :  { %6992 = vpow2.f32 %v6198_v62 }
 0x63e   :  { %v6991_v61 = vpop.eup %6990 }
 0x63f   :  { %441 = vrot.lane.b32.xlu0 %v6991_v61, %s7448_s29 }
 0x640   :  { %v6993_v63 = vpop.eup %6992 }
 0x641   :  { %v435_v0 = vadd.f32 1.0, %v6993_v63 }
 0x643   :  { %6994 = vrcp.f32 %v435_v0 }
 0x650   :  { %v6995_v1 = vpop.eup %6994 }
 0x651   :  { %v439_v5 = vmul.f32 %v6995_v1, %v349_v48 }
 0x6b1   :  { %v442_v2 = vpop.permute.xlu0 %441 }
 0x6b2   :  { %v444_v4 = vmul.f32 %v6995_v1, %v442_v2 }
 0x6b4   :  { %446 = vrot.lane.b32.xlu1 %v444_v4, %s7449_s30 }
 0x726   :  { %v447_v7 = vpop.permute.xlu1 %446 }
 0x727   :  { %v449_v12 = vadd.f32 %v447_v7, %v439_v5 }
 0x729   :  { %6996 = vtanh.f32 %v449_v12 }
 0x736   :  { %v6997_v14 = vpop.eup %6996 }
 0x737   :  { %452 = vrot.lane.b32.xlu0 %v6997_v14, %s7449_s30 }
 0x7a9   :  { %v453_v17 = vpop.permute.xlu0 %452 }
 0x7aa   :  { %v455_v18 = vmul.f32 %v6995_v1, %v453_v17 }
 0x7ac   :  { %457 = vrot.lane.b32.xlu1 %v455_v18, %s7450_s3 }
 0x81e   :  { %v458_v19 = vpop.permute.xlu1 %457 }
 0x81f   :  { %6583 = vmatmul.mubr.msk.f32.vlgmr.msra.gmra.mxu1 %vm157_vm2, %v458_v19 }
 0x820   :  { %6593 = vmatpush3.msra.mxu1 %v7484_v3  ;;  %6596 = vmatprep.mubr.msk.f32.mxu1 %vm7447_vm1, %v7446_v6 }
 0x821   :  { %6594 = vmatprep.subr.mxu1 %v7446_v6 }
 0x822   :  { %6595 = vmatpush3.msra.mxu1 %v7508_v9 }
 0x823   :  { %6606 = vmatprep.subr.mxu1 %v7446_v6 }
 0x8df   :  { %v527_v21 = vpop.f32.mrf.mxu1 }
 0x8e0   :  { %v531_v22 = vadd.f32 %v527_v21, %v132_v20 }
 0x8e1   :  { %v6584_v23 = vpop.f32.mrf.mxu1 }
 0x8e2   :  { %6998 = vtanh.f32 %v531_v22  ;;  %v6200_v25 = vmul.f32 -1.442695, %v531_v22 }
 0x8e4   :  { %7000 = vpow2.f32 %v6200_v25 }
 0x8ef   :  { %v6999_v24 = vpop.eup %6998 }
 0x8f0   :  { %541 = vrot.lane.b32.xlu0 %v6999_v24, %s7448_s29 }
 0x8f1   :  { %v7001_v26 = vpop.eup %7000 }
 0x8f2   :  { %v535_v27 = vadd.f32 1.0, %v7001_v26 }
 0x8f4   :  { %7002 = vrcp.f32 %v535_v27 }
 0x901   :  { %v7003_v28 = vpop.eup %7002 }
 0x902   :  { %v539_v31 = vmul.f32 %v7003_v28, %v449_v12  ;;  %v147_v12 = vadd.f32 %v7539_v15, %v7541_v16 }
 0x962   :  { %v542_v29 = vpop.permute.xlu0 %541 }
 0x963   :  { %v544_v30 = vmul.f32 %v7003_v28, %v542_v29  ;;  %v956_v29 = vld [vmem:[%s8478_s1 + $0x20] sm:$0xff] }
 0x965   :  { %546 = vrot.lane.b32.xlu1 %v544_v30, %s7449_s30 }
 0x9d7   :  { %v547_v32 = vpop.permute.xlu1 %546 }
 0x9d8   :  { %v549_v33 = vadd.f32 %v547_v32, %v539_v31 }
 0x9da   :  { %7004 = vtanh.f32 %v549_v33 }
 0x9e7   :  { %v7005_v34 = vpop.eup %7004 }
 0x9e8   :  { %552 = vrot.lane.b32.xlu0 %v7005_v34, %s7449_s30 }
 0xa5a   :  { %v553_v35 = vpop.permute.xlu0 %552 }
 0xa5b   :  { %v555_v36 = vmul.f32 %v7003_v28, %v553_v35  ;;  %v152_v35 = vadd.f32 %v7534_v13, %v7539_v15 }
 0xa5d   :  { %557 = vrot.lane.b32.xlu1 %v555_v36, %s7450_s3 }
 0xacf   :  { %v558_v37 = vpop.permute.xlu1 %557 }
 0xad0   :  { %6590 = vmatmul.mubr.msk.f32.vlgmr.msra.gmra.mxu0 %vm157_vm2, %v558_v37 }
 0xad1   :  { %6600 = vmatpush3.msra.mxu0 %v7484_v3  ;;  %6603 = vmatprep.mubr.msk.f32.mxu0 %vm7447_vm1, %v7446_v6 }
 0xad2   :  { %6601 = vmatprep.subr.mxu0 %v7446_v6 }
 0xad3   :  { %6602 = vmatpush3.msra.mxu0 %v7508_v9 }
 0xad4   :  { %6613 = vmatprep.subr.mxu0 %v7446_v6 }
 0xb90   :  { %v627_v39 = vpop.f32.mrf.mxu0 }
 0xb91   :  { %v631_v40 = vadd.f32 %v627_v39, %v137_v38 }
 0xb92   :  { %v6591_v41 = vpop.f32.mrf.mxu0 }
 0xb93   :  { %7006 = vtanh.f32 %v631_v40  ;;  %v6202_v43 = vmul.f32 -1.442695, %v631_v40 }
 0xb95   :  { %7008 = vpow2.f32 %v6202_v43 }
 0xba0   :  { %v7007_v42 = vpop.eup %7006 }
 0xba1   :  { %641 = vrot.lane.b32.xlu0 %v7007_v42, %s7448_s29 }
 0xba2   :  { %v7009_v44 = vpop.eup %7008 }
 0xba3   :  { %v635_v45 = vadd.f32 1.0, %v7009_v44 }
 0xba5   :  { %7010 = vrcp.f32 %v635_v45 }
 0xbb2   :  { %v7011_v46 = vpop.eup %7010 }
 0xbb3   :  { %v639_v49 = vmul.f32 %v7011_v46, %v549_v33 }
 0xc13   :  { %v642_v47 = vpop.permute.xlu0 %641 }
 0xc14   :  { %v644_v48 = vmul.f32 %v7011_v46, %v642_v47 }
 0xc16   :  { %646 = vrot.lane.b32.xlu1 %v644_v48, %s7449_s30 }
 0xc88   :  { %v647_v50 = vpop.permute.xlu1 %646 }
 0xc89   :  { %v649_v11 = vadd.f32 %v647_v50, %v639_v49 }
 0xc8b   :  { %7012 = vtanh.f32 %v649_v11 }
 0xc98   :  { %v7013_v51 = vpop.eup %7012 }
 0xc99   :  { %652 = vrot.lane.b32.xlu0 %v7013_v51, %s7449_s30 }
 0xd0b   :  { %v653_v52 = vpop.permute.xlu0 %652 }
 0xd0c   :  { %v655_v53 = vmul.f32 %v7011_v46, %v653_v52 }
 0xd0e   :  { %657 = vrot.lane.b32.xlu1 %v655_v53, %s7450_s3 }
 0xd80   :  { %v658_v54 = vpop.permute.xlu1 %657 }
 0xd81   :  { %6597 = vmatmul.mubr.msk.f32.vlgmr.msra.gmra.mxu1 %vm157_vm2, %v658_v54 }
 0xd82   :  { %6607 = vmatpush3.msra.mxu1 %v7484_v3  ;;  %6610 = vmatprep.mubr.msk.f32.mxu1 %vm7447_vm1, %v7446_v6 }
 0xd83   :  { %6608 = vmatprep.subr.mxu1 %v7446_v6 }
 0xd84   :  { %6609 = vmatpush3.msra.mxu1 %v7508_v9 }
 0xd85   :  { %6618 = vmatprep.subr.mxu1 %v7446_v6 }
 0xe41   :  { %v727_v56 = vpop.f32.mrf.mxu1 }
 0xe42   :  { %v731_v57 = vadd.f32 %v727_v56, %v142_v55  ;;  %v1066_v55 = vld [vmem:[%s8478_s1 + $0x68] sm:$0xff] }
 0xe43   :  { %v6598_v58 = vpop.f32.mrf.mxu1  ;;  %v1062_v56 = vld [vmem:[%s8478_s1 + $0x48] sm:$0xff] }
 0xe44   :  { %7014 = vtanh.f32 %v731_v57  ;;  %v6204_v3 = vmul.f32 -1.442695, %v731_v57  ;;  %v1065_v57 = vld [vmem:[%s8478_s1 + $0x60] sm:$0xff] }
 0xe45   :  { %v1061_v58 = vld [vmem:[%s8478_s1 + $0x40] sm:$0xff] }
 0xe46   :  { %7016 = vpow2.f32 %v6204_v3  ;;  %v1060_v3 = vld [vmem:[%s8478_s1 + $0x38] sm:$0xff] }
 0xe51   :  { %v7015_v59 = vpop.eup %7014 }
 0xe52   :  { %741 = vrot.lane.b32.xlu0 %v7015_v59, %s7448_s29  ;;  %v1064_v59 = vld [vmem:[%s8478_s1 + $0x58] sm:$0xff] }
 0xe53   :  { %v7017_v60 = vpop.eup %7016 }
 0xe54   :  { %v735_v61 = vadd.f32 1.0, %v7017_v60 }
 0xe56   :  { %7018 = vrcp.f32 %v735_v61 }
 0xe63   :  { %v7019_v62 = vpop.eup %7018 }
 0xe64   :  { %v739_v0 = vmul.f32 %v7019_v62, %v649_v11 }
 0xec4   :  { %v742_v63 = vpop.permute.xlu0 %741 }
 0xec5   :  { %v744_v9 = vmul.f32 %v7019_v62, %v742_v63  ;;  %v1063_v63 = vld [vmem:[%s8478_s1 + $0x50] sm:$0xff] }
 0xec7   :  { %746 = vrot.lane.b32.xlu1 %v744_v9, %s7449_s30  ;;  %v1059_v9 = vld [vmem:[%s8478_s1 + $0x30] sm:$0xff] }
 0xf39   :  { %v747_v1 = vpop.permute.xlu1 %746 }
 0xf3a   :  { %v749_v10 = vadd.f32 %v747_v1, %v739_v0 }
 0xf3c   :  { %7020 = vtanh.f32 %v749_v10 }
 0xf49   :  { %v7021_v2 = vpop.eup %7020 }
 0xf4a   :  { %752 = vrot.lane.b32.xlu0 %v7021_v2, %s7449_s30 }
 0xfbc   :  { %v753_v4 = vpop.permute.xlu0 %752 }
 0xfbd   :  { %v755_v5 = vmul.f32 %v7019_v62, %v753_v4  ;;  %v7687_v4 = vld [vmem:[%s8478_s1 + $0x80] sm:$0xff] }
 0xfbf   :  { %757 = vrot.lane.b32.xlu1 %v755_v5, %s7450_s3 }
0x1031   :  { %v758_v7 = vpop.permute.xlu1 %757 }
0x1032   :  { %6604 = vmatmul.mubr.msk.f32.vlgmr.msra.gmra.mxu0 %vm157_vm2, %v758_v7  ;;  %v7695_v7 = vld [vmem:[%s8478_s1 + $0x78] sm:$0xff] }
0x1033   :  { %6615 = vmatprep.mubr.msk.f32.mxu0 %vm7447_vm1, %v7446_v6  ;;  %6614 = vmatpush3.msra.mxu0 %v956_v29 }
0x1034   :  { %6629 = vmatprep.subr.mxu0 %v7446_v6 }
0x1036   :  { %6616 = vmatmul.mubr.msk.f32.vlgmr.msra.gmra.mxu0 %vm25_vm0, %v7501_v8  ;;  %v6209_v8 = vld [vmem:[%s8478_s1 + $0x28] ss:$0 sm:$0xff] }
0x1037   :  { %6637 = vmatprep.mubr.msk.f32.mxu0 %vm7447_vm1, %v7446_v6  ;;  %6630 = vmatpush3.msra.mxu0 %v1062_v56 }
0x1038   :  { %6631 = vmatprep.subr.mxu0 %v7446_v6 }
0x1039   :  { %6632 = vmatpush3.msra.mxu0 %v1061_v58 }
0x103a   :  { %6633 = vmatprep.subr.mxu0 %v7446_v6 }
0x103b   :  { %6634 = vmatpush3.msra.mxu0 %v1060_v3 }
0x103c   :  { %6635 = vmatprep.subr.mxu0 %v7446_v6 }
0x103d   :  { %6636 = vmatpush3.msra.mxu0 %v1059_v9 }
0x103e   :  { %6647 = vmatprep.subr.mxu0 %v7446_v6 }
0x10f2   :  { %v827_v14 = vpop.f32.mrf.mxu0 }
0x10f3   :  { %v831_v17 = vadd.f32 %v827_v14, %v147_v12  ;;  %v6214_v14 = vld [vmem:[%s8478_s1 + $0x70] ss:$0 sm:$0xff] }
0x10f4   :  { %v6605_v18 = vpop.f32.mrf.mxu0 }
0x10f5   :  { %7022 = vtanh.f32 %v831_v17  ;;  %v6206_v20 = vmul.f32 -1.442695, %v831_v17 }
0x10f6   :  { %v1028_v33 = vpop.f32.mrf.mxu0 }
0x10f7   :  { %7024 = vpow2.f32 %v6206_v20  ;;  %v1029_v38 = vadd.f32 %v6209_v8, %v1028_v33 }
0x10f8   :  { %v6617_v34 = vpop.f32.mrf.mxu0 }
0x10f9   :  { %v6211_v43 = vmul.f32 -1.442695, %v1029_v38 }
0x1102   :  { %v7023_v19 = vpop.eup %7022 }
0x1103   :  { %841 = vrot.lane.b32.xlu0 %v7023_v19, %s7448_s29 }
0x1104   :  { %v7025_v21 = vpop.eup %7024 }
0x1105   :  { %v835_v22 = vadd.f32 1.0, %v7025_v21 }
0x1107   :  { %7026 = vrcp.f32 %v835_v22 }
0x1114   :  { %v7027_v23 = vpop.eup %7026 }
0x1115   :  { %v839_v26 = vmul.f32 %v7027_v23, %v749_v10 }
0x1175   :  { %v842_v24 = vpop.permute.xlu0 %841 }
0x1176   :  { %v844_v25 = vmul.f32 %v7027_v23, %v842_v24 }
0x1178   :  { %846 = vrot.lane.b32.xlu1 %v844_v25, %s7449_s30 }
0x11ea   :  { %v847_v27 = vpop.permute.xlu1 %846 }
0x11eb   :  { %v849_v16 = vadd.f32 %v847_v27, %v839_v26 }
0x11ed   :  { %7028 = vtanh.f32 %v849_v16 }
0x11fa   :  { %v7029_v28 = vpop.eup %7028 }
0x11fb   :  { %852 = vrot.lane.b32.xlu0 %v7029_v28, %s7449_s30 }
0x126d   :  { %v853_v30 = vpop.permute.xlu0 %852 }
0x126e   :  { %v855_v31 = vmul.f32 %v7027_v23, %v853_v30 }
0x1270   :  { %857 = vrot.lane.b32.xlu1 %v855_v31, %s7450_s3 }
0x12e2   :  { %v858_v32 = vpop.permute.xlu1 %857 }
0x12e3   :  { %6611 = vmatmul.mubr.msk.f32.vlgmr.msra.gmra.mxu1 %vm157_vm2, %v858_v32 }
0x12e4   :  { %6626 = vmatprep.mubr.msk.f32.mxu1 %vm7447_vm1, %v7446_v6  ;;  %6619 = vmatpush3.msra.mxu1 %v1066_v55 }
0x12e5   :  { %6620 = vmatprep.subr.mxu1 %v7446_v6 }
0x12e6   :  { %6621 = vmatpush3.msra.mxu1 %v1065_v57 }
0x12e7   :  { %6622 = vmatprep.subr.mxu1 %v7446_v6 }
0x12e8   :  { %6623 = vmatpush3.msra.mxu1 %v1064_v59 }
0x12e9   :  { %6624 = vmatprep.subr.mxu1 %v7446_v6 }
0x12ea   :  { %6625 = vmatpush3.msra.mxu1 %v1063_v63 }
0x12eb   :  { %6640 = vmatprep.subr.mxu1 %v7446_v6 }
0x13a3   :  { %v927_v36 = vpop.f32.mrf.mxu1 }
0x13a4   :  { %v931_v37 = vadd.f32 %v927_v36, %v152_v35 }
0x13a5   :  { %v6612_v39 = vpop.f32.mrf.mxu1 }
0x13a6   :  { %7030 = vtanh.f32 %v931_v37  ;;  %v6208_v42 = vmul.f32 -1.442695, %v931_v37 }
0x13a7   :  { %7032 = vtanh.f32 %v1029_v38 }
0x13a8   :  { %7034 = vpow2.f32 %v6208_v42 }
0x13a9   :  { %7036 = vpow2.f32 %v6211_v43 }
0x13b3   :  { %v7031_v40 = vpop.eup %7030 }
0x13b4   :  { %941 = vrot.lane.b32.xlu0 %v7031_v40, %s7448_s29  ;;  %v7033_v41 = vpop.eup %7032 }
0x13b5   :  { %v7035_v44 = vpop.eup %7034 }
0x13b6   :  { %v7037_v45 = vpop.eup %7036  ;;  %v935_v46 = vadd.f32 1.0, %v7035_v44 }
0x13b7   :  { %v1035_v13 = vadd.f32 1.0, %v7037_v45 }
0x13b8   :  { %1040 = vrot.lane.b32.xlu0 %v7033_v41, %s7448_s29  ;;  %7038 = vrcp.f32 %v935_v46 }
0x13b9   :  { %7040 = vrcp.f32 %v1035_v13 }
0x13c5   :  { %v7039_v15 = vpop.eup %7038 }
0x13c6   :  { %v7041_v49 = vpop.eup %7040  ;;  %v939_v52 = vmul.f32 %v7039_v15, %v849_v16 }
0x1426   :  { %v942_v47 = vpop.permute.xlu0 %941 }
0x1427   :  { %v944_v48 = vmul.f32 %v7039_v15, %v942_v47 }
0x1429   :  { %946 = vrot.lane.b32.xlu1 %v944_v48, %s7449_s30 }
0x142a   :  { %v1041_v50 = vpop.permute.xlu0 %1040 }
0x142b   :  { %v1043_v11 = vmul.f32 %v7041_v49, %v1041_v50 }
0x142d   :  { %7042 = vtanh.f32 %v1043_v11 }
0x143a   :  { %v7043_v51 = vpop.eup %7042 }
0x143b   :  { %1046 = vrot.lane.b32.xlu0 %v7043_v51, %s7451_s11 }
0x149b   :  { %v947_v53 = vpop.permute.xlu1 %946 }
0x149c   :  { %v949_v54 = vadd.f32 %v947_v53, %v939_v52 }
0x149e   :  { %7044 = vtanh.f32 %v949_v54 }
0x14ab   :  { %v7045_v60 = vpop.eup %7044 }
0x14ac   :  { %952 = vrot.lane.b32.xlu1 %v7045_v60, %s7449_s30 }
0x14ad   :  { %v1047_v61 = vpop.permute.xlu0 %1046 }
0x14ae   :  { %v1049_v62 = vmul.f32 %v7041_v49, %v1047_v61 }
0x14b0   :  { %1055 = vrot.lane.b32.xlu0 %v1049_v62, %s7452_s24 }
0x151e   :  { %v953_v0 = vpop.permute.xlu1 %952 }
0x151f   :  { %v955_v1 = vmul.f32 %v7039_v15, %v953_v0 }
0x1521   :  { %1051 = vrot.lane.b32.xlu1 %v955_v1, %s7450_s3 }
0x1522   :  { %v1056_v10 = vpop.permute.xlu0 %1055 }
0x1593   :  { %v1052_v2 = vpop.permute.xlu1 %1051 }
0x1594   :  { %v1058_v5 = vsel %vm157_vm2, %v1052_v2, %v1056_v10 }
0x1595   :  { %6627 = vmatmul.mubr.msk.f32.vlgmr.msra.gmra.mxu1 %vm1068_vm3, %v1058_v5  ;;  %6638 = vmatmul.mubr.msk.f32.vlgmr.msra.gmra.mxu0 %vm1068_vm3, %v1058_v5 }
0x1596   :  { %6641 = vmatpush3.msra.mxu1 %v7687_v4  ;;  %6644 = vmatprep.mubr.msk.f32.mxu1 %vm7447_vm1, %v7446_v6 }
0x1597   :  { %6642 = vmatprep.subr.mxu1 %v7446_v6  ;;  %6648 = vmatpush3.msra.mxu0 %v7687_v4 }
0x1598   :  { %6643 = vmatpush3.msra.mxu1 %v7695_v7  ;;  %6649 = vmatprep.subr.mxu0 %v7446_v6 }
0x1599   :  { %6645 = vmatmul.mubr.f32.vlgmr.msra.gmra.mxu1 %v7446_v6  ;;  %6650 = vmatpush3.msra.mxu0 %v7695_v7 }
0x159a   :  { %6651 = vmatprep.mubr.msk.f32.mxu0 %vm7447_vm1, %v7446_v6  ;;  %6654 = vmatprep.subr.mxu1 %v7446_v6 }
0x159b   :  { %6655 = vmatpush3.msra.mxu1 %v7687_v4  ;;  %6658 = vmatprep.mubr.msk.f32.mxu1 %vm7447_vm1, %v7446_v6 }
0x159c   :  { %6656 = vmatprep.subr.mxu1 %v7446_v6  ;;  %6661 = vmatprep.subr.mxu0 %v7446_v6 }
0x159d   :  { %6657 = vmatpush3.msra.mxu1 %v7695_v7 }
0x159e   :  { %6668 = vmatprep.subr.mxu1 %v7446_v6 }
0x1655   :  { %v1138_v12 = vpop.f32.mrf.mxu1  ;;  %v1208_v17 = vpop.f32.mrf.mxu0 }
0x1656   :  { %v1209_v18 = vadd.f32 %v1208_v17, %v1138_v12 }
0x1657   :  { %v6628_v19 = vpop.f32.mrf.mxu1  ;;  %v6639_v20 = vpop.f32.mrf.mxu0 }
0x1658   :  { %v7719_v21 = vadd.f32 %v6214_v14, %v1209_v18 }
0x1659   :  { %v1285_v22 = vpop.f32.mrf.mxu1 }
0x165a   :  { %v1289_v23 = vadd.f32 %v1285_v22, %v7719_v21 }
0x165b   :  { %v6646_v24 = vpop.f32.mrf.mxu1 }
0x165c   :  { %7046 = vtanh.f32 %v1289_v23  ;;  %v6215_v26 = vmul.f32 -1.442695, %v1289_v23 }
0x165e   :  { %7048 = vpow2.f32 %v6215_v26 }
0x1669   :  { %v7047_v25 = vpop.eup %7046 }
0x166a   :  { %1299 = vrot.lane.b32.xlu1 %v7047_v25, %s7448_s29 }
0x166b   :  { %v7049_v27 = vpop.eup %7048 }
0x166c   :  { %v1293_v16 = vadd.f32 1.0, %v7049_v27 }
0x166e   :  { %7050 = vrcp.f32 %v1293_v16 }
0x167b   :  { %v7051_v28 = vpop.eup %7050 }
0x167c   :  { %v1297_v31 = vmul.f32 0.0, %v7051_v28 }
0x16dc   :  { %v1300_v29 = vpop.permute.xlu1 %1299 }
0x16dd   :  { %v1302_v30 = vmul.f32 %v7051_v28, %v1300_v29 }
0x16df   :  { %1304 = vrot.lane.b32.xlu0 %v1302_v30, %s7449_s30 }
0x1751   :  { %v1305_v32 = vpop.permute.xlu0 %1304 }
0x1752   :  { %v1307_v33 = vadd.f32 %v1305_v32, %v1297_v31 }
0x1754   :  { %7052 = vtanh.f32 %v1307_v33 }
0x1761   :  { %v7053_v34 = vpop.eup %7052 }
0x1762   :  { %1310 = vrot.lane.b32.xlu1 %v7053_v34, %s7449_s30 }
0x17d4   :  { %v1311_v8 = vpop.permute.xlu1 %1310 }
0x17d5   :  { %v1313_v35 = vmul.f32 %v7051_v28, %v1311_v8 }
0x17d7   :  { %1315 = vrot.lane.b32.xlu0 %v1313_v35, %s7450_s3 }
0x1849   :  { %v7726_v36 = vpop.permute.xlu0 %1315 }
0x184a   :  { %6652 = vmatmul.mubr.msk.f32.vlgmr.msra.gmra.mxu0 %vm157_vm2, %v7726_v36 }
0x184b   :  { %6662 = vmatpush3.msra.mxu0 %v7687_v4  ;;  %6665 = vmatprep.mubr.msk.f32.mxu0 %vm7447_vm1, %v7446_v6 }
0x184c   :  { %6663 = vmatprep.subr.mxu0 %v7446_v6 }
0x184d   :  { %6664 = vmatpush3.msra.mxu0 %v7695_v7 }
0x184e   :  { %6675 = vmatprep.subr.mxu0 %v7446_v6 }
0x190a   :  { %v1385_v37 = vpop.f32.mrf.mxu0 }
0x190b   :  { %v1389_v38 = vadd.f32 %v1385_v37, %v7719_v21 }
0x190c   :  { %v6653_v39 = vpop.f32.mrf.mxu0 }
0x190d   :  { %7054 = vtanh.f32 %v1389_v38  ;;  %v6217_v41 = vmul.f32 -1.442695, %v1389_v38 }
0x190f   :  { %7056 = vpow2.f32 %v6217_v41 }
0x191a   :  { %v7055_v40 = vpop.eup %7054 }
0x191b   :  { %1399 = vrot.lane.b32.xlu1 %v7055_v40, %s7448_s29 }
0x191c   :  { %v7057_v42 = vpop.eup %7056 }
0x191d   :  { %v1393_v43 = vadd.f32 1.0, %v7057_v42 }
0x191f   :  { %7058 = vrcp.f32 %v1393_v43 }
0x192c   :  { %v7059_v44 = vpop.eup %7058 }
0x192d   :  { %v1397_v13 = vmul.f32 %v7059_v44, %v1307_v33 }
0x198d   :  { %v1400_v45 = vpop.permute.xlu1 %1399 }
0x198e   :  { %v1402_v46 = vmul.f32 %v7059_v44, %v1400_v45 }
0x1990   :  { %1404 = vrot.lane.b32.xlu0 %v1402_v46, %s7449_s30 }
0x1a02   :  { %v1405_v15 = vpop.permute.xlu0 %1404 }
0x1a03   :  { %v1407_v47 = vadd.f32 %v1405_v15, %v1397_v13 }
0x1a05   :  { %7060 = vtanh.f32 %v1407_v47 }
0x1a12   :  { %v7061_v48 = vpop.eup %7060 }
0x1a13   :  { %1410 = vrot.lane.b32.xlu1 %v7061_v48, %s7449_s30 }
0x1a85   :  { %v1411_v49 = vpop.permute.xlu1 %1410 }
0x1a86   :  { %v1413_v50 = vmul.f32 %v7059_v44, %v1411_v49 }
0x1a88   :  { %1415 = vrot.lane.b32.xlu0 %v1413_v50, %s7450_s3 }
0x1afa   :  { %v7741_v11 = vpop.permute.xlu0 %1415 }
0x1afb   :  { %6659 = vmatmul.mubr.msk.f32.vlgmr.msra.gmra.mxu1 %vm157_vm2, %v7741_v11 }
0x1afc   :  { %6669 = vmatpush3.msra.mxu1 %v7687_v4  ;;  %6672 = vmatprep.mubr.msk.f32.mxu1 %vm7447_vm1, %v7446_v6 }
0x1afd   :  { %6670 = vmatprep.subr.mxu1 %v7446_v6 }
0x1afe   :  { %6671 = vmatpush3.msra.mxu1 %v7695_v7 }
0x1aff   :  { %6682 = vmatprep.subr.mxu1 %v7446_v6 }
0x1bbb   :  { %v1485_v51 = vpop.f32.mrf.mxu1 }
0x1bbc   :  { %v1489_v52 = vadd.f32 %v1485_v51, %v7719_v21 }
0x1bbd   :  { %v6660_v53 = vpop.f32.mrf.mxu1 }
0x1bbe   :  { %7062 = vtanh.f32 %v1489_v52  ;;  %v6219_v55 = vmul.f32 -1.442695, %v1489_v52 }
0x1bc0   :  { %7064 = vpow2.f32 %v6219_v55 }
0x1bcb   :  { %v7063_v54 = vpop.eup %7062 }
0x1bcc   :  { %1499 = vrot.lane.b32.xlu1 %v7063_v54, %s7448_s29 }
0x1bcd   :  { %v7065_v56 = vpop.eup %7064 }
0x1bce   :  { %v1493_v57 = vadd.f32 1.0, %v7065_v56  ;;  %v2015_v56 = vld [vmem:[%s8478_s1 + $0x90] sm:$0xff] }
0x1bd0   :  { %7066 = vrcp.f32 %v1493_v57 }
0x1bdd   :  { %v7067_v58 = vpop.eup %7066 }
0x1bde   :  { %v1497_v60 = vmul.f32 %v7067_v58, %v1407_v47 }
0x1c3e   :  { %v1500_v59 = vpop.permute.xlu1 %1499 }
0x1c3f   :  { %v1502_v3 = vmul.f32 %v7067_v58, %v1500_v59 }
0x1c41   :  { %1504 = vrot.lane.b32.xlu0 %v1502_v3, %s7449_s30  ;;  %v2014_v3 = vld [vmem:[%s8478_s1 + $0x88] sm:$0xff] }
0x1cb3   :  { %v1505_v61 = vpop.permute.xlu0 %1504 }
0x1cb4   :  { %v1507_v62 = vadd.f32 %v1505_v61, %v1497_v60 }
0x1cb6   :  { %7068 = vtanh.f32 %v1507_v62 }
0x1cc3   :  { %v7069_v63 = vpop.eup %7068 }
0x1cc4   :  { %1510 = vrot.lane.b32.xlu1 %v7069_v63, %s7449_s30 }
0x1d36   :  { %v1511_v9 = vpop.permute.xlu1 %1510 }
0x1d37   :  { %v1513_v0 = vmul.f32 %v7067_v58, %v1511_v9 }
0x1d39   :  { %1515 = vrot.lane.b32.xlu0 %v1513_v0, %s7450_s3 }
0x1dab   :  { %v7756_v1 = vpop.permute.xlu0 %1515 }
0x1dac   :  { %6666 = vmatmul.mubr.msk.f32.vlgmr.msra.gmra.mxu0 %vm157_vm2, %v7756_v1 }
0x1dad   :  { %6676 = vmatpush3.msra.mxu0 %v7687_v4  ;;  %6679 = vmatprep.mubr.msk.f32.mxu0 %vm7447_vm1, %v7446_v6 }
0x1dae   :  { %6677 = vmatprep.subr.mxu0 %v7446_v6 }
0x1daf   :  { %6678 = vmatpush3.msra.mxu0 %v7695_v7 }
0x1db0   :  { %6689 = vmatprep.subr.mxu0 %v7446_v6 }
0x1e6c   :  { %v1585_v10 = vpop.f32.mrf.mxu0 }
0x1e6d   :  { %v1589_v2 = vadd.f32 %v1585_v10, %v7719_v21 }
0x1e6e   :  { %v6667_v5 = vpop.f32.mrf.mxu0 }
0x1e6f   :  { %7070 = vtanh.f32 %v1589_v2  ;;  %v6221_v14 = vmul.f32 -1.442695, %v1589_v2 }
0x1e71   :  { %7072 = vpow2.f32 %v6221_v14 }
0x1e7c   :  { %v7071_v12 = vpop.eup %7070 }
0x1e7d   :  { %1599 = vrot.lane.b32.xlu1 %v7071_v12, %s7448_s29 }
0x1e7e   :  { %v7073_v17 = vpop.eup %7072 }
0x1e7f   :  { %v1593_v18 = vadd.f32 1.0, %v7073_v17 }
0x1e81   :  { %7074 = vrcp.f32 %v1593_v18 }
0x1e8e   :  { %v7075_v19 = vpop.eup %7074 }
0x1e8f   :  { %v1597_v23 = vmul.f32 %v7075_v19, %v1507_v62 }
0x1eef   :  { %v1600_v20 = vpop.permute.xlu1 %1599 }
0x1ef0   :  { %v1602_v22 = vmul.f32 %v7075_v19, %v1600_v20  ;;  %v2127_v20 = vld [vmem:[%s8478_s1 + $0xa0] sm:$0xff] }
0x1ef2   :  { %1604 = vrot.lane.b32.xlu0 %v1602_v22, %s7449_s30 }
0x1f64   :  { %v1605_v24 = vpop.permute.xlu0 %1604 }
0x1f65   :  { %v1607_v25 = vadd.f32 %v1605_v24, %v1597_v23 }
0x1f67   :  { %7076 = vtanh.f32 %v1607_v25 }
0x1f74   :  { %v7077_v26 = vpop.eup %7076 }
0x1f75   :  { %1610 = vrot.lane.b32.xlu1 %v7077_v26, %s7449_s30 }
0x1fe7   :  { %v1611_v27 = vpop.permute.xlu1 %1610 }
0x1fe8   :  { %v1613_v16 = vmul.f32 %v7075_v19, %v1611_v27 }
0x1fea   :  { %1615 = vrot.lane.b32.xlu0 %v1613_v16, %s7450_s3 }
0x205c   :  { %v7771_v28 = vpop.permute.xlu0 %1615 }
0x205d   :  { %6673 = vmatmul.mubr.msk.f32.vlgmr.msra.gmra.mxu1 %vm157_vm2, %v7771_v28 }
0x205e   :  { %6683 = vmatpush3.msra.mxu1 %v7687_v4  ;;  %6686 = vmatprep.mubr.msk.f32.mxu1 %vm7447_vm1, %v7446_v6 }
0x205f   :  { %6684 = vmatprep.subr.mxu1 %v7446_v6 }
0x2060   :  { %6685 = vmatpush3.msra.mxu1 %v7695_v7 }
0x2061   :  { %6696 = vmatprep.subr.mxu1 %v2015_v56 }
0x211d   :  { %v1685_v29 = vpop.f32.mrf.mxu1 }
0x211e   :  { %v1689_v30 = vadd.f32 %v1685_v29, %v7719_v21 }
0x211f   :  { %v6674_v31 = vpop.f32.mrf.mxu1 }
0x2120   :  { %7078 = vtanh.f32 %v1689_v30  ;;  %v6223_v33 = vmul.f32 -1.442695, %v1689_v30 }
0x2122   :  { %7080 = vpow2.f32 %v6223_v33 }
0x212d   :  { %v7079_v32 = vpop.eup %7078 }
0x212e   :  { %1699 = vrot.lane.b32.xlu1 %v7079_v32, %s7448_s29 }
0x212f   :  { %v7081_v34 = vpop.eup %7080 }
0x2130   :  { %v1693_v8 = vadd.f32 1.0, %v7081_v34 }
0x2132   :  { %7082 = vrcp.f32 %v1693_v8 }
0x213f   :  { %v7083_v35 = vpop.eup %7082 }
0x2140   :  { %v1697_v39 = vmul.f32 %v7083_v35, %v1607_v25  ;;  %v2126_v25 = vld [vmem:[%s8478_s1 + $0x98] sm:$0xff] }
0x21a0   :  { %v1700_v37 = vpop.permute.xlu1 %1699 }
0x21a1   :  { %v1702_v38 = vmul.f32 %v7083_v35, %v1700_v37 }
0x21a3   :  { %1704 = vrot.lane.b32.xlu0 %v1702_v38, %s7449_s30 }
0x2215   :  { %v1705_v40 = vpop.permute.xlu0 %1704 }
0x2216   :  { %v1707_v41 = vadd.f32 %v1705_v40, %v1697_v39 }
0x2218   :  { %7084 = vtanh.f32 %v1707_v41 }
0x2225   :  { %v7085_v42 = vpop.eup %7084 }
0x2226   :  { %1710 = vrot.lane.b32.xlu1 %v7085_v42, %s7449_s30 }
0x2298   :  { %v1711_v43 = vpop.permute.xlu1 %1710 }
0x2299   :  { %v1713_v44 = vmul.f32 %v7083_v35, %v1711_v43 }
0x229b   :  { %1715 = vrot.lane.b32.xlu0 %v1713_v44, %s7450_s3 }
0x230d   :  { %v7785_v45 = vpop.permute.xlu0 %1715 }
0x230e   :  { %6680 = vmatmul.mubr.msk.f32.vlgmr.msra.gmra.mxu0 %vm157_vm2, %v7785_v45 }
0x230f   :  { %6690 = vmatpush3.msra.mxu0 %v7687_v4  ;;  %6693 = vmatprep.mubr.msk.f32.mxu0 %vm7447_vm1, %v7446_v6 }
0x2310   :  { %6691 = vmatprep.subr.mxu0 %v7446_v6 }
0x2311   :  { %6692 = vmatpush3.msra.mxu0 %v7695_v7 }
0x2312   :  { %6712 = vmatprep.subr.mxu0 %v2127_v20 }
0x23ce   :  { %v1785_v46 = vpop.f32.mrf.mxu0 }
0x23cf   :  { %v1789_v13 = vadd.f32 %v1785_v46, %v7719_v21 }
0x23d0   :  { %v6681_v15 = vpop.f32.mrf.mxu0 }
0x23d1   :  { %7086 = vtanh.f32 %v1789_v13  ;;  %v6225_v48 = vmul.f32 -1.442695, %v1789_v13 }
0x23d3   :  { %7088 = vpow2.f32 %v6225_v48 }
0x23de   :  { %v7087_v47 = vpop.eup %7086 }
0x23df   :  { %1799 = vrot.lane.b32.xlu1 %v7087_v47, %s7448_s29 }
0x23e0   :  { %v7089_v49 = vpop.eup %7088 }
0x23e1   :  { %v1793_v50 = vadd.f32 1.0, %v7089_v49 }
0x23e3   :  { %7090 = vrcp.f32 %v1793_v50 }
0x23f0   :  { %v7091_v4 = vpop.eup %7090 }
0x23f1   :  { %v1797_v53 = vmul.f32 %v7091_v4, %v1707_v41 }
0x2451   :  { %v1800_v51 = vpop.permute.xlu1 %1799 }
0x2452   :  { %v1802_v52 = vmul.f32 %v7091_v4, %v1800_v51 }
0x2454   :  { %1804 = vrot.lane.b32.xlu0 %v1802_v52, %s7449_s30  ;;  %v7896_v52 = vld [vmem:[%s8478_s1 + $0xb0] ss:$0 sm:$0xff] }
0x24c6   :  { %v1805_v7 = vpop.permute.xlu0 %1804 }
0x24c7   :  { %v1807_v54 = vadd.f32 %v1805_v7, %v1797_v53 }
0x24c9   :  { %7092 = vtanh.f32 %v1807_v54 }
0x24d6   :  { %v7093_v55 = vpop.eup %7092 }
0x24d7   :  { %1810 = vrot.lane.b32.xlu1 %v7093_v55, %s7449_s30 }
0x2549   :  { %v1811_v57 = vpop.permute.xlu1 %1810 }
0x254a   :  { %v1813_v58 = vmul.f32 %v7091_v4, %v1811_v57 }
0x254c   :  { %1815 = vrot.lane.b32.xlu0 %v1813_v58, %s7450_s3 }
0x25be   :  { %v1816_v59 = vpop.permute.xlu0 %1815 }
0x25bf   :  { %6687 = vmatmul.mubr.msk.f32.vlgmr.msra.gmra.mxu1 %vm157_vm2, %v1816_v59 }
0x25c0   :  { %6697 = vmatpush3.msra.mxu1 %v2015_v56  ;;  %6700 = vmatprep.mubr.msk.f32.mxu1 %vm157_vm2, %v7726_v36 }
0x25c1   :  { %6698 = vmatprep.subr.mxu1 %v2014_v3 }
0x25c2   :  { %6699 = vmatpush3.msra.mxu1 %v2014_v3 }
0x25c3   :  { %6701 = vmatmul.mubr.msk.f32.vlgmr.msra.gmra.mxu1 %vm157_vm2, %v7741_v11  ;;  %6728 = vmatprep.subr.mxu1 %v7446_v6 }
0x25c4   :  { %6703 = vmatprep.mubr.msk.f32.mxu1 %vm157_vm2, %v7756_v1 }
0x25c7   :  { %6704 = vmatmul.mubr.msk.f32.gmra.mxu1 %vm157_vm2, %v7771_v28 }
0x25c8   :  { %6706 = vmatprep.mubr.msk.f32.mxu1 %vm157_vm2, %v7785_v45 }
0x25cb   :  { %6707 = vmatmul.mubr.msk.f32.gmra.mxu1 %vm157_vm2, %v1816_v59 }
0x267f   :  { %v1885_v60 = vpop.f32.mrf.mxu1 }
0x2680   :  { %v1889_v61 = vadd.f32 %v1885_v60, %v7719_v21 }
0x2681   :  { %v6688_v62 = vpop.f32.mrf.mxu1 }
0x2682   :  { %7094 = vtanh.f32 %v1889_v61  ;;  %v6227_v9 = vmul.f32 -1.442695, %v1889_v61 }
0x2683   :  { %v6702_v39 = vpop.f32.mrf.mxu1 }
0x2684   :  { %7096 = vpow2.f32 %v6227_v9 }
0x2685   :  { %v2087_v41 = vpop.f32.mrf.mxu1 }
0x2687   :  { %v7873_v43 = vpop.f32.mrf.mxu1 }
0x268f   :  { %v7095_v63 = vpop.eup %7094 }
0x2690   :  { %1899 = vrot.lane.b32.xlu1 %v7095_v63, %s7448_s29 }
0x2691   :  { %v7097_v0 = vpop.eup %7096 }
0x2692   :  { %v1893_v10 = vadd.f32 1.0, %v7097_v0 }
0x2694   :  { %7098 = vrcp.f32 %v1893_v10 }
0x26a1   :  { %v7099_v2 = vpop.eup %7098 }
0x26a2   :  { %v1897_v14 = vmul.f32 %v7099_v2, %v1807_v54 }
0x2702   :  { %v1900_v5 = vpop.permute.xlu1 %1899 }
0x2703   :  { %v1902_v12 = vmul.f32 %v7099_v2, %v1900_v5 }
0x2705   :  { %1904 = vrot.lane.b32.xlu0 %v1902_v12, %s7449_s30 }
0x2777   :  { %v1905_v17 = vpop.permute.xlu0 %1904 }
0x2778   :  { %v1907_v18 = vadd.f32 %v1905_v17, %v1897_v14 }
0x277a   :  { %7100 = vtanh.f32 %v1907_v18 }
0x2787   :  { %v7101_v19 = vpop.eup %7100 }
0x2788   :  { %1910 = vrot.lane.b32.xlu1 %v7101_v19, %s7449_s30 }
0x27fa   :  { %v1911_v22 = vpop.permute.xlu1 %1910 }
0x27fb   :  { %v1913_v23 = vmul.f32 %v7099_v2, %v1911_v22 }
0x27fd   :  { %1915 = vrot.lane.b32.xlu0 %v1913_v23, %s7450_s3 }
0x286f   :  { %v1916_v24 = vpop.permute.xlu0 %1915 }
0x2870   :  { %6694 = vmatmul.mubr.msk.f32.vlgmr.msra.gmra.mxu0 %vm157_vm2, %v1916_v24  ;;  %6709 = vmatprep.mubr.msk.f32.mxu1 %vm157_vm2, %v1916_v24 }
0x2871   :  { %6713 = vmatpush3.msra.mxu0 %v2127_v20  ;;  %6716 = vmatprep.mubr.msk.f32.mxu0 %vm157_vm2, %v7726_v36 }
0x2872   :  { %6714 = vmatprep.subr.mxu0 %v2126_v25 }
0x2873   :  { %6715 = vmatpush3.msra.mxu0 %v2126_v25 }
0x2874   :  { %6717 = vmatmul.mubr.msk.f32.vlgmr.msra.gmra.mxu0 %vm157_vm2, %v7741_v11  ;;  %6733 = vmatprep.subr.mxu0 %v7446_v6 }
0x2875   :  { %6719 = vmatprep.mubr.msk.f32.mxu0 %vm157_vm2, %v7756_v1 }
0x2878   :  { %6720 = vmatmul.mubr.msk.f32.gmra.mxu0 %vm157_vm2, %v7771_v28 }
0x2879   :  { %6722 = vmatprep.mubr.msk.f32.mxu0 %vm157_vm2, %v7785_v45  ;;  %v7877_v45 = vpop.f32.mrf.mxu1 }
0x287b   :  { %v7881_v13 = vpop.f32.mrf.mxu1 }
0x287c   :  { %6723 = vmatmul.mubr.msk.f32.gmra.mxu0 %vm157_vm2, %v1816_v59 }
0x287d   :  { %6725 = vmatprep.mubr.msk.f32.mxu0 %vm157_vm2, %v1916_v24  ;;  %v7885_v47 = vpop.f32.mrf.mxu1 }
0x2930   :  { %v1985_v36 = vpop.f32.mrf.mxu0 }
0x2931   :  { %v1989_v26 = vadd.f32 %v1985_v36, %v7719_v21  ;;  %v7850_v21 = vld [vmem:[%s8478_s1 + $0xa8] sm:$0xff] }
0x2932   :  { %v6695_v27 = vpop.f32.mrf.mxu0  ;;  %6729 = vmatpush3.msra.mxu1 %v7850_v21  ;;  %6734 = vmatpush3.msra.mxu0 %v7850_v21 }
0x2933   :  { %7102 = vtanh.f32 %v1989_v26  ;;  %v6229_v16 = vmul.f32 -1.442695, %v1989_v26  ;;  %6738 = vmatprep.subr.mxu1 %v7446_v6  ;;  %6743 = vmatprep.subr.mxu0 %v7446_v6 }
0x2934   :  { %v7869_v40 = vpop.f32.mrf.mxu0 }
0x2935   :  { %7104 = vpow2.f32 %v6229_v16 }
0x2936   :  { %v7871_v42 = vpop.f32.mrf.mxu0 }
0x2938   :  { %v7875_v44 = vpop.f32.mrf.mxu0 }
0x293a   :  { %v7879_v46 = vpop.f32.mrf.mxu0 }
0x293c   :  { %v7883_v15 = vpop.f32.mrf.mxu0 }
0x293e   :  { %v7887_v48 = vpop.f32.mrf.mxu0 }
0x2940   :  { %v7103_v11 = vpop.eup %7102 }
0x2941   :  { %1999 = vrot.lane.b32.xlu1 %v7103_v11, %s7448_s29 }
0x2942   :  { %v7105_v1 = vpop.eup %7104 }
0x2943   :  { %v1993_v29 = vadd.f32 1.0, %v7105_v1 }
0x2945   :  { %7106 = vrcp.f32 %v1993_v29 }
0x2952   :  { %v7107_v28 = vpop.eup %7106 }
0x2953   :  { %v1997_v32 = vmul.f32 %v7107_v28, %v1907_v18 }
0x29b3   :  { %v2000_v30 = vpop.permute.xlu1 %1999 }
0x29b4   :  { %v2002_v31 = vmul.f32 %v7107_v28, %v2000_v30 }
0x29b6   :  { %2004 = vrot.lane.b32.xlu0 %v2002_v31, %s7449_s30 }
0x2a28   :  { %v2005_v33 = vpop.permute.xlu0 %2004 }
0x2a29   :  { %v2007_v34 = vadd.f32 %v2005_v33, %v1997_v32  ;;  %v2440_v32 = vadd.f32 %v7883_v15, %v7877_v45 }
0x2a2b   :  { %7108 = vtanh.f32 %v2007_v34  ;;  %v2441_v33 = vadd.f32 %v7896_v52, %v2440_v32 }
0x2a38   :  { %v7109_v8 = vpop.eup %7108 }
0x2a39   :  { %2010 = vrot.lane.b32.xlu1 %v7109_v8, %s7449_s30 }
0x2aab   :  { %v2011_v35 = vpop.permute.xlu1 %2010 }
0x2aac   :  { %v2013_v37 = vmul.f32 %v7107_v28, %v2011_v35 }
0x2aae   :  { %2017 = vrot.lane.b32.xlu0 %v2013_v37, %s7450_s3 }
0x2b20   :  { %v2018_v38 = vpop.permute.xlu0 %2017 }
0x2b21   :  { %6710 = vmatmul.mubr.msk.f32.gmra.mxu1 %vm157_vm2, %v2018_v38  ;;  %6726 = vmatmul.mubr.msk.f32.gmra.mxu0 %vm157_vm2, %v2018_v38 }
0x2b22   :  { %6730 = vmatprep.mubr.msk.f32.mxu1 %vm7447_vm1, %v7446_v6  ;;  %6735 = vmatprep.mubr.msk.f32.mxu0 %vm7447_vm1, %v7446_v6 }
0x2b25   :  { %6731 = vmatmul.mubr.f32.vlgmr.msra.gmra.mxu1 %v7446_v6 }
0x2b26   :  { %6739 = vmatpush3.msra.mxu1 %v7850_v21  ;;  %6740 = vmatprep.mubr.msk.f32.mxu1 %vm7447_vm1, %v7446_v6 }
0x2b27   :  { %6748 = vmatprep.subr.mxu1 %v7446_v6 }
0x2be1   :  { %v7889_v49 = vpop.f32.mrf.mxu1  ;;  %v6727_v50 = vpop.f32.mrf.mxu0 }
0x2be2   :  { %v2235_v4 = vadd.f32 %v6727_v50, %v2087_v41 }
0x2be3   :  { %v7891_v51 = vpop.f32.mrf.mxu1  ;;  %v2224_v12 = vpop.f32.mrf.mxu0 }
0x2be4   :  { %v2240_v53 = vadd.f32 %v7896_v52, %v2235_v4  ;;  %v2338_v14 = vadd.f32 %v6702_v39, %v2224_v12 }
0x2be5   :  { %v2309_v7 = vpop.f32.mrf.mxu1 }
0x2be6   :  { %v2313_v54 = vadd.f32 %v2309_v7, %v2240_v53  ;;  %v2339_v17 = vadd.f32 %v7896_v52, %v2338_v14 }
0x2be7   :  { %v6732_v55 = vpop.f32.mrf.mxu1 }
0x2be8   :  { %7110 = vtanh.f32 %v2313_v54  ;;  %v6247_v57 = vmul.f32 -1.442695, %v2313_v54 }
0x2bea   :  { %7112 = vpow2.f32 %v6247_v57 }
0x2bf5   :  { %v7111_v56 = vpop.eup %7110 }
0x2bf6   :  { %2323 = vrot.lane.b32.xlu1 %v7111_v56, %s7453_s22 }
0x2bf7   :  { %v7113_v58 = vpop.eup %7112 }
0x2bf8   :  { %v2317_v59 = vadd.f32 1.0, %v7113_v58  ;;  %v2542_v58 = vadd.f32 %v7873_v43, %v7887_v48 }
0x2bfa   :  { %7114 = vrcp.f32 %v2317_v59  ;;  %v2543_v59 = vadd.f32 %v7896_v52, %v2542_v58 }
0x2c07   :  { %v7115_v3 = vpop.eup %7114 }
0x2c08   :  { %v2321_v62 = vmul.f32 0.0, %v7115_v3 }
0x2c68   :  { %v2324_v60 = vpop.permute.xlu1 %2323 }
0x2c69   :  { %v2326_v61 = vmul.f32 %v7115_v3, %v2324_v60 }
0x2c6b   :  { %2328 = vrot.lane.b32.xlu0 %v2326_v61, %s7454_s23 }
0x2cdd   :  { %v2329_v63 = vpop.permute.xlu0 %2328 }
0x2cde   :  { %v2331_v9 = vadd.f32 %v2329_v63, %v2321_v62 }
0x2ce0   :  { %7116 = vtanh.f32 %v2331_v9 }
0x2ced   :  { %v7117_v0 = vpop.eup %7116 }
0x2cee   :  { %2334 = vrot.lane.b32.xlu1 %v7117_v0, %s7454_s23 }
0x2d60   :  { %v2335_v10 = vpop.permute.xlu1 %2334 }
0x2d61   :  { %v7902_v2 = vmul.f32 %v7115_v3, %v2335_v10 }
0x2d63   :  { %2341 = vrot.lane.b32.xlu0 %v7902_v2, %s7452_s24 }
0x2dd5   :  { %v2342_v5 = vpop.permute.xlu0 %2341 }
0x2dd6   :  { %6736 = vmatmul.mubr.msk.f32.vlgmr.msra.gmra.mxu0 %vm25_vm0, %v2342_v5 }
0x2dd7   :  { %6744 = vmatpush3.msra.mxu0 %v7850_v21  ;;  %6745 = vmatprep.mubr.msk.f32.mxu0 %vm7447_vm1, %v7446_v6 }
0x2dd8   :  { %6753 = vmatprep.subr.mxu0 %v7446_v6 }
0x2e96   :  { %v2411_v18 = vpop.f32.mrf.mxu0 }
0x2e97   :  { %v2415_v19 = vadd.f32 %v2411_v18, %v2339_v17 }
0x2e98   :  { %v6737_v20 = vpop.f32.mrf.mxu0 }
0x2e99   :  { %7118 = vtanh.f32 %v2415_v19  ;;  %v6249_v23 = vmul.f32 -1.442695, %v2415_v19 }
0x2e9b   :  { %7120 = vpow2.f32 %v6249_v23 }
0x2ea6   :  { %v7119_v22 = vpop.eup %7118 }
0x2ea7   :  { %2425 = vrot.lane.b32.xlu1 %v7119_v22, %s7453_s22  ;;  %v2644_v22 = vadd.f32 %v7875_v44, %v7885_v47 }
0x2ea8   :  { %v7121_v24 = vpop.eup %7120 }
0x2ea9   :  { %v2419_v25 = vadd.f32 1.0, %v7121_v24  ;;  %v2645_v23 = vadd.f32 %v7896_v52, %v2644_v22 }
0x2eab   :  { %7122 = vrcp.f32 %v2419_v25 }
0x2eb8   :  { %v7123_v36 = vpop.eup %7122 }
0x2eb9   :  { %v2423_v11 = vmul.f32 %v7123_v36, %v2331_v9 }
0x2f19   :  { %v2426_v26 = vpop.permute.xlu1 %2425 }
0x2f1a   :  { %v2428_v27 = vmul.f32 %v7123_v36, %v2426_v26 }
0x2f1c   :  { %2430 = vrot.lane.b32.xlu0 %v2428_v27, %s7454_s23 }
0x2f8e   :  { %v2431_v16 = vpop.permute.xlu0 %2430 }
0x2f8f   :  { %v2433_v1 = vadd.f32 %v2431_v16, %v2423_v11 }
0x2f91   :  { %7124 = vtanh.f32 %v2433_v1 }
0x2f9e   :  { %v7125_v29 = vpop.eup %7124 }
0x2f9f   :  { %2436 = vrot.lane.b32.xlu1 %v7125_v29, %s7454_s23 }
0x3011   :  { %v2437_v28 = vpop.permute.xlu1 %2436 }
0x3012   :  { %v7915_v30 = vmul.f32 %v7123_v36, %v2437_v28 }
0x3014   :  { %2443 = vrot.lane.b32.xlu0 %v7915_v30, %s7452_s24 }
0x3086   :  { %v2444_v31 = vpop.permute.xlu0 %2443 }
0x3087   :  { %6741 = vmatmul.mubr.msk.f32.vlgmr.msra.gmra.mxu1 %vm25_vm0, %v2444_v31 }
0x3088   :  { %6749 = vmatpush3.msra.mxu1 %v7850_v21  ;;  %6750 = vmatprep.mubr.msk.f32.mxu1 %vm7447_vm1, %v7446_v6 }
0x3089   :  { %6758 = vmatprep.subr.mxu1 %v7446_v6 }
0x3147   :  { %v2513_v34 = vpop.f32.mrf.mxu1 }
0x3148   :  { %v2517_v8 = vadd.f32 %v2513_v34, %v2441_v33 }
0x3149   :  { %v6742_v35 = vpop.f32.mrf.mxu1 }
0x314a   :  { %7126 = vtanh.f32 %v2517_v8  ;;  %v6251_v38 = vmul.f32 -1.442695, %v2517_v8  ;;  %v2746_v35 = vadd.f32 %v7881_v13, %v7879_v46 }
0x314c   :  { %7128 = vpow2.f32 %v6251_v38 }
0x3157   :  { %v7127_v37 = vpop.eup %7126 }
0x3158   :  { %2527 = vrot.lane.b32.xlu1 %v7127_v37, %s7453_s22  ;;  %v2747_v37 = vadd.f32 %v7896_v52, %v2746_v35 }
0x3159   :  { %v7129_v39 = vpop.eup %7128 }
0x315a   :  { %v2521_v41 = vadd.f32 1.0, %v7129_v39 }
0x315c   :  { %7130 = vrcp.f32 %v2521_v41 }
0x3169   :  { %v7131_v50 = vpop.eup %7130 }
0x316a   :  { %v2525_v45 = vmul.f32 %v7131_v50, %v2433_v1 }
0x31ca   :  { %v2528_v4 = vpop.permute.xlu1 %2527 }
0x31cb   :  { %v2530_v53 = vmul.f32 %v7131_v50, %v2528_v4 }
0x31cd   :  { %2532 = vrot.lane.b32.xlu0 %v2530_v53, %s7454_s23 }
0x323f   :  { %v2533_v15 = vpop.permute.xlu0 %2532 }
0x3240   :  { %v2535_v7 = vadd.f32 %v2533_v15, %v2525_v45 }
0x3242   :  { %7132 = vtanh.f32 %v2535_v7 }
0x324f   :  { %v7133_v54 = vpop.eup %7132 }
0x3250   :  { %2538 = vrot.lane.b32.xlu1 %v7133_v54, %s7454_s23 }
0x32c2   :  { %v2539_v55 = vpop.permute.xlu1 %2538 }
0x32c3   :  { %v7930_v56 = vmul.f32 %v7131_v50, %v2539_v55 }
0x32c5   :  { %2545 = vrot.lane.b32.xlu0 %v7930_v56, %s7452_s24 }
0x3337   :  { %v2546_v57 = vpop.permute.xlu0 %2545 }
0x3338   :  { %6746 = vmatmul.mubr.msk.f32.vlgmr.msra.gmra.mxu0 %vm25_vm0, %v2546_v57 }
0x3339   :  { %6754 = vmatpush3.msra.mxu0 %v7850_v21  ;;  %6755 = vmatprep.mubr.msk.f32.mxu0 %vm7447_vm1, %v7446_v6 }
0x333a   :  { %6763 = vmatprep.subr.mxu0 %v7446_v6 }
0x33f8   :  { %v2615_v3 = vpop.f32.mrf.mxu0 }
0x33f9   :  { %v2619_v60 = vadd.f32 %v2615_v3, %v2543_v59  ;;  %v2848_v3 = vadd.f32 %v7869_v40, %v7891_v51 }
0x33fa   :  { %v6747_v61 = vpop.f32.mrf.mxu0 }
0x33fb   :  { %7134 = vtanh.f32 %v2619_v60  ;;  %v6253_v63 = vmul.f32 -1.442695, %v2619_v60  ;;  %v2849_v60 = vadd.f32 %v7896_v52, %v2848_v3 }
0x33fd   :  { %7136 = vpow2.f32 %v6253_v63 }
0x3408   :  { %v7135_v62 = vpop.eup %7134 }
0x3409   :  { %2629 = vrot.lane.b32.xlu1 %v7135_v62, %s7453_s22 }
0x340a   :  { %v7137_v9 = vpop.eup %7136 }
0x340b   :  { %v2623_v0 = vadd.f32 1.0, %v7137_v9 }
0x340d   :  { %7138 = vrcp.f32 %v2623_v0 }
0x341a   :  { %v7139_v10 = vpop.eup %7138 }
0x341b   :  { %v2627_v43 = vmul.f32 %v7139_v10, %v2535_v7 }
0x347b   :  { %v2630_v5 = vpop.permute.xlu1 %2629 }
0x347c   :  { %v2632_v12 = vmul.f32 %v7139_v10, %v2630_v5  ;;  %v6263_v5 = vmul.f32 -1.442695, %v7915_v30 }
0x347e   :  { %2634 = vrot.lane.b32.xlu0 %v2632_v12, %s7454_s23 }
0x34f0   :  { %v2635_v48 = vpop.permute.xlu0 %2634 }
0x34f1   :  { %v2637_v14 = vadd.f32 %v2635_v48, %v2627_v43 }
0x34f3   :  { %7140 = vtanh.f32 %v2637_v14 }
0x3500   :  { %v7141_v17 = vpop.eup %7140 }
0x3501   :  { %2640 = vrot.lane.b32.xlu1 %v7141_v17, %s7454_s23  ;;  %v3100_v17 = vld [vmem:[%s8478_s1 + $0xb8] sm:$0xff] }
0x3573   :  { %v2641_v18 = vpop.permute.xlu1 %2640 }
0x3574   :  { %v7945_v19 = vmul.f32 %v7139_v10, %v2641_v18  ;;  %v6262_v10 = vmul.f32 -1.442695, %v7902_v2 }
0x3576   :  { %2647 = vrot.lane.b32.xlu0 %v7945_v19, %s7452_s24 }
0x35e8   :  { %v2648_v20 = vpop.permute.xlu0 %2647 }
0x35e9   :  { %6751 = vmatmul.mubr.msk.f32.vlgmr.msra.gmra.mxu1 %vm25_vm0, %v2648_v20 }
0x35ea   :  { %6759 = vmatpush3.msra.mxu1 %v7850_v21  ;;  %6760 = vmatprep.mubr.msk.f32.mxu1 %vm7447_vm1, %v7446_v6 }
0x35eb   :  { %6768 = vmatprep.subr.mxu1 %v3100_v17 }
0x36a9   :  { %v2717_v24 = vpop.f32.mrf.mxu1 }
0x36aa   :  { %v2721_v25 = vadd.f32 %v2717_v24, %v2645_v23 }
0x36ab   :  { %v6752_v36 = vpop.f32.mrf.mxu1 }
0x36ac   :  { %7142 = vtanh.f32 %v2721_v25  ;;  %v6255_v27 = vmul.f32 -1.442695, %v2721_v25 }
0x36ae   :  { %7144 = vpow2.f32 %v6255_v27 }
0x36b9   :  { %v7143_v26 = vpop.eup %7142 }
0x36ba   :  { %2731 = vrot.lane.b32.xlu1 %v7143_v26, %s7453_s22 }
0x36bb   :  { %v7145_v11 = vpop.eup %7144 }
0x36bc   :  { %v2725_v16 = vadd.f32 1.0, %v7145_v11  ;;  %v8001_v11 = vld [vmem:[%s8478_s1 + $0xc0] sm:$0xff] }
0x36be   :  { %7146 = vrcp.f32 %v2725_v16 }
0x36cb   :  { %v7147_v1 = vpop.eup %7146 }
0x36cc   :  { %v2729_v44 = vmul.f32 %v7147_v1, %v2637_v14 }
0x372c   :  { %v2732_v29 = vpop.permute.xlu1 %2731 }
0x372d   :  { %v2734_v28 = vmul.f32 %v7147_v1, %v2732_v29 }
0x372f   :  { %2736 = vrot.lane.b32.xlu0 %v2734_v28, %s7454_s23  ;;  %v2950_v28 = vadd.f32 %v7889_v49, %v7871_v42 }
0x37a1   :  { %v2737_v47 = vpop.permute.xlu0 %2736 }
0x37a2   :  { %v2739_v31 = vadd.f32 %v2737_v47, %v2729_v44  ;;  %v2951_v47 = vadd.f32 %v7896_v52, %v2950_v28 }
0x37a4   :  { %7148 = vtanh.f32 %v2739_v31 }
0x37b1   :  { %v7149_v32 = vpop.eup %7148 }
0x37b2   :  { %2742 = vrot.lane.b32.xlu1 %v7149_v32, %s7454_s23 }
0x3824   :  { %v2743_v33 = vpop.permute.xlu1 %2742 }
0x3825   :  { %v7959_v34 = vmul.f32 %v7147_v1, %v2743_v33 }
0x3827   :  { %2749 = vrot.lane.b32.xlu0 %v7959_v34, %s7452_s24 }
0x3899   :  { %v2750_v8 = vpop.permute.xlu0 %2749 }
0x389a   :  { %6756 = vmatmul.mubr.msk.f32.vlgmr.msra.gmra.mxu0 %vm25_vm0, %v2750_v8  ;;  %v8027_v8 = vld [vmem:[%s8478_s1 + $0xc8] ss:$0 sm:$0xff] }
0x389b   :  { %6764 = vmatpush3.msra.mxu0 %v7850_v21  ;;  %6765 = vmatprep.mubr.msk.f32.mxu0 %vm7447_vm1, %v7446_v6 }
0x389c   :  { %6782 = vmatprep.subr.mxu0 %v7446_v6 }
0x395a   :  { %v2819_v38 = vpop.f32.mrf.mxu0 }
0x395b   :  { %v2823_v39 = vadd.f32 %v2819_v38, %v2747_v37 }
0x395c   :  { %v6757_v41 = vpop.f32.mrf.mxu0 }
0x395d   :  { %7150 = vtanh.f32 %v2823_v39  ;;  %v6257_v4 = vmul.f32 -1.442695, %v2823_v39 }
0x395f   :  { %7152 = vpow2.f32 %v6257_v4 }
0x396a   :  { %v7151_v50 = vpop.eup %7150 }
0x396b   :  { %2833 = vrot.lane.b32.xlu1 %v7151_v50, %s7453_s22 }
0x396c   :  { %v7153_v21 = vpop.eup %7152 }
0x396d   :  { %v2827_v53 = vadd.f32 1.0, %v7153_v21 }
0x396f   :  { %7154 = vrcp.f32 %v2827_v53 }
0x397c   :  { %v7155_v45 = vpop.eup %7154 }
0x397d   :  { %v2831_v46 = vmul.f32 %v7155_v45, %v2739_v31 }
0x39dd   :  { %v2834_v15 = vpop.permute.xlu1 %2833 }
0x39de   :  { %v2836_v7 = vmul.f32 %v7155_v45, %v2834_v15 }
0x39e0   :  { %2838 = vrot.lane.b32.xlu0 %v2836_v7, %s7454_s23 }
0x3a52   :  { %v2839_v13 = vpop.permute.xlu0 %2838 }
0x3a53   :  { %v2841_v54 = vadd.f32 %v2839_v13, %v2831_v46 }
0x3a55   :  { %7156 = vtanh.f32 %v2841_v54 }
0x3a62   :  { %v7157_v55 = vpop.eup %7156 }
0x3a63   :  { %2844 = vrot.lane.b32.xlu1 %v7157_v55, %s7454_s23 }
0x3ad5   :  { %v2845_v57 = vpop.permute.xlu1 %2844 }
0x3ad6   :  { %v7974_v58 = vmul.f32 %v7155_v45, %v2845_v57 }
0x3ad8   :  { %2851 = vrot.lane.b32.xlu0 %v7974_v58, %s7452_s24 }
0x3b4a   :  { %v2852_v59 = vpop.permute.xlu0 %2851 }
0x3b4b   :  { %6761 = vmatmul.mubr.msk.f32.vlgmr.msra.gmra.mxu1 %vm25_vm0, %v2852_v59 }
0x3b4c   :  { %6769 = vmatpush3.msra.mxu1 %v3100_v17 }
0x3b4d   :  { %6802 = vmatprep.subr.mxu1 %v7446_v6 }
0x3c0b   :  { %v2921_v61 = vpop.f32.mrf.mxu1 }
0x3c0c   :  { %v2925_v62 = vadd.f32 %v2921_v61, %v2849_v60 }
0x3c0d   :  { %v6762_v63 = vpop.f32.mrf.mxu1 }
0x3c0e   :  { %7158 = vtanh.f32 %v2925_v62  ;;  %v6259_v0 = vmul.f32 -1.442695, %v2925_v62  ;;  %v6264_v63 = vmul.f32 -1.442695, %v7930_v56 }
0x3c10   :  { %7160 = vpow2.f32 %v6259_v0 }
0x3c11   :  { %7162 = vpow2.f32 %v6262_v10 }
0x3c12   :  { %7164 = vpow2.f32 %v6263_v5 }
0x3c1b   :  { %v7159_v9 = vpop.eup %7158 }
0x3c1c   :  { %2935 = vrot.lane.b32.xlu1 %v7159_v9, %s7453_s22 }
0x3c1d   :  { %v7161_v12 = vpop.eup %7160 }
0x3c1e   :  { %v2929_v43 = vadd.f32 1.0, %v7161_v12  ;;  %v7163_v40 = vpop.eup %7162 }
0x3c1f   :  { %v3076_v51 = vadd.f32 1.0, %v7163_v40  ;;  %v7165_v48 = vpop.eup %7164 }
0x3c20   :  { %7166 = vrcp.f32 %v2929_v43  ;;  %v3077_v14 = vadd.f32 1.0, %v7165_v48  ;;  %v6265_v48 = vmul.f32 -1.442695, %v7945_v19 }
0x3c21   :  { %7168 = vrcp.f32 %v3076_v51 }
0x3c22   :  { %7170 = vrcp.f32 %v3077_v14 }
0x3c2d   :  { %v7167_v2 = vpop.eup %7166 }
0x3c2e   :  { %v7169_v20 = vpop.eup %7168  ;;  %v2933_v23 = vmul.f32 %v7167_v2, %v2841_v54 }
0x3c2f   :  { %v7171_v22 = vpop.eup %7170 }
0x3c8e   :  { %v2936_v30 = vpop.permute.xlu1 %2935 }
0x3c8f   :  { %v2938_v18 = vmul.f32 %v7167_v2, %v2936_v30 }
0x3c91   :  { %2940 = vrot.lane.b32.xlu0 %v2938_v18, %s7454_s23 }
0x3c95   :  { %3114 = vrot.lane.b32.xlu0 %v7169_v20, %s7452_s24 }
0x3c99   :  { %3116 = vrot.lane.b32.xlu0 %v7171_v22, %s7452_s24 }
0x3d03   :  { %v2941_v24 = vpop.permute.xlu0 %2940 }
0x3d04   :  { %v7992_v25 = vadd.f32 %v2941_v24, %v2933_v23 }
0x3d06   :  { %7172 = vtanh.f32 %v7992_v25 }
0x3d07   :  { %v3115_v36 = vpop.permute.xlu0 %3114 }
0x3d08   :  { %6770 = vmatprep.mubr.msk.f32.mxu1 %vm25_vm0, %v3115_v36 }
0x3d0b   :  { %v3117_v26 = vpop.permute.xlu0 %3116 }
0x3d0c   :  { %6771 = vmatmul.mubr.msk.f32.vlgmr.msra.gmra.mxu1 %vm25_vm0, %v3117_v26 }
0x3d0d   :  { %6803 = vmatpush3.msra.mxu1 %v8001_v11 }
0x3d0e   :  { %6812 = vmatprep.subr.mxu1 %v7446_v6 }
0x3d13   :  { %v7173_v27 = vpop.eup %7172 }
0x3d14   :  { %2946 = vrot.lane.b32.xlu1 %v7173_v27, %s7454_s23 }
0x3d86   :  { %v2947_v16 = vpop.permute.xlu1 %2946 }
0x3d87   :  { %v8005_v1 = vmul.f32 %v7167_v2, %v2947_v16 }
0x3d89   :  { %2953 = vrot.lane.b32.xlu1 %v8005_v1, %s7452_s24 }
0x3dcc   :  { %v6772_v44 = vpop.f32.mrf.mxu1 }
0x3dcd   :  { %v3218_v57 = vadd.f32 %v6772_v44, %v8027_v8 }
0x3dce   :  { %v3212_v31 = vpop.f32.mrf.mxu1 }
0x3dcf   :  { %v3213_v37 = vadd.f32 %v8027_v8, %v3212_v31 }
0x3dfb   :  { %v2954_v29 = vpop.permute.xlu1 %2953 }
0x3dfc   :  { %6766 = vmatmul.mubr.msk.f32.vlgmr.msra.gmra.mxu0 %vm25_vm0, %v2954_v29 }
0x3dfd   :  { %6783 = vmatpush3.msra.mxu0 %v8001_v11  ;;  %6784 = vmatprep.mubr.msk.f32.mxu0 %vm7447_vm1, %v7446_v6 }
0x3dfe   :  { %6787 = vmatprep.subr.mxu0 %v7446_v6 }
0x3e00   :  { %6785 = vmatmul.mubr.f32.vlgmr.msra.gmra.mxu0 %v7446_v6 }
0x3e01   :  { %6788 = vmatpush3.msra.mxu0 %v8001_v11  ;;  %6789 = vmatprep.mubr.msk.f32.mxu0 %vm7447_vm1, %v7446_v6 }
0x3e02   :  { %6792 = vmatprep.subr.mxu0 %v7446_v6 }
0x3ebc   :  { %v3023_v32 = vpop.f32.mrf.mxu0 }
0x3ebd   :  { %v8022_v33 = vadd.f32 %v3023_v32, %v2951_v47 }
0x3ebe   :  { %v6767_v35 = vpop.f32.mrf.mxu0 }
0x3ec0   :  { %v3318_v38 = vpop.f32.mrf.mxu0 }
0x3ec1   :  { %v3322_v39 = vadd.f32 %v3318_v38, %v3213_v37 }
0x3ec2   :  { %v6786_v41 = vpop.f32.mrf.mxu0 }
0x3ec3   :  { %7174 = vtanh.f32 %v3322_v39  ;;  %v6279_v49 = vmul.f32 -1.442695, %v3322_v39 }
0x3ec5   :  { %7176 = vpow2.f32 %v6279_v49 }
0x3ed0   :  { %v7175_v42 = vpop.eup %7174 }
0x3ed1   :  { %3332 = vrot.lane.b32.xlu1 %v7175_v42, %s7453_s22 }
0x3ed2   :  { %v7177_v52 = vpop.eup %7176 }
0x3ed3   :  { %v3326_v50 = vadd.f32 1.0, %v7177_v52 }
0x3ed5   :  { %7178 = vrcp.f32 %v3326_v50 }
0x3ee2   :  { %v7179_v4 = vpop.eup %7178 }
0x3ee3   :  { %v3330_v45 = vmul.f32 0.0, %v7179_v4 }
0x3f43   :  { %v3333_v21 = vpop.permute.xlu1 %3332 }
0x3f44   :  { %v3335_v53 = vmul.f32 %v7179_v4, %v3333_v21 }
0x3f46   :  { %3337 = vrot.lane.b32.xlu0 %v3335_v53, %s7454_s23 }
0x3fb8   :  { %v3338_v15 = vpop.permute.xlu0 %3337 }
0x3fb9   :  { %v3340_v7 = vadd.f32 %v3338_v15, %v3330_v45 }
0x3fbb   :  { %7180 = vtanh.f32 %v3340_v7 }
0x3fc8   :  { %v7181_v46 = vpop.eup %7180 }
0x3fc9   :  { %3343 = vrot.lane.b32.xlu1 %v7181_v46, %s7454_s23 }
0x403b   :  { %v3344_v13 = vpop.permute.xlu1 %3343 }
0x403c   :  { %v3346_v54 = vmul.f32 %v7179_v4, %v3344_v13  ;;  %v6261_v4 = vmul.f32 -1.442695, %v8022_v33 }
0x403e   :  { %3348 = vrot.lane.b32.xlu0 %v3346_v54, %s7452_s24  ;;  %v6266_v54 = vmul.f32 -1.442695, %v7959_v34 }
0x40b0   :  { %v3349_v55 = vpop.permute.xlu0 %3348 }
0x40b1   :  { %6790 = vmatmul.mubr.msk.f32.vlgmr.msra.gmra.mxu0 %vm25_vm0, %v3349_v55  ;;  %v6268_v55 = vmul.f32 -1.442695, %v8005_v1 }
0x40b2   :  { %6793 = vmatpush3.msra.mxu0 %v8001_v11  ;;  %6794 = vmatprep.mubr.msk.f32.mxu0 %vm7447_vm1, %v7446_v6 }
0x40b3   :  { %6797 = vmatprep.subr.mxu0 %v7446_v6 }
0x4171   :  { %v3418_v59 = vpop.f32.mrf.mxu0 }
0x4172   :  { %v3422_v3 = vadd.f32 %v3418_v59, %v3218_v57 }
0x4173   :  { %v6791_v60 = vpop.f32.mrf.mxu0 }
0x4174   :  { %7182 = vtanh.f32 %v3422_v3  ;;  %v6281_v62 = vmul.f32 -1.442695, %v3422_v3 }
0x4176   :  { %7184 = vpow2.f32 %v6281_v62 }
0x4177   :  { %7186 = vpow2.f32 %v6264_v63 }
0x4181   :  { %v7183_v61 = vpop.eup %7182 }
0x4182   :  { %3432 = vrot.lane.b32.xlu1 %v7183_v61, %s7453_s22 }
0x4183   :  { %v7185_v9 = vpop.eup %7184 }
0x4184   :  { %v3426_v0 = vadd.f32 1.0, %v7185_v9  ;;  %v7187_v10 = vpop.eup %7186 }
0x4185   :  { %v3078_v5 = vadd.f32 1.0, %v7187_v10 }
0x4186   :  { %7188 = vrcp.f32 %v3426_v0 }
0x4187   :  { %7190 = vrcp.f32 %v3078_v5 }
0x4188   :  { %7192 = vpow2.f32 %v6265_v48 }
0x4193   :  { %v7189_v12 = vpop.eup %7188 }
0x4194   :  { %v7191_v51 = vpop.eup %7190  ;;  %v3430_v14 = vmul.f32 %v7189_v12, %v3340_v7 }
0x4195   :  { %v7193_v56 = vpop.eup %7192 }
0x4196   :  { %v3079_v30 = vadd.f32 1.0, %v7193_v56 }
0x41f4   :  { %v3433_v43 = vpop.permute.xlu1 %3432 }
0x41f5   :  { %v3435_v40 = vmul.f32 %v7189_v12, %v3433_v43 }
0x41f7   :  { %3437 = vrot.lane.b32.xlu0 %v3435_v40, %s7454_s23 }
0x41fb   :  { %3118 = vrot.lane.b32.xlu0 %v7191_v51, %s7452_s24 }
0x4269   :  { %v3438_v17 = vpop.permute.xlu0 %3437 }
0x426a   :  { %v3440_v2 = vadd.f32 %v3438_v17, %v3430_v14 }
0x426c   :  { %7194 = vtanh.f32 %v3440_v2 }
0x426d   :  { %v3119_v18 = vpop.permute.xlu0 %3118  ;;  %7196 = vrcp.f32 %v3079_v30  ;;  %v6267_v30 = vmul.f32 -1.442695, %v7974_v58 }
0x426e   :  { %6773 = vmatprep.mubr.msk.f32.mxu1 %vm25_vm0, %v3119_v18 }
0x4279   :  { %v7195_v20 = vpop.eup %7194 }
0x427a   :  { %3443 = vrot.lane.b32.xlu1 %v7195_v20, %s7454_s23  ;;  %v7197_v22 = vpop.eup %7196 }
0x427e   :  { %3120 = vrot.lane.b32.xlu1 %v7197_v22, %s7452_s24 }
0x42ec   :  { %v3444_v23 = vpop.permute.xlu1 %3443 }
0x42ed   :  { %v3446_v24 = vmul.f32 %v7189_v12, %v3444_v23 }
0x42ef   :  { %3448 = vrot.lane.b32.xlu0 %v3446_v24, %s7452_s24 }
0x42f0   :  { %v3121_v19 = vpop.permute.xlu1 %3120 }
0x42f1   :  { %6774 = vmatmul.mubr.msk.f32.gmra.mxu1 %vm25_vm0, %v3121_v19 }
0x4361   :  { %v3449_v36 = vpop.permute.xlu0 %3448 }
0x4362   :  { %6795 = vmatmul.mubr.msk.f32.vlgmr.msra.gmra.mxu0 %vm25_vm0, %v3449_v36 }
0x4363   :  { %6798 = vmatpush3.msra.mxu0 %v8001_v11  ;;  %6799 = vmatprep.mubr.msk.f32.mxu0 %vm7447_vm1, %v7446_v6 }
0x4364   :  { %6807 = vmatprep.subr.mxu0 %v7446_v6 }
0x43b1   :  { %v8055_v26 = vpop.f32.mrf.mxu1 }
0x43b2   :  { %v3228_v10 = vadd.f32 %v8055_v26, %v8027_v8 }
0x43b3   :  { %v3222_v27 = vpop.f32.mrf.mxu1 }
0x43b4   :  { %v3223_v16 = vadd.f32 %v8027_v8, %v3222_v27 }
0x4422   :  { %v3518_v29 = vpop.f32.mrf.mxu0 }
0x4423   :  { %v3522_v28 = vadd.f32 %v3518_v29, %v3223_v16 }
0x4424   :  { %v6796_v44 = vpop.f32.mrf.mxu0 }
0x4425   :  { %7198 = vtanh.f32 %v3522_v28  ;;  %v6283_v31 = vmul.f32 -1.442695, %v3522_v28 }
0x4427   :  { %7200 = vpow2.f32 %v6283_v31 }
0x4432   :  { %v7199_v47 = vpop.eup %7198 }
0x4433   :  { %3532 = vrot.lane.b32.xlu1 %v7199_v47, %s7453_s22 }
0x4434   :  { %v7201_v32 = vpop.eup %7200 }
0x4435   :  { %v3526_v35 = vadd.f32 1.0, %v7201_v32 }
0x4437   :  { %7202 = vrcp.f32 %v3526_v35 }
0x4444   :  { %v7203_v37 = vpop.eup %7202 }
0x4445   :  { %v3530_v41 = vmul.f32 %v7203_v37, %v3440_v2 }
0x44a5   :  { %v3533_v38 = vpop.permute.xlu1 %3532 }
0x44a6   :  { %v3535_v39 = vmul.f32 %v7203_v37, %v3533_v38 }
0x44a8   :  { %3537 = vrot.lane.b32.xlu0 %v3535_v39, %s7454_s23 }
0x451a   :  { %v3538_v42 = vpop.permute.xlu0 %3537 }
0x451b   :  { %v8060_v49 = vadd.f32 %v3538_v42, %v3530_v41 }
0x451d   :  { %7204 = vtanh.f32 %v8060_v49 }
0x451e   :  { %7206 = vtanh.f32 %v8022_v33 }
0x451f   :  { %7208 = vpow2.f32 %v6261_v4 }
0x452a   :  { %v7205_v52 = vpop.eup %7204 }
0x452b   :  { %3543 = vrot.lane.b32.xlu1 %v7205_v52, %s7454_s23  ;;  %v7207_v50 = vpop.eup %7206 }
0x452c   :  { %v7209_v21 = vpop.eup %7208 }
0x452d   :  { %v3031_v53 = vadd.f32 1.0, %v7209_v21 }
0x452f   :  { %3037 = vrot.lane.b32.xlu1 %v7207_v50, %s7453_s22  ;;  %7210 = vrcp.f32 %v3031_v53 }
0x4530   :  { %7212 = vpow2.f32 %v6266_v54 }
0x4531   :  { %7214 = vpow2.f32 %v6268_v55 }
0x453c   :  { %v7211_v7 = vpop.eup %7210 }
0x453d   :  { %v3035_v57 = vmul.f32 %v7211_v7, %v7992_v25  ;;  %v7213_v59 = vpop.eup %7212 }
0x453e   :  { %v3080_v34 = vadd.f32 1.0, %v7213_v59  ;;  %v7215_v61 = vpop.eup %7214 }
0x453f   :  { %v3082_v1 = vadd.f32 1.0, %v7215_v61 }
0x459d   :  { %v3544_v45 = vpop.permute.xlu1 %3543 }
0x459e   :  { %v3546_v15 = vmul.f32 %v7203_v37, %v3544_v45 }
0x45a0   :  { %3548 = vrot.lane.b32.xlu0 %v3546_v15, %s7452_s24 }
0x45a1   :  { %v3038_v46 = vpop.permute.xlu1 %3037 }
0x45a2   :  { %v3040_v13 = vmul.f32 %v7211_v7, %v3038_v46 }
0x45a4   :  { %3042 = vrot.lane.b32.xlu1 %v3040_v13, %s7454_s23 }
0x4612   :  { %v3549_v33 = vpop.permute.xlu0 %3548 }
0x4613   :  { %6800 = vmatmul.mubr.msk.f32.vlgmr.msra.gmra.mxu0 %vm25_vm0, %v3549_v33 }
0x4614   :  { %6808 = vmatpush3.msra.mxu0 %v8001_v11  ;;  %6809 = vmatprep.mubr.msk.f32.mxu0 %vm7447_vm1, %v7446_v6 }
0x4615   :  { %6817 = vmatprep.subr.mxu0 %v7446_v6 }
0x4616   :  { %v3043_v3 = vpop.permute.xlu1 %3042 }
0x4617   :  { %v3045_v60 = vadd.f32 %v3043_v3, %v3035_v57 }
0x4619   :  { %7216 = vtanh.f32 %v3045_v60 }
0x461a   :  { %7218 = vrcp.f32 %v3080_v34 }
0x461b   :  { %7220 = vrcp.f32 %v3082_v1 }
0x4626   :  { %v7217_v62 = vpop.eup %7216 }
0x4627   :  { %3048 = vrot.lane.b32.xlu1 %v7217_v62, %s7454_s23  ;;  %v7219_v63 = vpop.eup %7218 }
0x4628   :  { %v7221_v9 = vpop.eup %7220 }
0x462b   :  { %3122 = vrot.lane.b32.xlu1 %v7219_v63, %s7452_s24 }
0x462f   :  { %3126 = vrot.lane.b32.xlu1 %v7221_v9, %s7452_s24 }
0x4699   :  { %v3049_v25 = vpop.permute.xlu1 %3048 }
0x469a   :  { %v3051_v18 = vmul.f32 %v7211_v7, %v3049_v25 }
0x469c   :  { %v6269_v20 = vmul.f32 -1.442695, %v3051_v18 }
0x469d   :  { %v3123_v0 = vpop.permute.xlu1 %3122 }
0x469e   :  { %6776 = vmatprep.mubr.msk.f32.mxu1 %vm25_vm0, %v3123_v0 }
0x46a1   :  { %v3127_v31 = vpop.permute.xlu1 %3126 }
0x46d3   :  { %v3618_v5 = vpop.f32.mrf.mxu0 }
0x46d4   :  { %v3622_v12 = vadd.f32 %v3618_v5, %v3228_v10 }
0x46d5   :  { %v6801_v43 = vpop.f32.mrf.mxu0 }
0x46d6   :  { %7222 = vtanh.f32 %v3622_v12  ;;  %v6285_v51 = vmul.f32 -1.442695, %v3622_v12 }
0x46d8   :  { %7224 = vpow2.f32 %v6285_v51 }
0x46e3   :  { %v7223_v40 = vpop.eup %7222 }
0x46e4   :  { %3632 = vrot.lane.b32.xlu0 %v7223_v40, %s7453_s22 }
0x46e5   :  { %v7225_v48 = vpop.eup %7224 }
0x46e6   :  { %v3626_v14 = vadd.f32 1.0, %v7225_v48 }
0x46e8   :  { %7226 = vrcp.f32 %v3626_v14  ;;  %v4047_v14 = vld [vmem:[%s8478_s1 + $0xd0] sm:$0xff] }
0x46e9   :  { %7228 = vpow2.f32 %v6267_v30 }
0x46ea   :  { %7230 = vpow2.f32 %v6269_v20 }
0x46f5   :  { %v7227_v56 = vpop.eup %7226 }
0x46f6   :  { %v3630_v22 = vmul.f32 %v7227_v56, %v8060_v49  ;;  %v7229_v23 = vpop.eup %7228 }
0x46f7   :  { %v3081_v36 = vadd.f32 1.0, %v7229_v23  ;;  %v7231_v26 = vpop.eup %7230 }
0x46f8   :  { %v3083_v27 = vadd.f32 1.0, %v7231_v26 }
0x4756   :  { %v3633_v17 = vpop.permute.xlu0 %3632 }
0x4757   :  { %v3635_v2 = vmul.f32 %v7227_v56, %v3633_v17 }
0x4759   :  { %3637 = vrot.lane.b32.xlu0 %v3635_v2, %s7454_s23 }
0x47cb   :  { %v3638_v24 = vpop.permute.xlu0 %3637 }
0x47cc   :  { %v3640_v19 = vadd.f32 %v3638_v24, %v3630_v22 }
0x47ce   :  { %7232 = vtanh.f32 %v3640_v19 }
0x47cf   :  { %7234 = vrcp.f32 %v3081_v36 }
0x47d0   :  { %7236 = vrcp.f32 %v3083_v27 }
0x47db   :  { %v7233_v16 = vpop.eup %7232 }
0x47dc   :  { %3643 = vrot.lane.b32.xlu0 %v7233_v16, %s7454_s23  ;;  %v7235_v29 = vpop.eup %7234 }
0x47dd   :  { %v7237_v58 = vpop.eup %7236 }
0x47e0   :  { %3124 = vrot.lane.b32.xlu0 %v7235_v29, %s7452_s24 }
0x47e4   :  { %3128 = vrot.lane.b32.xlu0 %v7237_v58, %s7452_s24 }
0x484e   :  { %v3644_v28 = vpop.permute.xlu0 %3643 }
0x484f   :  { %v3646_v44 = vmul.f32 %v7227_v56, %v3644_v28 }
0x4851   :  { %3648 = vrot.lane.b32.xlu1 %v3646_v44, %s7452_s24 }
0x4852   :  { %v3125_v47 = vpop.permute.xlu0 %3124 }
0x4853   :  { %6777 = vmatmul.mubr.msk.f32.gmra.mxu1 %vm25_vm0, %v3125_v47 }
0x4854   :  { %6779 = vmatprep.mubr.msk.f32.mxu1 %vm25_vm0, %v3127_v31 }
0x4856   :  { %v8093_v32 = vpop.permute.xlu0 %3128 }
0x4857   :  { %6780 = vmatmul.mubr.msk.f32.gmra.mxu1 %vm25_vm0, %v8093_v32 }
0x4858   :  { %6804 = vmatprep.mubr.msk.f32.mxu1 %vm7447_vm1, %v7446_v6 }
0x48c3   :  { %v3649_v35 = vpop.permute.xlu1 %3648 }
0x48c4   :  { %6805 = vmatmul.mubr.msk.f32.vlgmr.msra.gmra.mxu1 %vm25_vm0, %v3649_v35 }
0x48c5   :  { %6813 = vmatpush3.msra.mxu1 %v8001_v11  ;;  %6814 = vmatprep.mubr.msk.f32.mxu1 %vm7447_vm1, %v7446_v6 }
0x48c6   :  { %6822 = vmatprep.subr.mxu1 %v7446_v6 }
0x4913   :  { %v6778_v37 = vpop.f32.mrf.mxu1 }
0x4914   :  { %v3238_v60 = vadd.f32 %v6778_v37, %v8027_v8  ;;  %v6294_v37 = vld [vmem:[%s8478_s1 + $0xd8] ss:$0 sm:$0xff] }
0x4915   :  { %v3232_v38 = vpop.f32.mrf.mxu1 }
0x4916   :  { %v3233_v42 = vadd.f32 %v8027_v8, %v3232_v38 }
0x4917   :  { %v8104_v39 = vpop.f32.mrf.mxu1 }
0x4918   :  { %v3248_v35 = vadd.f32 %v8104_v39, %v8027_v8 }
0x4919   :  { %v8106_v41 = vpop.f32.mrf.mxu1 }
0x491a   :  { %v3243_v17 = vadd.f32 %v8027_v8, %v8106_v41 }
0x4984   :  { %v3718_v49 = vpop.f32.mrf.mxu1 }
0x4985   :  { %v3722_v52 = vadd.f32 %v3718_v49, %v3233_v42 }
0x4986   :  { %v6806_v50 = vpop.f32.mrf.mxu1 }
0x4987   :  { %7238 = vtanh.f32 %v3722_v52  ;;  %v6287_v21 = vmul.f32 -1.442695, %v3722_v52 }
0x4989   :  { %7240 = vpow2.f32 %v6287_v21 }
0x4994   :  { %v7239_v4 = vpop.eup %7238 }
0x4995   :  { %3732 = vrot.lane.b32.xlu0 %v7239_v4, %s7453_s22 }
0x4996   :  { %v7241_v53 = vpop.eup %7240 }
0x4997   :  { %v3726_v45 = vadd.f32 1.0, %v7241_v53 }
0x4999   :  { %7242 = vrcp.f32 %v3726_v45 }
0x49a6   :  { %v7243_v15 = vpop.eup %7242 }
0x49a7   :  { %v3730_v13 = vmul.f32 %v7243_v15, %v3640_v19 }
0x4a07   :  { %v3733_v7 = vpop.permute.xlu0 %3732 }
0x4a08   :  { %v3735_v46 = vmul.f32 %v7243_v15, %v3733_v7 }
0x4a0a   :  { %3737 = vrot.lane.b32.xlu1 %v3735_v46, %s7454_s23 }
0x4a7c   :  { %v3738_v54 = vpop.permute.xlu1 %3737 }
0x4a7d   :  { %v3740_v55 = vadd.f32 %v3738_v54, %v3730_v13 }
0x4a7f   :  { %7244 = vtanh.f32 %v3740_v55 }
0x4a8c   :  { %v7245_v33 = vpop.eup %7244 }
0x4a8d   :  { %3743 = vrot.lane.b32.xlu0 %v7245_v33, %s7454_s23 }
0x4aff   :  { %v3744_v57 = vpop.permute.xlu0 %3743 }
0x4b00   :  { %v3746_v59 = vmul.f32 %v7243_v15, %v3744_v57 }
0x4b02   :  { %3748 = vrot.lane.b32.xlu1 %v3746_v59, %s7452_s24 }
0x4b74   :  { %v3749_v3 = vpop.permute.xlu1 %3748 }
0x4b75   :  { %6810 = vmatmul.mubr.msk.f32.vlgmr.msra.gmra.mxu0 %vm25_vm0, %v3749_v3 }
0x4b76   :  { %6818 = vmatpush3.msra.mxu0 %v8001_v11  ;;  %6819 = vmatprep.mubr.msk.f32.mxu0 %vm7447_vm1, %v7446_v6 }
0x4b77   :  { %6827 = vmatprep.subr.mxu0 %v7446_v6 }
0x4c35   :  { %v3818_v34 = vpop.f32.mrf.mxu0 }
0x4c36   :  { %v3822_v61 = vadd.f32 %v3818_v34, %v3238_v60  ;;  %v4151_v60 = vld [vmem:[%s8478_s1 + $0xe8] sm:$0xff]  ;;  %v8158_v34 = vld [vmem:[%s8478_s1 + $0xf8] sm:$0xff] }
0x4c37   :  { %v6811_v1 = vpop.f32.mrf.mxu0 }
0x4c38   :  { %7246 = vtanh.f32 %v3822_v61  ;;  %v6289_v63 = vmul.f32 -1.442695, %v3822_v61 }
0x4c3a   :  { %7248 = vpow2.f32 %v6289_v63  ;;  %v4150_v63 = vld [vmem:[%s8478_s1 + $0xe0] sm:$0xff] }
0x4c45   :  { %v7247_v62 = vpop.eup %7246 }
0x4c46   :  { %3832 = vrot.lane.b32.xlu0 %v7247_v62, %s7453_s22 }
0x4c47   :  { %v7249_v9 = vpop.eup %7248 }
0x4c48   :  { %v3826_v25 = vadd.f32 1.0, %v7249_v9  ;;  %v8170_v9 = vld [vmem:[%s8478_s1 + $0xf0] sm:$0xff] }
0x4c4a   :  { %7250 = vrcp.f32 %v3826_v25 }
0x4c57   :  { %v7251_v11 = vpop.eup %7250 }
0x4c58   :  { %v3830_v5 = vmul.f32 %v7251_v11, %v3740_v55 }
0x4cb8   :  { %v3833_v0 = vpop.permute.xlu0 %3832 }
0x4cb9   :  { %v3835_v10 = vmul.f32 %v7251_v11, %v3833_v0 }
0x4cbb   :  { %3837 = vrot.lane.b32.xlu1 %v3835_v10, %s7454_s23 }
0x4d2d   :  { %v3838_v12 = vpop.permute.xlu1 %3837 }
0x4d2e   :  { %v3840_v43 = vadd.f32 %v3838_v12, %v3830_v5 }
0x4d30   :  { %7252 = vtanh.f32 %v3840_v43 }
0x4d3d   :  { %v7253_v40 = vpop.eup %7252 }
0x4d3e   :  { %3843 = vrot.lane.b32.xlu0 %v7253_v40, %s7454_s23  ;;  %v6297_v40 = vld [vmem:[%s8478_s1 + $0x100] ss:$0 sm:$0xff] }
0x4db0   :  { %v3844_v51 = vpop.permute.xlu0 %3843 }
0x4db1   :  { %v3846_v48 = vmul.f32 %v7251_v11, %v3844_v51 }
0x4db3   :  { %3848 = vrot.lane.b32.xlu1 %v3846_v48, %s7452_s24 }
0x4e25   :  { %v3849_v56 = vpop.permute.xlu1 %3848 }
0x4e26   :  { %6815 = vmatmul.mubr.msk.f32.vlgmr.msra.gmra.mxu1 %vm25_vm0, %v3849_v56 }
0x4e27   :  { %6823 = vmatpush3.msra.mxu1 %v4047_v14  ;;  %6824 = vmatprep.mubr.msk.f32.mxu1 %vm7447_vm1, %v7446_v6 }
0x4e28   :  { %6834 = vmatprep.subr.mxu1 %v7446_v6 }
0x4e2a   :  { %6825 = vmatmul.mubr.msk.f32.vlgmr.msra.gmra.mxu1 %vm25_vm0, %v8093_v32 }
0x4e2b   :  { %6838 = vmatprep.mubr.msk.f32.mxu1 %vm7447_vm1, %v7446_v6  ;;  %6835 = vmatpush3.msra.mxu1 %v8158_v34 }
0x4e2c   :  { %6836 = vmatprep.subr.mxu1 %v7446_v6 }
0x4e2d   :  { %6837 = vmatpush3.msra.mxu1 %v8170_v9 }
0x4e2e   :  { %6839 = vmatmul.mubr.f32.vlgmr.msra.gmra.mxu1 %v7446_v6  ;;  %6848 = vmatprep.subr.mxu1 %v7446_v6 }
0x4e2f   :  { %6852 = vmatprep.mubr.msk.f32.mxu1 %vm7447_vm1, %v7446_v6  ;;  %6849 = vmatpush3.msra.mxu1 %v8158_v34 }
0x4e30   :  { %6850 = vmatprep.subr.mxu1 %v7446_v6 }
0x4e31   :  { %6851 = vmatpush3.msra.mxu1 %v8170_v9 }
0x4e32   :  { %6862 = vmatprep.subr.mxu1 %v7446_v6 }
0x4ee6   :  { %v3918_v2 = vpop.f32.mrf.mxu1 }
0x4ee7   :  { %v3922_v30 = vadd.f32 %v3918_v2, %v3243_v17 }
0x4ee8   :  { %v6816_v18 = vpop.f32.mrf.mxu1 }
0x4ee9   :  { %7254 = vtanh.f32 %v3922_v30  ;;  %v6291_v24 = vmul.f32 -1.442695, %v3922_v30 }
0x4eea   :  { %v4119_v20 = vpop.f32.mrf.mxu1 }
0x4eeb   :  { %7256 = vpow2.f32 %v6291_v24  ;;  %v4120_v49 = vadd.f32 %v6294_v37, %v4119_v20 }
0x4eec   :  { %v6826_v22 = vpop.f32.mrf.mxu1 }
0x4eed   :  { %v6296_v21 = vmul.f32 -1.442695, %v4120_v49 }
0x4eee   :  { %v4298_v12 = vpop.f32.mrf.mxu1 }
0x4ef6   :  { %v7255_v23 = vpop.eup %7254 }
0x4ef7   :  { %3932 = vrot.lane.b32.xlu0 %v7255_v23, %s7453_s22 }
0x4ef8   :  { %v7257_v19 = vpop.eup %7256 }
0x4ef9   :  { %v3926_v36 = vadd.f32 1.0, %v7257_v19 }
0x4efb   :  { %7258 = vrcp.f32 %v3926_v36 }
0x4f08   :  { %v7259_v26 = vpop.eup %7258 }
0x4f09   :  { %v3930_v29 = vmul.f32 %v7259_v26, %v3840_v43  ;;  %v6840_v43 = vpop.f32.mrf.mxu1 }
0x4f69   :  { %v3933_v27 = vpop.permute.xlu0 %3932 }
0x4f6a   :  { %v3935_v16 = vmul.f32 %v7259_v26, %v3933_v27 }
0x4f6c   :  { %3937 = vrot.lane.b32.xlu1 %v3935_v16, %s7454_s23 }
0x4fde   :  { %v3938_v58 = vpop.permute.xlu1 %3937 }
0x4fdf   :  { %v3940_v28 = vadd.f32 %v3938_v58, %v3930_v29 }
0x4fe1   :  { %7260 = vtanh.f32 %v3940_v28 }
0x4fee   :  { %v7261_v44 = vpop.eup %7260 }
0x4fef   :  { %3943 = vrot.lane.b32.xlu0 %v7261_v44, %s7454_s23 }
0x5061   :  { %v3944_v47 = vpop.permute.xlu0 %3943 }
0x5062   :  { %v3946_v31 = vmul.f32 %v7259_v26, %v3944_v47 }
0x5064   :  { %3948 = vrot.lane.b32.xlu1 %v3946_v31, %s7452_s24 }
0x50d6   :  { %v3949_v32 = vpop.permute.xlu1 %3948 }
0x50d7   :  { %6820 = vmatmul.mubr.msk.f32.vlgmr.msra.gmra.mxu0 %vm25_vm0, %v3949_v32 }
0x50d8   :  { %6831 = vmatprep.mubr.msk.f32.mxu0 %vm7447_vm1, %v7446_v6  ;;  %6828 = vmatpush3.msra.mxu0 %v4151_v60 }
0x50d9   :  { %6829 = vmatprep.subr.mxu0 %v7446_v6 }
0x50da   :  { %6830 = vmatpush3.msra.mxu0 %v4150_v63 }
0x50db   :  { %6841 = vmatprep.subr.mxu0 %v7446_v6 }
0x5197   :  { %v4018_v38 = vpop.f32.mrf.mxu0 }
0x5198   :  { %v4022_v41 = vadd.f32 %v4018_v38, %v3248_v35 }
0x5199   :  { %v6821_v42 = vpop.f32.mrf.mxu0 }
0x519a   :  { %7262 = vtanh.f32 %v4022_v41  ;;  %v6293_v4 = vmul.f32 -1.442695, %v4022_v41 }
0x519b   :  { %7264 = vtanh.f32 %v4120_v49 }
0x519c   :  { %7266 = vpow2.f32 %v6293_v4 }
0x519d   :  { %7268 = vpow2.f32 %v6296_v21 }
0x51a7   :  { %v7263_v52 = vpop.eup %7262 }
0x51a8   :  { %4032 = vrot.lane.b32.xlu0 %v7263_v52, %s7453_s22  ;;  %v7265_v50 = vpop.eup %7264 }
0x51a9   :  { %v7267_v8 = vpop.eup %7266 }
0x51aa   :  { %v4026_v39 = vadd.f32 1.0, %v7267_v8  ;;  %v7269_v53 = vpop.eup %7268 }
0x51ab   :  { %v4126_v45 = vadd.f32 1.0, %v7269_v53 }
0x51ac   :  { %4131 = vrot.lane.b32.xlu0 %v7265_v50, %s7453_s22  ;;  %7270 = vrcp.f32 %v4026_v39 }
0x51ad   :  { %7272 = vrcp.f32 %v4126_v45 }
0x51b9   :  { %v7271_v15 = vpop.eup %7270 }
0x51ba   :  { %v7273_v13 = vpop.eup %7272  ;;  %v4030_v57 = vmul.f32 %v7271_v15, %v3940_v28 }
0x521a   :  { %v4033_v7 = vpop.permute.xlu0 %4032 }
0x521b   :  { %v4035_v46 = vmul.f32 %v7271_v15, %v4033_v7 }
0x521d   :  { %4037 = vrot.lane.b32.xlu1 %v4035_v46, %s7454_s23 }
0x521e   :  { %v4132_v54 = vpop.permute.xlu0 %4131 }
0x521f   :  { %v4134_v55 = vmul.f32 %v7273_v13, %v4132_v54 }
0x5221   :  { %7274 = vtanh.f32 %v4134_v55 }
0x522e   :  { %v7275_v33 = vpop.eup %7274 }
0x522f   :  { %4137 = vrot.lane.b32.xlu0 %v7275_v33, %s7449_s30 }
0x528f   :  { %v4038_v59 = vpop.permute.xlu1 %4037 }
0x5290   :  { %v4040_v3 = vadd.f32 %v4038_v59, %v4030_v57 }
0x5292   :  { %7276 = vtanh.f32 %v4040_v3 }
0x529f   :  { %v7277_v61 = vpop.eup %7276 }
0x52a0   :  { %4043 = vrot.lane.b32.xlu1 %v7277_v61, %s7454_s23 }
0x52a1   :  { %v4138_v1 = vpop.permute.xlu0 %4137 }
0x52a2   :  { %v4140_v62 = vmul.f32 %v7273_v13, %v4138_v1 }
0x52a4   :  { %4146 = vrot.lane.b32.xlu0 %v4140_v62, %s7455_s14 }
0x5312   :  { %v4044_v25 = vpop.permute.xlu1 %4043 }
0x5313   :  { %v4046_v11 = vmul.f32 %v7271_v15, %v4044_v25 }
0x5315   :  { %4142 = vrot.lane.b32.xlu1 %v4046_v11, %s7452_s24 }
0x5316   :  { %v4147_v0 = vpop.permute.xlu0 %4146 }
0x5387   :  { %v4143_v10 = vpop.permute.xlu1 %4142 }
0x5388   :  { %v8184_v5 = vsel %vm25_vm0, %v4143_v10, %v4147_v0 }
0x5389   :  { %6832 = vmatmul.mubr.msk.f32.vlgmr.msra.gmra.mxu0 %vm157_vm2, %v8184_v5 }
0x538a   :  { %6842 = vmatpush3.msra.mxu0 %v8158_v34  ;;  %6845 = vmatprep.mubr.msk.f32.mxu0 %vm7447_vm1, %v7446_v6 }
0x538b   :  { %6843 = vmatprep.subr.mxu0 %v7446_v6 }
0x538c   :  { %6844 = vmatpush3.msra.mxu0 %v8170_v9 }
0x538d   :  { %6855 = vmatprep.subr.mxu0 %v7446_v6 }
0x5449   :  { %v4226_v51 = vpop.f32.mrf.mxu0 }
0x544a   :  { %v8197_v48 = vadd.f32 %v6297_v40, %v4226_v51 }
0x544b   :  { %v6833_v14 = vpop.f32.mrf.mxu0 }
0x544c   :  { %v4302_v56 = vadd.f32 %v4298_v12, %v8197_v48 }
0x544e   :  { %7278 = vtanh.f32 %v4302_v56  ;;  %v6299_v2 = vmul.f32 -1.442695, %v4302_v56 }
0x5450   :  { %7280 = vpow2.f32 %v6299_v2 }
0x545b   :  { %v7279_v17 = vpop.eup %7278 }
0x545c   :  { %4312 = vrot.lane.b32.xlu1 %v7279_v17, %s7448_s29 }
0x545d   :  { %v7281_v30 = vpop.eup %7280 }
0x545e   :  { %v4306_v18 = vadd.f32 1.0, %v7281_v30 }
0x5460   :  { %7282 = vrcp.f32 %v4306_v18 }
0x546d   :  { %v7283_v20 = vpop.eup %7282 }
0x546e   :  { %v4310_v24 = vmul.f32 0.0, %v7283_v20 }
0x54ce   :  { %v4313_v22 = vpop.permute.xlu1 %4312 }
0x54cf   :  { %v4315_v23 = vmul.f32 %v7283_v20, %v4313_v22 }
0x54d1   :  { %4317 = vrot.lane.b32.xlu0 %v4315_v23, %s7449_s30 }
0x5543   :  { %v4318_v19 = vpop.permute.xlu0 %4317 }
0x5544   :  { %v4320_v36 = vadd.f32 %v4318_v19, %v4310_v24 }
0x5546   :  { %7284 = vtanh.f32 %v4320_v36 }
0x5553   :  { %v7285_v26 = vpop.eup %7284 }
0x5554   :  { %4323 = vrot.lane.b32.xlu1 %v7285_v26, %s7449_s30 }
0x55c6   :  { %v4324_v27 = vpop.permute.xlu1 %4323 }
0x55c7   :  { %v4326_v16 = vmul.f32 %v7283_v20, %v4324_v27 }
0x55c9   :  { %4328 = vrot.lane.b32.xlu0 %v4326_v16, %s7450_s3 }
0x563b   :  { %v4329_v29 = vpop.permute.xlu0 %4328 }
0x563c   :  { %6846 = vmatmul.mubr.msk.f32.vlgmr.msra.gmra.mxu0 %vm157_vm2, %v4329_v29 }
0x563d   :  { %6856 = vmatpush3.msra.mxu0 %v8158_v34  ;;  %6859 = vmatprep.mubr.msk.f32.mxu0 %vm7447_vm1, %v7446_v6 }
0x563e   :  { %6857 = vmatprep.subr.mxu0 %v7446_v6 }
0x563f   :  { %6858 = vmatpush3.msra.mxu0 %v8170_v9 }
0x5640   :  { %6869 = vmatprep.subr.mxu0 %v7446_v6 }
0x56fc   :  { %v4398_v58 = vpop.f32.mrf.mxu0 }
0x56fd   :  { %v4402_v28 = vadd.f32 %v4398_v58, %v8197_v48 }
0x56fe   :  { %v6847_v44 = vpop.f32.mrf.mxu0 }
0x56ff   :  { %7286 = vtanh.f32 %v4402_v28  ;;  %v6301_v31 = vmul.f32 -1.442695, %v4402_v28 }
0x5701   :  { %7288 = vpow2.f32 %v6301_v31 }
0x570c   :  { %v7287_v47 = vpop.eup %7286 }
0x570d   :  { %4412 = vrot.lane.b32.xlu1 %v7287_v47, %s7448_s29 }
0x570e   :  { %v7289_v32 = vpop.eup %7288 }
0x570f   :  { %v4406_v35 = vadd.f32 1.0, %v7289_v32 }
0x5711   :  { %7290 = vrcp.f32 %v4406_v35 }
0x571e   :  { %v7291_v37 = vpop.eup %7290 }
0x571f   :  { %v4410_v42 = vmul.f32 %v7291_v37, %v4320_v36 }
0x577f   :  { %v4413_v38 = vpop.permute.xlu1 %4412 }
0x5780   :  { %v4415_v41 = vmul.f32 %v7291_v37, %v4413_v38 }
0x5782   :  { %4417 = vrot.lane.b32.xlu0 %v4415_v41, %s7449_s30 }
0x57f4   :  { %v4418_v49 = vpop.permute.xlu0 %4417 }
0x57f5   :  { %v4420_v52 = vadd.f32 %v4418_v49, %v4410_v42 }
0x57f7   :  { %7292 = vtanh.f32 %v4420_v52 }
0x5804   :  { %v7293_v50 = vpop.eup %7292 }
0x5805   :  { %4423 = vrot.lane.b32.xlu1 %v7293_v50, %s7449_s30 }
0x5877   :  { %v4424_v4 = vpop.permute.xlu1 %4423 }
0x5878   :  { %v4426_v21 = vmul.f32 %v7291_v37, %v4424_v4 }
0x587a   :  { %4428 = vrot.lane.b32.xlu0 %v4426_v21, %s7450_s3 }
0x58ec   :  { %v4429_v8 = vpop.permute.xlu0 %4428 }
0x58ed   :  { %6853 = vmatmul.mubr.msk.f32.vlgmr.msra.gmra.mxu1 %vm157_vm2, %v4429_v8 }
0x58ee   :  { %6863 = vmatpush3.msra.mxu1 %v8158_v34  ;;  %6866 = vmatprep.mubr.msk.f32.mxu1 %vm7447_vm1, %v7446_v6 }
0x58ef   :  { %6864 = vmatprep.subr.mxu1 %v7446_v6 }
0x58f0   :  { %6865 = vmatpush3.msra.mxu1 %v8170_v9 }
0x58f1   :  { %6876 = vmatprep.subr.mxu1 %v7446_v6 }
0x59ad   :  { %v4498_v39 = vpop.f32.mrf.mxu1 }
0x59ae   :  { %v4502_v53 = vadd.f32 %v4498_v39, %v8197_v48 }
0x59af   :  { %v6854_v45 = vpop.f32.mrf.mxu1 }
0x59b0   :  { %7294 = vtanh.f32 %v4502_v53  ;;  %v6303_v7 = vmul.f32 -1.442695, %v4502_v53 }
0x59b2   :  { %7296 = vpow2.f32 %v6303_v7 }
0x59bd   :  { %v7295_v15 = vpop.eup %7294 }
0x59be   :  { %4512 = vrot.lane.b32.xlu1 %v7295_v15, %s7448_s29 }
0x59bf   :  { %v7297_v46 = vpop.eup %7296 }
0x59c0   :  { %v4506_v13 = vadd.f32 1.0, %v7297_v46 }
0x59c2   :  { %7298 = vrcp.f32 %v4506_v13  ;;  %v5028_v13 = vld [vmem:[%s8478_s1 + $0x110] sm:$0xff] }
0x59cf   :  { %v7299_v54 = vpop.eup %7298 }
0x59d0   :  { %v4510_v57 = vmul.f32 %v7299_v54, %v4420_v52 }
0x5a30   :  { %v4513_v55 = vpop.permute.xlu1 %4512 }
0x5a31   :  { %v4515_v33 = vmul.f32 %v7299_v54, %v4513_v55  ;;  %v5027_v55 = vld [vmem:[%s8478_s1 + $0x108] sm:$0xff] }
0x5a33   :  { %4517 = vrot.lane.b32.xlu0 %v4515_v33, %s7449_s30 }
0x5aa5   :  { %v4518_v59 = vpop.permute.xlu0 %4517 }
0x5aa6   :  { %v4520_v3 = vadd.f32 %v4518_v59, %v4510_v57 }
0x5aa8   :  { %7300 = vtanh.f32 %v4520_v3 }
0x5ab5   :  { %v7301_v60 = vpop.eup %7300 }
0x5ab6   :  { %4523 = vrot.lane.b32.xlu1 %v7301_v60, %s7449_s30 }
0x5b28   :  { %v4524_v61 = vpop.permute.xlu1 %4523 }
0x5b29   :  { %v4526_v1 = vmul.f32 %v7299_v54, %v4524_v61 }
0x5b2b   :  { %4528 = vrot.lane.b32.xlu0 %v4526_v1, %s7450_s3 }
0x5b9d   :  { %v4529_v62 = vpop.permute.xlu0 %4528 }
0x5b9e   :  { %6860 = vmatmul.mubr.msk.f32.vlgmr.msra.gmra.mxu0 %vm157_vm2, %v4529_v62 }
0x5b9f   :  { %6870 = vmatpush3.msra.mxu0 %v8158_v34  ;;  %6873 = vmatprep.mubr.msk.f32.mxu0 %vm7447_vm1, %v7446_v6 }
0x5ba0   :  { %6871 = vmatprep.subr.mxu0 %v7446_v6 }
0x5ba1   :  { %6872 = vmatpush3.msra.mxu0 %v8170_v9 }
0x5ba2   :  { %6883 = vmatprep.subr.mxu0 %v7446_v6 }
0x5c5e   :  { %v4598_v63 = vpop.f32.mrf.mxu0 }
0x5c5f   :  { %v4602_v25 = vadd.f32 %v4598_v63, %v8197_v48 }
0x5c60   :  { %v6861_v11 = vpop.f32.mrf.mxu0 }
0x5c61   :  { %7302 = vtanh.f32 %v4602_v25  ;;  %v6305_v10 = vmul.f32 -1.442695, %v4602_v25 }
0x5c63   :  { %7304 = vpow2.f32 %v6305_v10 }
0x5c6e   :  { %v7303_v0 = vpop.eup %7302 }
0x5c6f   :  { %4612 = vrot.lane.b32.xlu1 %v7303_v0, %s7448_s29 }
0x5c70   :  { %v7305_v12 = vpop.eup %7304 }
0x5c71   :  { %v4606_v43 = vadd.f32 1.0, %v7305_v12 }
0x5c73   :  { %7306 = vrcp.f32 %v4606_v43 }
0x5c80   :  { %v7307_v40 = vpop.eup %7306 }
0x5c81   :  { %v4610_v56 = vmul.f32 %v7307_v40, %v4520_v3 }
0x5ce1   :  { %v4613_v51 = vpop.permute.xlu1 %4612 }
0x5ce2   :  { %v4615_v14 = vmul.f32 %v7307_v40, %v4613_v51 }
0x5ce4   :  { %4617 = vrot.lane.b32.xlu0 %v4615_v14, %s7449_s30 }
0x5d56   :  { %v4618_v17 = vpop.permute.xlu0 %4617 }
0x5d57   :  { %v4620_v2 = vadd.f32 %v4618_v17, %v4610_v56  ;;  %v6314_v56 = vld [vmem:[%s8478_s1 + $0x118] ss:$0 sm:$0xff] }
0x5d59   :  { %7308 = vtanh.f32 %v4620_v2 }
0x5d66   :  { %v7309_v30 = vpop.eup %7308 }
0x5d67   :  { %4623 = vrot.lane.b32.xlu1 %v7309_v30, %s7449_s30 }
0x5dd9   :  { %v4624_v18 = vpop.permute.xlu1 %4623 }
0x5dda   :  { %v4626_v20 = vmul.f32 %v7307_v40, %v4624_v18 }
0x5ddc   :  { %4628 = vrot.lane.b32.xlu0 %v4626_v20, %s7450_s3 }
0x5e4e   :  { %v4629_v22 = vpop.permute.xlu0 %4628 }
0x5e4f   :  { %6867 = vmatmul.mubr.msk.f32.vlgmr.msra.gmra.mxu1 %vm157_vm2, %v4629_v22 }
0x5e50   :  { %6877 = vmatpush3.msra.mxu1 %v8158_v34  ;;  %6880 = vmatprep.mubr.msk.f32.mxu1 %vm7447_vm1, %v7446_v6 }
0x5e51   :  { %6878 = vmatprep.subr.mxu1 %v7446_v6 }
0x5e52   :  { %6879 = vmatpush3.msra.mxu1 %v8170_v9 }
0x5e53   :  { %6890 = vmatprep.subr.mxu1 %v7446_v6 }
0x5f0f   :  { %v4698_v23 = vpop.f32.mrf.mxu1 }
0x5f10   :  { %v4702_v24 = vadd.f32 %v4698_v23, %v8197_v48 }
0x5f11   :  { %v6868_v19 = vpop.f32.mrf.mxu1 }
0x5f12   :  { %7310 = vtanh.f32 %v4702_v24  ;;  %v6307_v26 = vmul.f32 -1.442695, %v4702_v24 }
0x5f14   :  { %7312 = vpow2.f32 %v6307_v26 }
0x5f1f   :  { %v7311_v36 = vpop.eup %7310 }
0x5f20   :  { %4712 = vrot.lane.b32.xlu1 %v7311_v36, %s7448_s29 }
0x5f21   :  { %v7313_v27 = vpop.eup %7312 }
0x5f22   :  { %v4706_v16 = vadd.f32 1.0, %v7313_v27 }
0x5f24   :  { %7314 = vrcp.f32 %v4706_v16 }
0x5f31   :  { %v7315_v29 = vpop.eup %7314 }
0x5f32   :  { %v4710_v44 = vmul.f32 %v7315_v29, %v4620_v2 }
0x5f92   :  { %v4713_v58 = vpop.permute.xlu1 %4712 }
0x5f93   :  { %v4715_v28 = vmul.f32 %v7315_v29, %v4713_v58 }
0x5f95   :  { %4717 = vrot.lane.b32.xlu0 %v4715_v28, %s7449_s30 }
0x6007   :  { %v4718_v47 = vpop.permute.xlu0 %4717 }
0x6008   :  { %v4720_v31 = vadd.f32 %v4718_v47, %v4710_v44 }
0x600a   :  { %7316 = vtanh.f32 %v4720_v31 }
0x6017   :  { %v7317_v32 = vpop.eup %7316 }
0x6018   :  { %4723 = vrot.lane.b32.xlu1 %v7317_v32, %s7449_s30 }
0x608a   :  { %v4724_v35 = vpop.permute.xlu1 %4723 }
0x608b   :  { %v4726_v37 = vmul.f32 %v7315_v29, %v4724_v35 }
0x608d   :  { %4728 = vrot.lane.b32.xlu0 %v4726_v37, %s7450_s3  ;;  %v5134_v37 = vld [vmem:[%s8478_s1 + $0x138] sm:$0xff] }
0x60ff   :  { %v4729_v38 = vpop.permute.xlu0 %4728 }
0x6100   :  { %6874 = vmatmul.mubr.msk.f32.vlgmr.msra.gmra.mxu0 %vm157_vm2, %v4729_v38  ;;  %v5133_v38 = vld [vmem:[%s8478_s1 + $0x130] sm:$0xff] }
0x6101   :  { %6884 = vmatpush3.msra.mxu0 %v8158_v34  ;;  %6887 = vmatprep.mubr.msk.f32.mxu0 %vm7447_vm1, %v7446_v6 }
0x6102   :  { %6885 = vmatprep.subr.mxu0 %v7446_v6 }
0x6103   :  { %6886 = vmatpush3.msra.mxu0 %v8170_v9 }
0x6104   :  { %6897 = vmatprep.subr.mxu0 %v7446_v6 }
0x61c0   :  { %v4798_v41 = vpop.f32.mrf.mxu0 }
0x61c1   :  { %v4802_v42 = vadd.f32 %v4798_v41, %v8197_v48  ;;  %v5132_v41 = vld [vmem:[%s8478_s1 + $0x128] sm:$0xff] }
0x61c2   :  { %v6875_v49 = vpop.f32.mrf.mxu0 }
0x61c3   :  { %7318 = vtanh.f32 %v4802_v42  ;;  %v6309_v50 = vmul.f32 -1.442695, %v4802_v42 }
0x61c5   :  { %7320 = vpow2.f32 %v6309_v50  ;;  %v5131_v50 = vld [vmem:[%s8478_s1 + $0x120] sm:$0xff] }
0x61d0   :  { %v7319_v52 = vpop.eup %7318 }
0x61d1   :  { %4812 = vrot.lane.b32.xlu1 %v7319_v52, %s7448_s29 }
0x61d2   :  { %v7321_v34 = vpop.eup %7320 }
0x61d3   :  { %v4806_v4 = vadd.f32 1.0, %v7321_v34  ;;  %v8315_v34 = vld [vmem:[%s8478_s1 + $0x140] sm:$0xff] }
0x61d5   :  { %7322 = vrcp.f32 %v4806_v4 }
0x61e2   :  { %v7323_v21 = vpop.eup %7322 }
0x61e3   :  { %v4810_v9 = vmul.f32 %v7323_v21, %v4720_v31 }
0x6243   :  { %v4813_v8 = vpop.permute.xlu1 %4812 }
0x6244   :  { %v4815_v39 = vmul.f32 %v7323_v21, %v4813_v8 }
0x6246   :  { %4817 = vrot.lane.b32.xlu0 %v4815_v39, %s7449_s30 }
0x62b8   :  { %v4818_v53 = vpop.permute.xlu0 %4817 }
0x62b9   :  { %v4820_v45 = vadd.f32 %v4818_v53, %v4810_v9 }
0x62bb   :  { %7324 = vtanh.f32 %v4820_v45 }
0x62c8   :  { %v7325_v15 = vpop.eup %7324 }
0x62c9   :  { %4823 = vrot.lane.b32.xlu1 %v7325_v15, %s7449_s30  ;;  %v6317_v15 = vld [vmem:[%s8478_s1 + $0x148] ss:$0 sm:$0xff] }
0x633b   :  { %v4824_v7 = vpop.permute.xlu1 %4823 }
0x633c   :  { %v4826_v46 = vmul.f32 %v7323_v21, %v4824_v7 }
0x633e   :  { %4828 = vrot.lane.b32.xlu0 %v4826_v46, %s7450_s3 }
0x63b0   :  { %v4829_v54 = vpop.permute.xlu0 %4828 }
0x63b1   :  { %6881 = vmatmul.mubr.msk.f32.vlgmr.msra.gmra.mxu1 %vm157_vm2, %v4829_v54 }
0x63b2   :  { %6891 = vmatpush3.msra.mxu1 %v5028_v13  ;;  %6894 = vmatprep.mubr.msk.f32.mxu1 %vm7447_vm1, %v7446_v6 }
0x63b3   :  { %6892 = vmatprep.subr.mxu1 %v7446_v6 }
0x63b4   :  { %6893 = vmatpush3.msra.mxu1 %v5027_v55 }
0x63b5   :  { %6895 = vmatmul.mubr.msk.f32.vlgmr.msra.gmra.mxu1 %vm157_vm2, %v8184_v5  ;;  %6908 = vmatprep.subr.mxu1 %v7446_v6 }
0x63b6   :  { %6910 = vmatprep.mubr.msk.f32.mxu1 %vm7447_vm1, %v7446_v6  ;;  %6909 = vmatpush3.msra.mxu1 %v8315_v34 }
0x63b7   :  { %6913 = vmatprep.subr.mxu1 %v7446_v6 }
0x63b9   :  { %6911 = vmatmul.mubr.f32.vlgmr.msra.gmra.mxu1 %v7446_v6 }
0x63ba   :  { %6914 = vmatpush3.msra.mxu1 %v8315_v34  ;;  %6915 = vmatprep.mubr.msk.f32.mxu1 %vm7447_vm1, %v7446_v6 }
0x63bb   :  { %6923 = vmatprep.subr.mxu1 %v7446_v6 }
0x6471   :  { %v4898_v33 = vpop.f32.mrf.mxu1 }
0x6472   :  { %v4902_v57 = vadd.f32 %v4898_v33, %v8197_v48 }
0x6473   :  { %v6882_v59 = vpop.f32.mrf.mxu1 }
0x6474   :  { %7326 = vtanh.f32 %v4902_v57  ;;  %v6311_v1 = vmul.f32 -1.442695, %v4902_v57 }
0x6475   :  { %v5100_v3 = vpop.f32.mrf.mxu1 }
0x6476   :  { %7328 = vpow2.f32 %v6311_v1  ;;  %v5101_v18 = vadd.f32 %v6314_v56, %v5100_v3 }
0x6477   :  { %v6896_v60 = vpop.f32.mrf.mxu1 }
0x6478   :  { %v6316_v24 = vmul.f32 -1.442695, %v5101_v18 }
0x6479   :  { %v5280_v53 = vpop.f32.mrf.mxu1 }
0x6481   :  { %v7327_v61 = vpop.eup %7326 }
0x6482   :  { %4912 = vrot.lane.b32.xlu1 %v7327_v61, %s7448_s29 }
0x6483   :  { %v7329_v62 = vpop.eup %7328 }
0x6484   :  { %v4906_v63 = vadd.f32 1.0, %v7329_v62 }
0x6486   :  { %7330 = vrcp.f32 %v4906_v63 }
0x6493   :  { %v7331_v5 = vpop.eup %7330 }
0x6494   :  { %v4910_v0 = vmul.f32 %v7331_v5, %v4820_v45  ;;  %v6912_v45 = vpop.f32.mrf.mxu1 }
0x64f4   :  { %v4913_v25 = vpop.permute.xlu1 %4912 }
0x64f5   :  { %v4915_v11 = vmul.f32 %v7331_v5, %v4913_v25 }
0x64f7   :  { %4917 = vrot.lane.b32.xlu0 %v4915_v11, %s7449_s30 }
0x6569   :  { %v4918_v10 = vpop.permute.xlu0 %4917 }
0x656a   :  { %v4920_v12 = vadd.f32 %v4918_v10, %v4910_v0 }
0x656c   :  { %7332 = vtanh.f32 %v4920_v12 }
0x6579   :  { %v7333_v43 = vpop.eup %7332 }
0x657a   :  { %4923 = vrot.lane.b32.xlu1 %v7333_v43, %s7449_s30 }
0x65ec   :  { %v4924_v40 = vpop.permute.xlu1 %4923 }
0x65ed   :  { %v4926_v51 = vmul.f32 %v7331_v5, %v4924_v40 }
0x65ef   :  { %4928 = vrot.lane.b32.xlu0 %v4926_v51, %s7450_s3 }
0x6661   :  { %v4929_v14 = vpop.permute.xlu0 %4928 }
0x6662   :  { %6888 = vmatmul.mubr.msk.f32.vlgmr.msra.gmra.mxu0 %vm157_vm2, %v4929_v14 }
0x6663   :  { %6905 = vmatprep.mubr.msk.f32.mxu0 %vm7447_vm1, %v7446_v6  ;;  %6898 = vmatpush3.msra.mxu0 %v5134_v37 }
0x6664   :  { %6899 = vmatprep.subr.mxu0 %v7446_v6 }
0x6665   :  { %6900 = vmatpush3.msra.mxu0 %v5133_v38 }
0x6666   :  { %6901 = vmatprep.subr.mxu0 %v7446_v6 }
0x6667   :  { %6902 = vmatpush3.msra.mxu0 %v5132_v41 }
0x6668   :  { %6903 = vmatprep.subr.mxu0 %v7446_v6 }
0x6669   :  { %6904 = vmatpush3.msra.mxu0 %v5131_v50 }
0x666a   :  { %6918 = vmatprep.subr.mxu0 %v7446_v6 }
0x6722   :  { %v4998_v17 = vpop.f32.mrf.mxu0 }
0x6723   :  { %v5002_v2 = vadd.f32 %v4998_v17, %v8197_v48 }
0x6724   :  { %v6889_v30 = vpop.f32.mrf.mxu0 }
0x6725   :  { %7334 = vtanh.f32 %v5002_v2  ;;  %v6313_v23 = vmul.f32 -1.442695, %v5002_v2 }
0x6726   :  { %7336 = vtanh.f32 %v5101_v18 }
0x6727   :  { %7338 = vpow2.f32 %v6313_v23 }
0x6728   :  { %7340 = vpow2.f32 %v6316_v24 }
0x6732   :  { %v7335_v20 = vpop.eup %7334 }
0x6733   :  { %5012 = vrot.lane.b32.xlu1 %v7335_v20, %s7448_s29  ;;  %v7337_v22 = vpop.eup %7336 }
0x6734   :  { %v7339_v19 = vpop.eup %7338 }
0x6735   :  { %v5006_v36 = vadd.f32 1.0, %v7339_v19  ;;  %v7341_v26 = vpop.eup %7340 }
0x6736   :  { %v5107_v27 = vadd.f32 1.0, %v7341_v26 }
0x6737   :  { %5112 = vrot.lane.b32.xlu1 %v7337_v22, %s7448_s29  ;;  %7342 = vrcp.f32 %v5006_v36 }
0x6738   :  { %7344 = vrcp.f32 %v5107_v27 }
0x6744   :  { %v7343_v48 = vpop.eup %7342 }
0x6745   :  { %v7345_v58 = vpop.eup %7344  ;;  %v5010_v31 = vmul.f32 %v7343_v48, %v4920_v12 }
0x67a5   :  { %v5013_v16 = vpop.permute.xlu1 %5012 }
0x67a6   :  { %v5015_v29 = vmul.f32 %v7343_v48, %v5013_v16 }
0x67a8   :  { %5017 = vrot.lane.b32.xlu0 %v5015_v29, %s7449_s30 }
0x67a9   :  { %v5113_v28 = vpop.permute.xlu1 %5112 }
0x67aa   :  { %v5115_v44 = vmul.f32 %v7345_v58, %v5113_v28 }
0x67ac   :  { %7346 = vtanh.f32 %v5115_v44 }
0x67b9   :  { %v7347_v47 = vpop.eup %7346 }
0x67ba   :  { %5118 = vrot.lane.b32.xlu1 %v7347_v47, %s7451_s11 }
0x681a   :  { %v5018_v32 = vpop.permute.xlu0 %5017 }
0x681b   :  { %v5020_v35 = vadd.f32 %v5018_v32, %v5010_v31 }
0x681d   :  { %7348 = vtanh.f32 %v5020_v35 }
0x682a   :  { %v7349_v42 = vpop.eup %7348 }
0x682b   :  { %5023 = vrot.lane.b32.xlu0 %v7349_v42, %s7449_s30 }
0x682c   :  { %v5119_v49 = vpop.permute.xlu1 %5118 }
0x682d   :  { %v5121_v52 = vmul.f32 %v7345_v58, %v5119_v49 }
0x682f   :  { %5127 = vrot.lane.b32.xlu1 %v5121_v52, %s7452_s24 }
0x689d   :  { %v5024_v4 = vpop.permute.xlu0 %5023 }
0x689e   :  { %v5026_v21 = vmul.f32 %v7343_v48, %v5024_v4 }
0x68a0   :  { %5123 = vrot.lane.b32.xlu0 %v5026_v21, %s7450_s3 }
0x68a1   :  { %v5128_v8 = vpop.permute.xlu1 %5127 }
0x6912   :  { %v5124_v39 = vpop.permute.xlu0 %5123 }
0x6913   :  { %v5130_v9 = vsel %vm157_vm2, %v5124_v39, %v5128_v8 }
0x6914   :  { %6906 = vmatmul.mubr.msk.f32.vlgmr.msra.gmra.mxu0 %vm1068_vm3, %v5130_v9 }
0x6915   :  { %6919 = vmatpush3.msra.mxu0 %v8315_v34  ;;  %6920 = vmatprep.mubr.msk.f32.mxu0 %vm7447_vm1, %v7446_v6 }
0x6916   :  { %6928 = vmatprep.subr.mxu0 %v7446_v6 }
0x69d4   :  { %v5209_v7 = vpop.f32.mrf.mxu0 }
0x69d5   :  { %v8335_v46 = vadd.f32 %v6317_v15, %v5209_v7 }
0x69d6   :  { %v6907_v13 = vpop.f32.mrf.mxu0 }
0x69d7   :  { %v5284_v54 = vadd.f32 %v5280_v53, %v8335_v46 }
0x69d9   :  { %7350 = vtanh.f32 %v5284_v54  ;;  %v6319_v33 = vmul.f32 -1.442695, %v5284_v54 }
0x69db   :  { %7352 = vpow2.f32 %v6319_v33 }
0x69e6   :  { %v7351_v55 = vpop.eup %7350 }
0x69e7   :  { %5294 = vrot.lane.b32.xlu0 %v7351_v55, %s7453_s22 }
0x69e8   :  { %v7353_v57 = vpop.eup %7352 }
0x69e9   :  { %v5288_v59 = vadd.f32 1.0, %v7353_v57 }
0x69eb   :  { %7354 = vrcp.f32 %v5288_v59 }
0x69f8   :  { %v7355_v3 = vpop.eup %7354 }
0x69f9   :  { %v5292_v1 = vmul.f32 0.0, %v7355_v3 }
0x6a59   :  { %v5295_v60 = vpop.permute.xlu0 %5294 }
0x6a5a   :  { %v5297_v61 = vmul.f32 %v7355_v3, %v5295_v60 }
0x6a5c   :  { %5299 = vrot.lane.b32.xlu1 %v5297_v61, %s7454_s23 }
0x6ace   :  { %v5300_v62 = vpop.permute.xlu1 %5299 }
0x6acf   :  { %v5302_v63 = vadd.f32 %v5300_v62, %v5292_v1 }
0x6ad1   :  { %7356 = vtanh.f32 %v5302_v63 }
0x6ade   :  { %v7357_v5 = vpop.eup %7356 }
0x6adf   :  { %5305 = vrot.lane.b32.xlu0 %v7357_v5, %s7454_s23 }
0x6b51   :  { %v5306_v25 = vpop.permute.xlu0 %5305 }
0x6b52   :  { %v5308_v11 = vmul.f32 %v7355_v3, %v5306_v25 }
0x6b54   :  { %5310 = vrot.lane.b32.xlu1 %v5308_v11, %s7452_s24 }
0x6bc6   :  { %v8342_v0 = vpop.permute.xlu1 %5310 }
0x6bc7   :  { %6916 = vmatmul.mubr.msk.f32.vlgmr.msra.gmra.mxu1 %vm25_vm0, %v8342_v0 }
0x6bc8   :  { %6924 = vmatpush3.msra.mxu1 %v8315_v34  ;;  %6925 = vmatprep.mubr.msk.f32.mxu1 %vm7447_vm1, %v7446_v6 }
0x6bc9   :  { %6933 = vmatprep.subr.mxu1 %v7446_v6 }
0x6c87   :  { %v5380_v10 = vpop.f32.mrf.mxu1 }
0x6c88   :  { %v5384_v12 = vadd.f32 %v5380_v10, %v8335_v46 }
0x6c89   :  { %v6917_v43 = vpop.f32.mrf.mxu1 }
0x6c8a   :  { %7358 = vtanh.f32 %v5384_v12  ;;  %v6321_v51 = vmul.f32 -1.442695, %v5384_v12 }
0x6c8c   :  { %7360 = vpow2.f32 %v6321_v51 }
0x6c97   :  { %v7359_v40 = vpop.eup %7358 }
0x6c98   :  { %5394 = vrot.lane.b32.xlu0 %v7359_v40, %s7453_s22 }
0x6c99   :  { %v7361_v14 = vpop.eup %7360 }
0x6c9a   :  { %v5388_v56 = vadd.f32 1.0, %v7361_v14 }
0x6c9c   :  { %7362 = vrcp.f32 %v5388_v56 }
0x6ca9   :  { %v7363_v17 = vpop.eup %7362 }
0x6caa   :  { %v5392_v18 = vmul.f32 %v7363_v17, %v5302_v63 }
0x6d0a   :  { %v5395_v2 = vpop.permute.xlu0 %5394 }
0x6d0b   :  { %v5397_v30 = vmul.f32 %v7363_v17, %v5395_v2 }
0x6d0d   :  { %5399 = vrot.lane.b32.xlu1 %v5397_v30, %s7454_s23 }
0x6d7f   :  { %v5400_v20 = vpop.permute.xlu1 %5399 }
0x6d80   :  { %v5402_v22 = vadd.f32 %v5400_v20, %v5392_v18 }
0x6d82   :  { %7364 = vtanh.f32 %v5402_v22 }
0x6d8f   :  { %v7365_v23 = vpop.eup %7364 }
0x6d90   :  { %5405 = vrot.lane.b32.xlu0 %v7365_v23, %s7454_s23 }
0x6e02   :  { %v5406_v24 = vpop.permute.xlu0 %5405 }
0x6e03   :  { %v5408_v19 = vmul.f32 %v7363_v17, %v5406_v24 }
0x6e05   :  { %5410 = vrot.lane.b32.xlu1 %v5408_v19, %s7452_s24 }
0x6e77   :  { %v8355_v36 = vpop.permute.xlu1 %5410 }
0x6e78   :  { %6921 = vmatmul.mubr.msk.f32.vlgmr.msra.gmra.mxu0 %vm25_vm0, %v8355_v36 }
0x6e79   :  { %6929 = vmatpush3.msra.mxu0 %v8315_v34  ;;  %6930 = vmatprep.mubr.msk.f32.mxu0 %vm7447_vm1, %v7446_v6 }
0x6e7a   :  { %6938 = vmatprep.subr.mxu0 %v7446_v6 }
0x6f38   :  { %v5480_v26 = vpop.f32.mrf.mxu0 }
0x6f39   :  { %v5484_v27 = vadd.f32 %v5480_v26, %v8335_v46 }
0x6f3a   :  { %v6922_v48 = vpop.f32.mrf.mxu0 }
0x6f3b   :  { %7366 = vtanh.f32 %v5484_v27  ;;  %v6323_v29 = vmul.f32 -1.442695, %v5484_v27 }
0x6f3d   :  { %7368 = vpow2.f32 %v6323_v29  ;;  %v6009_v29 = vld [vmem:[%s8478_s1 + $0x150] sm:$0xff] }
0x6f48   :  { %v7367_v16 = vpop.eup %7366 }
0x6f49   :  { %5494 = vrot.lane.b32.xlu0 %v7367_v16, %s7453_s22 }
0x6f4a   :  { %v7369_v58 = vpop.eup %7368 }
0x6f4b   :  { %v5488_v28 = vadd.f32 1.0, %v7369_v58 }
0x6f4d   :  { %7370 = vrcp.f32 %v5488_v28 }
0x6f5a   :  { %v7371_v44 = vpop.eup %7370 }
0x6f5b   :  { %v5492_v32 = vmul.f32 %v7371_v44, %v5402_v22 }
0x6fbb   :  { %v5495_v47 = vpop.permute.xlu0 %5494 }
0x6fbc   :  { %v5497_v31 = vmul.f32 %v7371_v44, %v5495_v47 }
0x6fbe   :  { %5499 = vrot.lane.b32.xlu1 %v5497_v31, %s7454_s23 }
0x7030   :  { %v5500_v35 = vpop.permute.xlu1 %5499 }
0x7031   :  { %v5502_v37 = vadd.f32 %v5500_v35, %v5492_v32 }
0x7033   :  { %7372 = vtanh.f32 %v5502_v37 }
0x7040   :  { %v7373_v38 = vpop.eup %7372 }
0x7041   :  { %5505 = vrot.lane.b32.xlu0 %v7373_v38, %s7454_s23 }
0x70b3   :  { %v5506_v41 = vpop.permute.xlu0 %5505 }
0x70b4   :  { %v5508_v42 = vmul.f32 %v7371_v44, %v5506_v41 }
0x70b6   :  { %5510 = vrot.lane.b32.xlu1 %v5508_v42, %s7452_s24 }
0x7128   :  { %v8368_v49 = vpop.permute.xlu1 %5510 }
0x7129   :  { %6926 = vmatmul.mubr.msk.f32.vlgmr.msra.gmra.mxu1 %vm25_vm0, %v8368_v49 }
0x712a   :  { %6934 = vmatpush3.msra.mxu1 %v8315_v34  ;;  %6935 = vmatprep.mubr.msk.f32.mxu1 %vm7447_vm1, %v7446_v6 }
0x712b   :  { %6943 = vmatprep.subr.mxu1 %v7446_v6 }
0x71e9   :  { %v5580_v52 = vpop.f32.mrf.mxu1 }
0x71ea   :  { %v5584_v50 = vadd.f32 %v5580_v52, %v8335_v46 }
0x71eb   :  { %v6927_v4 = vpop.f32.mrf.mxu1 }
0x71ec   :  { %7374 = vtanh.f32 %v5584_v50  ;;  %v6325_v8 = vmul.f32 -1.442695, %v5584_v50 }
0x71ee   :  { %7376 = vpow2.f32 %v6325_v8 }
0x71f9   :  { %v7375_v21 = vpop.eup %7374 }
0x71fa   :  { %5594 = vrot.lane.b32.xlu0 %v7375_v21, %s7453_s22 }
0x71fb   :  { %v7377_v39 = vpop.eup %7376 }
0x71fc   :  { %v5588_v9 = vadd.f32 1.0, %v7377_v39 }
0x71fe   :  { %7378 = vrcp.f32 %v5588_v9 }
0x720b   :  { %v7379_v53 = vpop.eup %7378 }
0x720c   :  { %v5592_v7 = vmul.f32 %v7379_v53, %v5502_v37 }
0x726c   :  { %v5595_v45 = vpop.permute.xlu0 %5594 }
0x726d   :  { %v5597_v15 = vmul.f32 %v7379_v53, %v5595_v45 }
0x726f   :  { %5599 = vrot.lane.b32.xlu1 %v5597_v15, %s7454_s23 }
0x72e1   :  { %v5600_v13 = vpop.permute.xlu1 %5599 }
0x72e2   :  { %v5602_v54 = vadd.f32 %v5600_v13, %v5592_v7 }
0x72e4   :  { %7380 = vtanh.f32 %v5602_v54 }
0x72f1   :  { %v7381_v55 = vpop.eup %7380 }
0x72f2   :  { %5605 = vrot.lane.b32.xlu0 %v7381_v55, %s7454_s23 }
0x7364   :  { %v5606_v33 = vpop.permute.xlu0 %5605 }
0x7365   :  { %v5608_v57 = vmul.f32 %v7379_v53, %v5606_v33 }
0x7367   :  { %5610 = vrot.lane.b32.xlu1 %v5608_v57, %s7452_s24 }
0x73d9   :  { %v8381_v59 = vpop.permute.xlu1 %5610 }
0x73da   :  { %6931 = vmatmul.mubr.msk.f32.vlgmr.msra.gmra.mxu0 %vm25_vm0, %v8381_v59 }
0x73db   :  { %6939 = vmatpush3.msra.mxu0 %v8315_v34  ;;  %6940 = vmatprep.mubr.msk.f32.mxu0 %vm7447_vm1, %v7446_v6 }
0x73dc   :  { %6948 = vmatprep.subr.mxu0 %v6009_v29 }
0x749a   :  { %v5680_v3 = vpop.f32.mrf.mxu0 }
0x749b   :  { %v5684_v60 = vadd.f32 %v5680_v3, %v8335_v46 }
0x749c   :  { %v6932_v61 = vpop.f32.mrf.mxu0 }
0x749d   :  { %7382 = vtanh.f32 %v5684_v60  ;;  %v6327_v62 = vmul.f32 -1.442695, %v5684_v60 }
0x749f   :  { %7384 = vpow2.f32 %v6327_v62 }
0x74aa   :  { %v7383_v1 = vpop.eup %7382 }
0x74ab   :  { %5694 = vrot.lane.b32.xlu0 %v7383_v1, %s7453_s22 }
0x74ac   :  { %v7385_v63 = vpop.eup %7384 }
0x74ad   :  { %v5688_v5 = vadd.f32 1.0, %v7385_v63 }
0x74af   :  { %7386 = vrcp.f32 %v5688_v5 }
0x74bc   :  { %v7387_v25 = vpop.eup %7386 }
0x74bd   :  { %v5692_v12 = vmul.f32 %v7387_v25, %v5602_v54 }
0x751d   :  { %v5695_v11 = vpop.permute.xlu0 %5694 }
0x751e   :  { %v5697_v10 = vmul.f32 %v7387_v25, %v5695_v11 }
0x7520   :  { %5699 = vrot.lane.b32.xlu1 %v5697_v10, %s7454_s23 }
0x7592   :  { %v5700_v43 = vpop.permute.xlu1 %5699 }
0x7593   :  { %v5702_v40 = vadd.f32 %v5700_v43, %v5692_v12 }
0x7595   :  { %7388 = vtanh.f32 %v5702_v40 }
0x75a2   :  { %v7389_v51 = vpop.eup %7388 }
0x75a3   :  { %5705 = vrot.lane.b32.xlu0 %v7389_v51, %s7454_s23 }
0x7615   :  { %v5706_v14 = vpop.permute.xlu0 %5705 }
0x7616   :  { %v5708_v56 = vmul.f32 %v7387_v25, %v5706_v14 }
0x7618   :  { %5710 = vrot.lane.b32.xlu1 %v5708_v56, %s7452_s24 }
0x768a   :  { %v5711_v17 = vpop.permute.xlu1 %5710 }
0x768b   :  { %6936 = vmatmul.mubr.msk.f32.vlgmr.msra.gmra.mxu1 %vm25_vm0, %v5711_v17 }
0x768c   :  { %6944 = vmatpush3.msra.mxu1 %v8315_v34  ;;  %6945 = vmatprep.mubr.msk.f32.mxu1 %vm7447_vm1, %v7446_v6 }
0x774b   :  { %v5780_v2 = vpop.f32.mrf.mxu1 }
0x774c   :  { %v5784_v30 = vadd.f32 %v5780_v2, %v8335_v46 }
0x774d   :  { %v6937_v18 = vpop.f32.mrf.mxu1 }
0x774e   :  { %7390 = vtanh.f32 %v5784_v30  ;;  %v6329_v22 = vmul.f32 -1.442695, %v5784_v30 }
0x7750   :  { %7392 = vpow2.f32 %v6329_v22 }
0x775b   :  { %v7391_v20 = vpop.eup %7390 }
0x775c   :  { %5794 = vrot.lane.b32.xlu0 %v7391_v20, %s7453_s22 }
0x775d   :  { %v7393_v23 = vpop.eup %7392 }
0x775e   :  { %v5788_v24 = vadd.f32 1.0, %v7393_v23 }
0x7760   :  { %7394 = vrcp.f32 %v5788_v24 }
0x776d   :  { %v7395_v19 = vpop.eup %7394 }
0x776e   :  { %v5792_v34 = vmul.f32 %v7395_v19, %v5702_v40 }
0x77ce   :  { %v5795_v26 = vpop.permute.xlu0 %5794 }
0x77cf   :  { %v5797_v27 = vmul.f32 %v7395_v19, %v5795_v26 }
0x77d1   :  { %5799 = vrot.lane.b32.xlu1 %v5797_v27, %s7454_s23 }
0x7843   :  { %v5800_v6 = vpop.permute.xlu1 %5799 }
0x7844   :  { %v8400_v48 = vadd.f32 %v5800_v6, %v5792_v34 }
0x7846   :  { %7396 = vtanh.f32 %v8400_v48 }
0x7853   :  { %v7397_v16 = vpop.eup %7396 }
0x7854   :  { %5805 = vrot.lane.b32.xlu0 %v7397_v16, %s7454_s23 }
0x78c6   :  { %v5806_v58 = vpop.permute.xlu0 %5805 }
0x78c7   :  { %v5808_v28 = vmul.f32 %v7395_v19, %v5806_v58 }
0x78c9   :  { %5810 = vrot.lane.b32.xlu1 %v5808_v28, %s7452_s24 }
0x793b   :  { %v5811_v44 = vpop.permute.xlu1 %5810 }
0x793c   :  { %6941 = vmatmul.mubr.msk.f32.vlgmr.msra.gmra.mxu0 %vm25_vm0, %v5811_v44 }
0x793d   :  { %6950 = vmatprep.mubr.msk.f32.mxu0 %vm25_vm0, %v8342_v0  ;;  %6949 = vmatpush3.msra.mxu0 %v6009_v29  ;;  %v8423_v0 = vld [vmem:[%s8478_s1 + $0x158] ss:$0 sm:$0xff] }
0x7940   :  { %6951 = vmatmul.mubr.msk.f32.vlgmr.msra.gmra.mxu0 %vm25_vm0, %v8355_v36 }
0x7941   :  { %6953 = vmatprep.mubr.msk.f32.mxu0 %vm25_vm0, %v8368_v49 }
0x7944   :  { %6954 = vmatmul.mubr.msk.f32.gmra.mxu0 %vm25_vm0, %v8381_v59 }
0x7945   :  { %6956 = vmatprep.mubr.msk.f32.mxu0 %vm25_vm0, %v5711_v17 }
0x7948   :  { %6957 = vmatmul.mubr.msk.f32.gmra.mxu0 %vm25_vm0, %v5811_v44 }
0x79fc   :  { %v5880_v47 = vpop.f32.mrf.mxu0 }
0x79fd   :  { %v5884_v31 = vadd.f32 %v5880_v47, %v8335_v46 }
0x79fe   :  { %v6942_v32 = vpop.f32.mrf.mxu0 }
0x79ff   :  { %7398 = vtanh.f32 %v5884_v31  ;;  %v6331_v51 = vmul.f32 -1.442695, %v5884_v31 }
0x7a00   :  { %v6952_v36 = vpop.f32.mrf.mxu0 }
0x7a01   :  { %v6092_v35 = vadd.f32 %v6952_v36, %v8423_v0 }
0x7a02   :  { %v6086_v37 = vpop.f32.mrf.mxu0 }
0x7a03   :  { %v6344_v38 = vmul.f32 -1.442695, %v6092_v35  ;;  %v6087_v41 = vadd.f32 %v8423_v0, %v6086_v37 }
0x7a04   :  { %v6955_v42 = vpop.f32.mrf.mxu0 }
0x7a05   :  { %7400 = vpow2.f32 %v6344_v38  ;;  %v6343_v49 = vmul.f32 -1.442695, %v6087_v41  ;;  %v6102_v52 = vadd.f32 %v6955_v42, %v8423_v0 }
0x7a06   :  { %v6096_v50 = vpop.f32.mrf.mxu0 }
0x7a07   :  { %7402 = vpow2.f32 %v6343_v49  ;;  %v6346_v4 = vmul.f32 -1.442695, %v6102_v52  ;;  %v6097_v21 = vadd.f32 %v8423_v0, %v6096_v50 }
0x7a08   :  { %v6958_v8 = vpop.f32.mrf.mxu0 }
0x7a09   :  { %7404 = vpow2.f32 %v6346_v4  ;;  %v6345_v39 = vmul.f32 -1.442695, %v6097_v21  ;;  %v6112_v9 = vadd.f32 %v6958_v8, %v8423_v0 }
0x7a0a   :  { %v6106_v53 = vpop.f32.mrf.mxu0 }
0x7a0b   :  { %7406 = vpow2.f32 %v6345_v39  ;;  %v6348_v45 = vmul.f32 -1.442695, %v6112_v9  ;;  %v6107_v15 = vadd.f32 %v8423_v0, %v6106_v53 }
0x7a0c   :  { %v7399_v7 = vpop.eup %7398 }
0x7a0d   :  { %7408 = vpow2.f32 %v6348_v45  ;;  %v6347_v13 = vmul.f32 -1.442695, %v6107_v15  ;;  %5894 = vrot.lane.b32.xlu0 %v7399_v7, %s7453_s22 }
0x7a0f   :  { %7410 = vpow2.f32 %v6347_v13 }
0x7a12   :  { %v7401_v54 = vpop.eup %7400 }
0x7a13   :  { %v6150_v55 = vadd.f32 1.0, %v7401_v54 }
0x7a14   :  { %v7403_v33 = vpop.eup %7402 }
0x7a15   :  { %7412 = vrcp.f32 %v6150_v55  ;;  %v6149_v57 = vadd.f32 1.0, %v7403_v33 }
0x7a16   :  { %v7405_v59 = vpop.eup %7404 }
0x7a17   :  { %7414 = vrcp.f32 %v6149_v57  ;;  %v6152_v3 = vadd.f32 1.0, %v7405_v59 }
0x7a18   :  { %v7407_v60 = vpop.eup %7406 }
0x7a19   :  { %7416 = vrcp.f32 %v6152_v3  ;;  %v6151_v61 = vadd.f32 1.0, %v7407_v60 }
0x7a1a   :  { %v7409_v1 = vpop.eup %7408 }
0x7a1b   :  { %7418 = vrcp.f32 %v6151_v61  ;;  %v6154_v62 = vadd.f32 1.0, %v7409_v1 }
0x7a1c   :  { %v7411_v63 = vpop.eup %7410 }
0x7a1d   :  { %7420 = vrcp.f32 %v6154_v62  ;;  %v6153_v5 = vadd.f32 1.0, %v7411_v63 }
0x7a1f   :  { %7422 = vrcp.f32 %v6153_v5 }
0x7a20   :  { %7424 = vpow2.f32 %v6331_v51 }
0x7a22   :  { %v7413_v25 = vpop.eup %7412 }
0x7a23   :  { %6174 = vst.msk [vmem:[%s8480_s2 + $0x8] sm:$0xff] %vm25_vm0, %v7413_v25 }
0x7a24   :  { %v7415_v11 = vpop.eup %7414 }
0x7a25   :  { %6173 = vst.msk [vmem:[%s8480_s2] sm:$0xff] %vm25_vm0, %v7415_v11 }
0x7a26   :  { %v7417_v10 = vpop.eup %7416 }
0x7a27   :  { %6176 = vst.msk [vmem:[%s8480_s2 + $0x18] sm:$0xff] %vm25_vm0, %v7417_v10 }
0x7a28   :  { %v7419_v12 = vpop.eup %7418 }
0x7a29   :  { %6175 = vst.msk [vmem:[%s8480_s2 + $0x10] sm:$0xff] %vm25_vm0, %v7419_v12 }
0x7a2a   :  { %v7421_v43 = vpop.eup %7420 }
0x7a2b   :  { %6178 = vst.msk [vmem:[%s8480_s2 + $0x28] sm:$0xff] %vm25_vm0, %v7421_v43 }
0x7a2c   :  { %v7423_v40 = vpop.eup %7422 }
0x7a2d   :  { %6177 = vst.msk [vmem:[%s8480_s2 + $0x20] sm:$0xff] %vm25_vm0, %v7423_v40  ;;  %v7425_v14 = vpop.eup %7424 }
0x7a2e   :  { %v5888_v56 = vadd.f32 1.0, %v7425_v14 }
0x7a30   :  { %7426 = vrcp.f32 %v5888_v56 }
0x7a3d   :  { %v7427_v17 = vpop.eup %7426 }
0x7a3e   :  { %v5892_v18 = vmul.f32 %v7427_v17, %v8400_v48 }
0x7a7f   :  { %v5895_v2 = vpop.permute.xlu0 %5894 }
0x7a80   :  { %v5897_v30 = vmul.f32 %v7427_v17, %v5895_v2 }
0x7a82   :  { %5899 = vrot.lane.b32.xlu1 %v5897_v30, %s7454_s23 }
0x7af4   :  { %v5900_v20 = vpop.permute.xlu1 %5899 }
0x7af5   :  { %v5902_v22 = vadd.f32 %v5900_v20, %v5892_v18 }
0x7af7   :  { %7428 = vtanh.f32 %v5902_v22 }
0x7b04   :  { %v7429_v23 = vpop.eup %7428 }
0x7b05   :  { %5905 = vrot.lane.b32.xlu0 %v7429_v23, %s7454_s23 }
0x7b77   :  { %v5906_v24 = vpop.permute.xlu0 %5905 }
0x7b78   :  { %v5908_v19 = vmul.f32 %v7427_v17, %v5906_v24 }
0x7b7a   :  { %5910 = vrot.lane.b32.xlu1 %v5908_v19, %s7452_s24 }
0x7bec   :  { %v5911_v26 = vpop.permute.xlu1 %5910 }
0x7bed   :  { %6946 = vmatmul.mubr.msk.f32.vlgmr.msra.gmra.mxu1 %vm25_vm0, %v5911_v26  ;;  %6959 = vmatprep.mubr.msk.f32.mxu0 %vm25_vm0, %v5911_v26 }
0x7cad   :  { %v5980_v27 = vpop.f32.mrf.mxu1 }
0x7cae   :  { %v5984_v34 = vadd.f32 %v5980_v27, %v8335_v46 }
0x7caf   :  { %v6947_v6 = vpop.f32.mrf.mxu1 }
0x7cb0   :  { %7430 = vtanh.f32 %v5984_v34  ;;  %v6333_v16 = vmul.f32 -1.442695, %v5984_v34 }
0x7cb2   :  { %7432 = vpow2.f32 %v6333_v16 }
0x7cbd   :  { %v7431_v48 = vpop.eup %7430 }
0x7cbe   :  { %5994 = vrot.lane.b32.xlu0 %v7431_v48, %s7453_s22 }
0x7cbf   :  { %v7433_v29 = vpop.eup %7432 }
0x7cc0   :  { %v5988_v58 = vadd.f32 1.0, %v7433_v29 }
0x7cc2   :  { %7434 = vrcp.f32 %v5988_v58 }
0x7ccf   :  { %v7435_v28 = vpop.eup %7434 }
0x7cd0   :  { %v5992_v31 = vmul.f32 %v7435_v28, %v5902_v22 }
0x7d30   :  { %v5995_v44 = vpop.permute.xlu0 %5994 }
0x7d31   :  { %v5997_v47 = vmul.f32 %v7435_v28, %v5995_v44 }
0x7d33   :  { %5999 = vrot.lane.b32.xlu1 %v5997_v47, %s7454_s23 }
0x7da5   :  { %v6000_v32 = vpop.permute.xlu1 %5999 }
0x7da6   :  { %v6002_v36 = vadd.f32 %v6000_v32, %v5992_v31 }
0x7da8   :  { %7436 = vtanh.f32 %v6002_v36 }
0x7db5   :  { %v7437_v46 = vpop.eup %7436 }
0x7db6   :  { %6005 = vrot.lane.b32.xlu0 %v7437_v46, %s7454_s23 }
0x7e28   :  { %v6006_v35 = vpop.permute.xlu0 %6005 }
0x7e29   :  { %v6008_v37 = vmul.f32 %v7435_v28, %v6006_v35 }
0x7e2b   :  { %6016 = vrot.lane.b32.xlu1 %v6008_v37, %s7452_s24 }
0x7e9d   :  { %v6017_v38 = vpop.permute.xlu1 %6016 }
0x7e9e   :  { %6960 = vmatmul.mubr.msk.f32.gmra.mxu0 %vm25_vm0, %v6017_v38 }
0x7f5e   :  { %v6961_v41 = vpop.f32.mrf.mxu0 }
0x7f5f   :  { %v6122_v42 = vadd.f32 %v6961_v41, %v8423_v0 }
0x7f60   :  { %v6116_v49 = vpop.f32.mrf.mxu0 }
0x7f61   :  { %v6350_v52 = vmul.f32 -1.442695, %v6122_v42  ;;  %v6117_v50 = vadd.f32 %v8423_v0, %v6116_v49 }
0x7f63   :  { %7438 = vpow2.f32 %v6350_v52  ;;  %v6349_v4 = vmul.f32 -1.442695, %v6117_v50 }
0x7f65   :  { %7440 = vpow2.f32 %v6349_v4 }
0x7f70   :  { %v7439_v21 = vpop.eup %7438 }
0x7f71   :  { %v6156_v8 = vadd.f32 1.0, %v7439_v21 }
0x7f72   :  { %v7441_v39 = vpop.eup %7440 }
0x7f73   :  { %7442 = vrcp.f32 %v6156_v8  ;;  %v6155_v9 = vadd.f32 1.0, %v7441_v39 }
0x7f75   :  { %7444 = vrcp.f32 %v6155_v9 }
0x7f80   :  { %v7443_v53 = vpop.eup %7442 }
0x7f81   :  { %6180 = vst.msk [vmem:[%s8480_s2 + $0x38] sm:$0xff] %vm25_vm0, %v7443_v53 }
0x7f82   :  { %v7445_v45 = vpop.eup %7444 }
0x7f83   :  { %6179 = vst.msk [vmem:[%s8480_s2 + $0x30] sm:$0xff] %vm25_vm0, %v7445_v45 }

</bundles_post_ra>
